<compile_context>
chip_gen: v5e
topology: v5e:2x2
jax: 0.10.0
libtpu: 0.0.40
codegen_flags: <defaults>
</compile_context>

<pallas_src>
import jax
import jax.numpy as jnp
from jax import lax
from jax.experimental import pallas as pl
from jax.experimental.pallas import tpu as pltpu
from functools import partial

LANE = 128            # lane width (last dim of a vreg tile)
SUBLANE = 8           # f32 sublane count (second-to-last dim)
_STATIC_UNROLL_MAX = 16   # chunks up to this many steps are fully unrolled


def _round_up(x, m):
    return ((x + m - 1) // m) * m


# ------------------------- fused GRU + Linear kernel -------------------------
def make_fused_gru_kernel(num_layers, B_blk, H_pad, chunks, mm_dtype, n_gi):
    n_chunks = len(chunks)
    H2, H3 = 2 * H_pad, 3 * H_pad

    def kernel(*refs):
        x_ref, h0_ref = refs[0], refs[1]
        layer_refs = [refs[2 + 4 * l: 2 + 4 * l + 4] for l in range(num_layers)]
        p = 2 + 4 * num_layers
        wout_ref, bout_ref, out_ref = refs[p], refs[p + 1], refs[p + 2]
        scr = refs[p + 3:]
        gi_bufs = scr[:n_gi]
        seq_ref = scr[n_gi] if num_layers > 1 else None
        h_scr = scr[-1]

        def compute_gi(in_ref, wih_ref, bgi_ref, chunk, gi_buf):
            """Hoisted input projection for one time chunk (off the serial path).
            b_ih (+ b_hr, b_hz) are folded into bgi."""
            t0, tc = chunk
            rows = tc * B_blk                        # static
            xin = in_ref[pl.ds(t0 * B_blk, rows), :]
            gi_buf[pl.ds(0, rows), :] = (
                jnp.dot(xin.astype(mm_dtype), wih_ref[...],
                        preferred_element_type=jnp.float32) + bgi_ref[...])

        def run_chunk(gi_buf, whh_ref, bhn_b, chunk, write_seq):
            t0, tc = chunk

            def step(t, carry):
                if isinstance(t, int):               # static-unroll path
                    row = t * B_blk
                    srow = (t0 + t) * B_blk
                else:                                # fori_loop path
                    row = pl.multiple_of(t * B_blk, B_blk)
                    srow = pl.multiple_of(t0 * B_blk + t * B_blk, B_blk)
                gi = gi_buf[pl.ds(row, B_blk), :]    # (B_blk, 3H) f32, lane-aligned
                h = h_scr[...]
                gh = jnp.dot(h.astype(mm_dtype), whh_ref[...],
                             preferred_element_type=jnp.float32)
                # One EUP stream over the contiguous [r|z] slab.
                rz = jax.nn.sigmoid(gi[:, 0:H2] + gh[:, 0:H2])
                r = rz[:, 0:H_pad]
                z = rz[:, H_pad:H2]
                n = jnp.tanh(gi[:, H2:H3] + r * (gh[:, H2:H3] + bhn_b))
                h_new = n + z * (h - n)              # == (1 - z) * n + z * h
                h_scr[...] = h_new
                if write_seq:
                    seq_ref[pl.ds(srow, B_blk), :] = h_new.astype(seq_ref.dtype)
                return carry

            if tc <= _STATIC_UNROLL_MAX:
                for t in range(tc):
                    step(t, 0)
            else:
                lax.fori_loop(0, tc, step, 0, unroll=4)

        layer_in = x_ref
        for l in range(num_layers):
            wih_ref, whh_ref, bgi_ref, bhn_ref = layer_refs[l]
            write_seq = l + 1 < num_layers           # skip seq store for last layer

            h_scr[...] = h0_ref[pl.ds(l * B_blk, B_blk), :]
            bhn_b = jnp.broadcast_to(bhn_ref[...], (B_blk, H_pad))   # hoisted

            # Ping-pong gi: issue the matmul for chunk c+1 before consuming c.
            compute_gi(layer_in, wih_ref, bgi_ref, chunks[0], gi_bufs[0])
            for c in range(n_chunks):
                slot = c % n_gi
                if c + 1 < n_chunks:
                    compute_gi(layer_in, wih_ref, bgi_ref,
                               chunks[c + 1], gi_bufs[1 - slot])
                run_chunk(gi_bufs[slot], whh_ref, bhn_b, chunks[c], write_seq)

            if write_seq:
                layer_in = seq_ref       # chunked ref slices feed the next layer

        # Fused final Linear (c2o) on the last layer's last hidden state.
        out_ref[...] = (
            jnp.dot(h_scr[...].astype(mm_dtype), wout_ref[...],
                    preferred_element_type=jnp.float32) + bout_ref[...])

    return kernel


# --------------------------------- forward -----------------------------------
@partial(jax.jit,
         static_argnames=("num_layers", "hidden_size", "output_size", "t_chunk"))
def gru_model_forward(x, h0, padded_layer_params, w_out_p, b_out_p, *,
                      num_layers, hidden_size, output_size, t_chunk=32):
    """output, hn = gru(x, h0); return c2o(output[-1]) -- one fused kernel."""
    S, batch, in_size = x.shape
    H_pad = _round_up(hidden_size, LANE)
    In_pad = _round_up(in_size, LANE)
    O_pad = _round_up(output_size, LANE)
    # TODO(synk): pad H to 256-multiples at realistic hidden sizes for the
    #             256-wide v6e/v7x MXU (kept 128 here to limit padding at H=32).

    # Matmul-operand dtype follows how the weights were prepared (f32 or bf16).
    mm_dtype = jnp.dtype(padded_layer_params[0][0].dtype)

    # Batch blocking: each grid step owns B_blk batch rows; the grid axis is
    # "parallel" so v7x's two TensorCores split the batch.
    B_pad8 = _round_up(batch, SUBLANE)
    B_blk = min(B_pad8, 128)
    B_pad = _round_up(B_pad8, B_blk)
    n_bb = B_pad // B_blk

    # Static time chunks for the hoisted input projection.
    tc_max = max(1, min(S, t_chunk))
    chunks = tuple((t0, min(tc_max, S - t0)) for t0 in range(0, S, tc_max))
    n_gi = 2 if len(chunks) > 1 else 1

    # Activations: pad, block the batch dim, flatten (time, batch-block) rows.
    # Padded hidden lanes provably stay zero through the recurrence.
    x_p = jnp.pad(x, ((0, 0), (0, B_pad - batch), (0, In_pad - in_size)))
    x_p = x_p.reshape(S, n_bb, B_blk, In_pad).transpose(1, 0, 2, 3)
    x_p = x_p.reshape(n_bb, S * B_blk, In_pad).astype(mm_dtype)

    h0_p = jnp.pad(h0.astype(jnp.float32),
                   ((0, 0), (0, B_pad - batch), (0, H_pad - hidden_size)))
    h0_p = h0_p.reshape(num_layers, n_bb, B_blk, H_pad).transpose(1, 0, 2, 3)
    h0_p = h0_p.reshape(n_bb, num_layers * B_blk, H_pad)

    flat_params = []
    for lp in padded_layer_params:
        flat_params.extend(lp)

    in_specs = [
        pl.BlockSpec((None, S * B_blk, In_pad), lambda b: (b, 0, 0)),
        pl.BlockSpec((None, num_layers * B_blk, H_pad), lambda b: (b, 0, 0)),
    ]
    for l in range(num_layers):
        din = In_pad if l == 0 else H_pad
        in_specs += [
            pl.BlockSpec((din, 3 * H_pad), lambda b: (0, 0)),     # W_ih^T
            pl.BlockSpec((H_pad, 3 * H_pad), lambda b: (0, 0)),   # W_hh^T
            pl.BlockSpec((1, 3 * H_pad), lambda b: (0, 0)),       # b_gi
            pl.BlockSpec((1, H_pad), lambda b: (0, 0)),           # b_hn
        ]
    in_specs += [
        pl.BlockSpec((H_pad, O_pad), lambda b: (0, 0)),           # W_out^T
        pl.BlockSpec((1, O_pad), lambda b: (0, 0)),               # b_out
    ]
    out_specs = pl.BlockSpec((None, B_blk, O_pad), lambda b: (b, 0, 0))

    scratch_shapes = [pltpu.VMEM((chunks[0][1] * B_blk, 3 * H_pad), jnp.float32)
                      for _ in range(n_gi)]                       # gi ping-pong
    if num_layers > 1:
        # Layer-to-layer sequence buffer (f32 keeps per-step stores sublane-
        # aligned regardless of B_blk; cast to mm_dtype at the next gi dot).
        scratch_shapes.append(pltpu.VMEM((S * B_blk, H_pad), jnp.float32))
    scratch_shapes.append(pltpu.VMEM((B_blk, H_pad), jnp.float32))  # h state

    # Explicit scoped-VMEM budget: 2x (double-buffered) blocks + scratch.
    itemsize = int(mm_dtype.itemsize)
    params_bytes = 0
    for l in range(num_layers):
        din = In_pad if l == 0 else H_pad
        params_bytes += (din * 3 * H_pad + H_pad * 3 * H_pad) * itemsize
        params_bytes += (3 * H_pad + H_pad) * 4
    params_bytes += H_pad * O_pad * itemsize + O_pad * 4
    block_bytes = (S * B_blk * In_pad * itemsize
                   + num_layers * B_blk * H_pad * 4
                   + params_bytes
                   + B_blk * O_pad * 4)
    scratch_bytes = (n_gi * chunks[0][1] * B_blk * 3 * H_pad * 4
                     + (S * B_blk * H_pad * 4 if num_layers > 1 else 0)
                     + B_blk * H_pad * 4)
    vmem_limit = int(min(max(2 * block_bytes + scratch_bytes + (8 << 20), 32 << 20),
                         100 << 20))

    kernel = make_fused_gru_kernel(num_layers, B_blk, H_pad, chunks, mm_dtype, n_gi)

    out_p = pl.pallas_call(
        kernel,
        out_shape=jax.ShapeDtypeStruct((n_bb, B_blk, O_pad), jnp.float32),
        grid=(n_bb,),
        in_specs=in_specs,
        out_specs=out_specs,
        scratch_shapes=scratch_shapes,
        compiler_params=pltpu.CompilerParams(
            dimension_semantics=("parallel",),
            vmem_limit_bytes=vmem_limit),
    )(x_p, h0_p, *flat_params, w_out_p, b_out_p)

    out = out_p.reshape(n_bb * B_blk, O_pad)
    return out[:batch, :output_size]


# ------------------------------ parameter prep --------------------------------
def init_params(key, input_size, hidden_size, output_size, num_layers):
    """PyTorch-layout params: W^T stored as (in_features, 3H), gate order r,z,n."""
    k = 1.0 / jnp.sqrt(jnp.float32(hidden_size))
    layer_params = []
    for l in range(num_layers):
        in_dim = input_size if l == 0 else hidden_size
        key, k1, k2, k3, k4 = jax.random.split(key, 5)
        wih_t = jax.random.uniform(k1, (in_dim, 3 * hidden_size), jnp.float32, -k, k)
        whh_t = jax.random.uniform(k2, (hidden_size, 3 * hidden_size), jnp.float32, -k, k)
        bih = jax.random.uniform(k3, (1, 3 * hidden_size), jnp.float32, -k, k)
        bhh = jax.random.uniform(k4, (1, 3 * hidden_size), jnp.float32, -k, k)
        layer_params.append((wih_t, whh_t, bih, bhh))
    key, k5, k6 = jax.random.split(key, 3)
    w_out_t = jax.random.uniform(k5, (hidden_size, output_size), jnp.float32, -k, k)
    b_out = jax.random.uniform(k6, (1, output_size), jnp.float32, -k, k)
    return tuple(layer_params), w_out_t, b_out


def prepare_params(layer_params, w_out_t, b_out, input_size, hidden_size,
                   output_size, dtype=jnp.float32):
    """Pad / re-lay-out parameters so every gate occupies its own lane-aligned
    H_pad-wide slab (gate splits become free views), fold b_hr/b_hz into the
    input-projection bias, and cast matmul weights to `dtype` (f32 or bf16)."""
    H = hidden_size
    H_pad = _round_up(H, LANE)
    In_pad = _round_up(input_size, LANE)
    O_pad = _round_up(output_size, LANE)

    def pad_gate_cols(w, rows_pad):
        rows = w.shape[0]
        slabs = []
        for g in range(3):
            s = w[:, g * H:(g + 1) * H]
            slabs.append(jnp.pad(s, ((0, rows_pad - rows), (0, H_pad - H))))
        return jnp.concatenate(slabs, axis=1)

    prepped = []
    for l, (wih_t, whh_t, bih, bhh) in enumerate(layer_params):
        din_pad = In_pad if l == 0 else H_pad
        wih_p = pad_gate_cols(wih_t, din_pad).astype(dtype)         # (Din_pad, 3H_pad)
        whh_p = pad_gate_cols(whh_t, H_pad).astype(dtype)           # (H_pad, 3H_pad)
        b_comb = jnp.concatenate(
            [bih[:, :2 * H] + bhh[:, :2 * H], bih[:, 2 * H:]], axis=1)
        b_gi = pad_gate_cols(b_comb, 1).astype(jnp.float32)         # (1, 3H_pad)
        b_hn = jnp.pad(bhh[:, 2 * H:],
                       ((0, 0), (0, H_pad - H))).astype(jnp.float32)  # (1, H_pad)
        prepped.append((wih_p, whh_p, b_gi, b_hn))

    w_out_p = jnp.pad(w_out_t,
                      ((0, H_pad - H), (0, O_pad - output_size))).astype(dtype)
    b_out_p = jnp.pad(b_out, ((0, 0), (0, O_pad - output_size))).astype(jnp.float32)
    return tuple(prepped), w_out_p, b_out_p


# ----------------------------- pure-JAX reference ------------------------------
def gru_reference(x, h0, layer_params, w_out_t, b_out, mm_dtype=jnp.float32):
    """PyTorch-semantics reference.  mm_dtype emulates the kernel's matmul
    operand dtype (bf16 operands, f32 accumulation); gate math stays f32."""
    def mm(a, w):
        return jnp.dot(a.astype(mm_dtype), w.astype(mm_dtype),
                       preferred_element_type=jnp.float32)
    S = x.shape[0]
    H = h0.shape[-1]
    layer_in = x
    for l, (wih_t, whh_t, bih, bhh) in enumerate(layer_params):
        h = h0[l]
        outs = []
        for t in range(S):
            gi = mm(layer_in[t], wih_t) + bih
            gh = mm(h, whh_t) + bhh
            r = jax.nn.sigmoid(gi[:, :H] + gh[:, :H])
            z = jax.nn.sigmoid(gi[:, H:2 * H] + gh[:, H:2 * H])
            n = jnp.tanh(gi[:, 2 * H:] + r * gh[:, 2 * H:])
            h = (1.0 - z) * n + z * h
            outs.append(h)
        layer_in = jnp.stack(outs)
    return mm(layer_in[-1], w_out_t) + b_out


# ----------------------------------- main --------------------------------------
if __name__ == "__main__":
    input_size, hidden_size, output_size, num_layers = 8, 32, 4, 2
    seq_len, batch = 8, 2

    key = jax.random.PRNGKey(0)
    kx, kh, kp = jax.random.split(key, 3)

    x = jax.random.normal(kx, (seq_len, batch, input_size), jnp.float32)
    h0 = jax.random.normal(kh, (num_layers, batch, hidden_size), jnp.float32)  # initHidden

    layer_params, w_out_t, b_out = init_params(
        kp, input_size, hidden_size, output_size, num_layers)

    # --- f32 matmul path (exact module semantics), tightened tolerance ---
    pp32, w32, b32 = prepare_params(layer_params, w_out_t, b_out,
                                    input_size, hidden_size, output_size,
                                    dtype=jnp.float32)
    out32 = jax.block_until_ready(gru_model_forward(
        x, h0, pp32, w32, b32, num_layers=num_layers,
        hidden_size=hidden_size, output_size=output_size))
    assert out32.shape == (batch, output_size)
    ref32 = jax.block_until_ready(
        gru_reference(x, h0, layer_params, w_out_t, b_out))
    err32 = float(jnp.max(jnp.abs(out32 - ref32)))
    assert err32 < 5e-4, f"f32 path mismatch vs reference: {err32}"

    # --- bf16 matmul-operand path (f32 accumulation + f32 gate math) ---
    pp16, w16, b16 = prepare_params(layer_params, w_out_t, b_out,
                                    input_size, hidden_size, output_size,
                                    dtype=jnp.bfloat16)
    out16 = jax.block_until_ready(gru_model_forward(
        x, h0, pp16, w16, b16, num_layers=num_layers,
        hidden_size=hidden_size, output_size=output_size))
    ref16 = jax.block_until_ready(
        gru_reference(x, h0, layer_params, w_out_t, b_out, mm_dtype=jnp.bfloat16))
    err16 = float(jnp.max(jnp.abs(out16 - ref16)))
    assert err16 < 2e-3, f"bf16 path mismatch vs bf16-emulating reference: {err16}"
    drift = float(jnp.max(jnp.abs(out16 - ref32)))
    assert drift < 0.25, f"bf16 drift vs f32 reference too large: {drift}"

    print("KERNEL_OK")
</pallas_src>

<mosaic_0001>
module attributes {stable_mosaic.version = 11 : i64} {
  func.func @kernel(%arg0: i32, %arg1: memref<1x64x128xf32, #tpu.memory_space<vmem>>, %arg2: memref<1x16x128xf32, #tpu.memory_space<vmem>>, %arg3: memref<128x384xf32, #tpu.memory_space<vmem>>, %arg4: memref<128x384xf32, #tpu.memory_space<vmem>>, %arg5: memref<1x384xf32, #tpu.memory_space<vmem>>, %arg6: memref<1x128xf32, #tpu.memory_space<vmem>>, %arg7: memref<128x384xf32, #tpu.memory_space<vmem>>, %arg8: memref<128x384xf32, #tpu.memory_space<vmem>>, %arg9: memref<1x384xf32, #tpu.memory_space<vmem>>, %arg10: memref<1x128xf32, #tpu.memory_space<vmem>>, %arg11: memref<128x128xf32, #tpu.memory_space<vmem>>, %arg12: memref<1x128xf32, #tpu.memory_space<vmem>>, %arg13: memref<1x8x128xf32, #tpu.memory_space<vmem>>, %arg14: memref<64x384xf32, #tpu.memory_space<vmem>>, %arg15: memref<64x128xf32, #tpu.memory_space<vmem>>, %arg16: memref<8x128xf32, #tpu.memory_space<vmem>>) attributes {dimension_semantics = [#tpu.dimension_semantics<parallel>], iteration_bounds = array<i64: 1>, scalar_prefetch = 0 : i64, scratch_operands = 3 : i64, tpu.core_type = #tpu.core_type<tc>, window_params = [{transform_indices = @transform_0, window_bounds = array<i64: 1, 64, 128>}, {transform_indices = @transform_1, window_bounds = array<i64: 1, 16, 128>}, {pipeline_mode = #tpu.pipeline_mode<synchronous>, transform_indices = @transform_2, window_bounds = array<i64: 128, 384>}, {pipeline_mode = #tpu.pipeline_mode<synchronous>, transform_indices = @transform_3, window_bounds = array<i64: 128, 384>}, {pipeline_mode = #tpu.pipeline_mode<synchronous>, transform_indices = @transform_4, window_bounds = array<i64: 1, 384>}, {pipeline_mode = #tpu.pipeline_mode<synchronous>, transform_indices = @transform_5, window_bounds = array<i64: 1, 128>}, {pipeline_mode = #tpu.pipeline_mode<synchronous>, transform_indices = @transform_6, window_bounds = array<i64: 128, 384>}, {pipeline_mode = #tpu.pipeline_mode<synchronous>, transform_indices = @transform_7, window_bounds = array<i64: 128, 384>}, {pipeline_mode = #tpu.pipeline_mode<synchronous>, transform_indices = @transform_8, window_bounds = array<i64: 1, 384>}, {pipeline_mode = #tpu.pipeline_mode<synchronous>, transform_indices = @transform_9, window_bounds = array<i64: 1, 128>}, {pipeline_mode = #tpu.pipeline_mode<synchronous>, transform_indices = @transform_10, window_bounds = array<i64: 128, 128>}, {pipeline_mode = #tpu.pipeline_mode<synchronous>, transform_indices = @transform_11, window_bounds = array<i64: 1, 128>}, {transform_indices = @transform_12, window_bounds = array<i64: 1, 8, 128>}]} {
    %c0 = arith.constant 0 : index
    %c0_0 = arith.constant 0 : index
    %c0_1 = arith.constant 0 : index
    %0 = vector.load %arg2[%c0, %c0_0, %c0_1] : memref<1x16x128xf32, #tpu.memory_space<vmem>>, vector<1x8x128xf32>
    %1 = vector.shape_cast %0 : vector<1x8x128xf32> to vector<8x128xf32>
    %c0_2 = arith.constant 0 : index
    %c0_3 = arith.constant 0 : index
    %2 = vector.load %arg16[%c0_2, %c0_3] : memref<8x128xf32, #tpu.memory_space<vmem>>, vector<8x128xf32>
    tpu.vector_store %arg16[%c0_2, %c0_3], %1 {strides = array<i32>} : memref<8x128xf32, #tpu.memory_space<vmem>>, vector<8x128xf32>,
    %c0_4 = arith.constant 0 : index
    %c0_5 = arith.constant 0 : index
    %3 = vector.load %arg6[%c0_4, %c0_5] : memref<1x128xf32, #tpu.memory_space<vmem>>, vector<1x128xf32>
    %4 = vector.shape_cast %3 : vector<1x128xf32> to vector<1x128xf32>
    %5 = vector.broadcast %4 : vector<1x128xf32> to vector<8x128xf32>
    %c0_6 = arith.constant 0 : index
    %c0_7 = arith.constant 0 : index
    %c0_8 = arith.constant 0 : index
    %6 = vector.load %arg1[%c0_6, %c0_7, %c0_8] : memref<1x64x128xf32, #tpu.memory_space<vmem>>, vector<1x64x128xf32>
    %7 = vector.shape_cast %6 : vector<1x64x128xf32> to vector<64x128xf32>
    %c0_9 = arith.constant 0 : index
    %c0_10 = arith.constant 0 : index
    %8 = vector.load %arg3[%c0_9, %c0_10] : memref<128x384xf32, #tpu.memory_space<vmem>>, vector<128x384xf32>
    %cst = arith.constant dense<0.000000e+00> : vector<64x384xf32>
    %9 = tpu.matmul %7, %8, %cst {dimension_numbers = #tpu.dot_dimension_numbers<[1], [0], [0], [1], [0, 0, 1, 1], [], []>} : vector<64x128xf32>, vector<128x384xf32>, vector<64x384xf32> -> vector<64x384xf32>
    %c0_11 = arith.constant 0 : index
    %c0_12 = arith.constant 0 : index
    %10 = vector.load %arg5[%c0_11, %c0_12] : memref<1x384xf32, #tpu.memory_space<vmem>>, vector<1x384xf32>
    %11 = vector.broadcast %10 : vector<1x384xf32> to vector<64x384xf32>
    %12 = arith.addf %9, %11 : vector<64x384xf32>
    %c0_13 = arith.constant 0 : index
    %c0_14 = arith.constant 0 : index
    %13 = vector.load %arg14[%c0_13, %c0_14] : memref<64x384xf32, #tpu.memory_space<vmem>>, vector<64x384xf32>
    tpu.vector_store %arg14[%c0_13, %c0_14], %12 {strides = array<i32>} : memref<64x384xf32, #tpu.memory_space<vmem>>, vector<64x384xf32>,
    %c0_15 = arith.constant 0 : index
    %c0_16 = arith.constant 0 : index
    %14 = vector.load %arg14[%c0_15, %c0_16] : memref<64x384xf32, #tpu.memory_space<vmem>>, vector<8x384xf32>
    %c0_17 = arith.constant 0 : index
    %c0_18 = arith.constant 0 : index
    %15 = vector.load %arg16[%c0_17, %c0_18] : memref<8x128xf32, #tpu.memory_space<vmem>>, vector<8x128xf32>
    %c0_19 = arith.constant 0 : index
    %c0_20 = arith.constant 0 : index
    %16 = vector.load %arg4[%c0_19, %c0_20] : memref<128x384xf32, #tpu.memory_space<vmem>>, vector<128x384xf32>
    %cst_21 = arith.constant dense<0.000000e+00> : vector<8x384xf32>
    %17 = tpu.matmul %15, %16, %cst_21 {dimension_numbers = #tpu.dot_dimension_numbers<[1], [0], [0], [1], [0, 0, 1, 1], [], []>} : vector<8x128xf32>, vector<128x384xf32>, vector<8x384xf32> -> vector<8x384xf32>
    %18 = vector.extract_strided_slice %14 {offsets = [0, 0], sizes = [8, 256], strides = [1, 1]} : vector<8x384xf32> to vector<8x256xf32>
    %19 = vector.extract_strided_slice %17 {offsets = [0, 0], sizes = [8, 256], strides = [1, 1]} : vector<8x384xf32> to vector<8x256xf32>
    %20 = arith.addf %18, %19 : vector<8x256xf32>
    %21 = arith.negf %20 : vector<8x256xf32>
    %22 = math.exp %21 : vector<8x256xf32>
    %cst_22 = arith.constant 1.000000e+00 : f32
    %23 = vector.broadcast %cst_22 : f32 to vector<8x256xf32>
    %24 = arith.addf %23, %22 : vector<8x256xf32>
    %25 = arith.divf %23, %24 : vector<8x256xf32>
    %26 = vector.extract_strided_slice %25 {offsets = [0, 0], sizes = [8, 128], strides = [1, 1]} : vector<8x256xf32> to vector<8x128xf32>
    %27 = vector.extract_strided_slice %25 {offsets = [0, 128], sizes = [8, 128], strides = [1, 1]} : vector<8x256xf32> to vector<8x128xf32>
    %28 = vector.extract_strided_slice %14 {offsets = [0, 256], sizes = [8, 128], strides = [1, 1]} : vector<8x384xf32> to vector<8x128xf32>
    %29 = vector.extract_strided_slice %17 {offsets = [0, 256], sizes = [8, 128], strides = [1, 1]} : vector<8x384xf32> to vector<8x128xf32>
    %30 = arith.addf %29, %5 : vector<8x128xf32>
    %31 = arith.mulf %26, %30 : vector<8x128xf32>
    %32 = arith.addf %28, %31 : vector<8x128xf32>
    %33 = math.tanh %32 : vector<8x128xf32>
    %34 = arith.subf %15, %33 : vector<8x128xf32>
    %35 = arith.mulf %27, %34 : vector<8x128xf32>
    %36 = arith.addf %33, %35 : vector<8x128xf32>
    %c0_23 = arith.constant 0 : index
    %c0_24 = arith.constant 0 : index
    %37 = vector.load %arg16[%c0_23, %c0_24] : memref<8x128xf32, #tpu.memory_space<vmem>>, vector<8x128xf32>
    tpu.vector_store %arg16[%c0_23, %c0_24], %36 {strides = array<i32>} : memref<8x128xf32, #tpu.memory_space<vmem>>, vector<8x128xf32>,
    %c0_25 = arith.constant 0 : index
    %c0_26 = arith.constant 0 : index
    %38 = vector.load %arg15[%c0_25, %c0_26] : memref<64x128xf32, #tpu.memory_space<vmem>>, vector<8x128xf32>
    tpu.vector_store %arg15[%c0_25, %c0_26], %36 {strides = array<i32>} : memref<64x128xf32, #tpu.memory_space<vmem>>, vector<8x128xf32>,
    %c8 = arith.constant 8 : index
    %c0_27 = arith.constant 0 : index
    %39 = vector.load %arg14[%c8, %c0_27] : memref<64x384xf32, #tpu.memory_space<vmem>>, vector<8x384xf32>
    %c0_28 = arith.constant 0 : index
    %c0_29 = arith.constant 0 : index
    %40 = vector.load %arg16[%c0_28, %c0_29] : memref<8x128xf32, #tpu.memory_space<vmem>>, vector<8x128xf32>
    %c0_30 = arith.constant 0 : index
    %c0_31 = arith.constant 0 : index
    %41 = vector.load %arg4[%c0_30, %c0_31] : memref<128x384xf32, #tpu.memory_space<vmem>>, vector<128x384xf32>
    %cst_32 = arith.constant dense<0.000000e+00> : vector<8x384xf32>
    %42 = tpu.matmul %40, %41, %cst_32 {dimension_numbers = #tpu.dot_dimension_numbers<[1], [0], [0], [1], [0, 0, 1, 1], [], []>} : vector<8x128xf32>, vector<128x384xf32>, vector<8x384xf32> -> vector<8x384xf32>
    %43 = vector.extract_strided_slice %39 {offsets = [0, 0], sizes = [8, 256], strides = [1, 1]} : vector<8x384xf32> to vector<8x256xf32>
    %44 = vector.extract_strided_slice %42 {offsets = [0, 0], sizes = [8, 256], strides = [1, 1]} : vector<8x384xf32> to vector<8x256xf32>
    %45 = arith.addf %43, %44 : vector<8x256xf32>
    %46 = arith.negf %45 : vector<8x256xf32>
    %47 = math.exp %46 : vector<8x256xf32>
    %cst_33 = arith.constant 1.000000e+00 : f32
    %48 = vector.broadcast %cst_33 : f32 to vector<8x256xf32>
    %49 = arith.addf %48, %47 : vector<8x256xf32>
    %50 = arith.divf %48, %49 : vector<8x256xf32>
    %51 = vector.extract_strided_slice %50 {offsets = [0, 0], sizes = [8, 128], strides = [1, 1]} : vector<8x256xf32> to vector<8x128xf32>
    %52 = vector.extract_strided_slice %50 {offsets = [0, 128], sizes = [8, 128], strides = [1, 1]} : vector<8x256xf32> to vector<8x128xf32>
    %53 = vector.extract_strided_slice %39 {offsets = [0, 256], sizes = [8, 128], strides = [1, 1]} : vector<8x384xf32> to vector<8x128xf32>
    %54 = vector.extract_strided_slice %42 {offsets = [0, 256], sizes = [8, 128], strides = [1, 1]} : vector<8x384xf32> to vector<8x128xf32>
    %55 = arith.addf %54, %5 : vector<8x128xf32>
    %56 = arith.mulf %51, %55 : vector<8x128xf32>
    %57 = arith.addf %53, %56 : vector<8x128xf32>
    %58 = math.tanh %57 : vector<8x128xf32>
    %59 = arith.subf %40, %58 : vector<8x128xf32>
    %60 = arith.mulf %52, %59 : vector<8x128xf32>
    %61 = arith.addf %58, %60 : vector<8x128xf32>
    %c0_34 = arith.constant 0 : index
    %c0_35 = arith.constant 0 : index
    %62 = vector.load %arg16[%c0_34, %c0_35] : memref<8x128xf32, #tpu.memory_space<vmem>>, vector<8x128xf32>
    tpu.vector_store %arg16[%c0_34, %c0_35], %61 {strides = array<i32>} : memref<8x128xf32, #tpu.memory_space<vmem>>, vector<8x128xf32>,
    %c8_36 = arith.constant 8 : index
    %c0_37 = arith.constant 0 : index
    %63 = vector.load %arg15[%c8_36, %c0_37] : memref<64x128xf32, #tpu.memory_space<vmem>>, vector<8x128xf32>
    tpu.vector_store %arg15[%c8_36, %c0_37], %61 {strides = array<i32>} : memref<64x128xf32, #tpu.memory_space<vmem>>, vector<8x128xf32>,
    %c16 = arith.constant 16 : index
    %c0_38 = arith.constant 0 : index
    %64 = vector.load %arg14[%c16, %c0_38] : memref<64x384xf32, #tpu.memory_space<vmem>>, vector<8x384xf32>
    %c0_39 = arith.constant 0 : index
    %c0_40 = arith.constant 0 : index
    %65 = vector.load %arg16[%c0_39, %c0_40] : memref<8x128xf32, #tpu.memory_space<vmem>>, vector<8x128xf32>
    %c0_41 = arith.constant 0 : index
    %c0_42 = arith.constant 0 : index
    %66 = vector.load %arg4[%c0_41, %c0_42] : memref<128x384xf32, #tpu.memory_space<vmem>>, vector<128x384xf32>
    %cst_43 = arith.constant dense<0.000000e+00> : vector<8x384xf32>
    %67 = tpu.matmul %65, %66, %cst_43 {dimension_numbers = #tpu.dot_dimension_numbers<[1], [0], [0], [1], [0, 0, 1, 1], [], []>} : vector<8x128xf32>, vector<128x384xf32>, vector<8x384xf32> -> vector<8x384xf32>
    %68 = vector.extract_strided_slice %64 {offsets = [0, 0], sizes = [8, 256], strides = [1, 1]} : vector<8x384xf32> to vector<8x256xf32>
    %69 = vector.extract_strided_slice %67 {offsets = [0, 0], sizes = [8, 256], strides = [1, 1]} : vector<8x384xf32> to vector<8x256xf32>
    %70 = arith.addf %68, %69 : vector<8x256xf32>
    %71 = arith.negf %70 : vector<8x256xf32>
    %72 = math.exp %71 : vector<8x256xf32>
    %cst_44 = arith.constant 1.000000e+00 : f32
    %73 = vector.broadcast %cst_44 : f32 to vector<8x256xf32>
    %74 = arith.addf %73, %72 : vector<8x256xf32>
    %75 = arith.divf %73, %74 : vector<8x256xf32>
    %76 = vector.extract_strided_slice %75 {offsets = [0, 0], sizes = [8, 128], strides = [1, 1]} : vector<8x256xf32> to vector<8x128xf32>
    %77 = vector.extract_strided_slice %75 {offsets = [0, 128], sizes = [8, 128], strides = [1, 1]} : vector<8x256xf32> to vector<8x128xf32>
    %78 = vector.extract_strided_slice %64 {offsets = [0, 256], sizes = [8, 128], strides = [1, 1]} : vector<8x384xf32> to vector<8x128xf32>
    %79 = vector.extract_strided_slice %67 {offsets = [0, 256], sizes = [8, 128], strides = [1, 1]} : vector<8x384xf32> to vector<8x128xf32>
    %80 = arith.addf %79, %5 : vector<8x128xf32>
    %81 = arith.mulf %76, %80 : vector<8x128xf32>
    %82 = arith.addf %78, %81 : vector<8x128xf32>
    %83 = math.tanh %82 : vector<8x128xf32>
    %84 = arith.subf %65, %83 : vector<8x128xf32>
    %85 = arith.mulf %77, %84 : vector<8x128xf32>
    %86 = arith.addf %83, %85 : vector<8x128xf32>
    %c0_45 = arith.constant 0 : index
    %c0_46 = arith.constant 0 : index
    %87 = vector.load %arg16[%c0_45, %c0_46] : memref<8x128xf32, #tpu.memory_space<vmem>>, vector<8x128xf32>
    tpu.vector_store %arg16[%c0_45, %c0_46], %86 {strides = array<i32>} : memref<8x128xf32, #tpu.memory_space<vmem>>, vector<8x128xf32>,
    %c16_47 = arith.constant 16 : index
    %c0_48 = arith.constant 0 : index
    %88 = vector.load %arg15[%c16_47, %c0_48] : memref<64x128xf32, #tpu.memory_space<vmem>>, vector<8x128xf32>
    tpu.vector_store %arg15[%c16_47, %c0_48], %86 {strides = array<i32>} : memref<64x128xf32, #tpu.memory_space<vmem>>, vector<8x128xf32>,
    %c24 = arith.constant 24 : index
    %c0_49 = arith.constant 0 : index
    %89 = vector.load %arg14[%c24, %c0_49] : memref<64x384xf32, #tpu.memory_space<vmem>>, vector<8x384xf32>
    %c0_50 = arith.constant 0 : index
    %c0_51 = arith.constant 0 : index
    %90 = vector.load %arg16[%c0_50, %c0_51] : memref<8x128xf32, #tpu.memory_space<vmem>>, vector<8x128xf32>
    %c0_52 = arith.constant 0 : index
    %c0_53 = arith.constant 0 : index
    %91 = vector.load %arg4[%c0_52, %c0_53] : memref<128x384xf32, #tpu.memory_space<vmem>>, vector<128x384xf32>
    %cst_54 = arith.constant dense<0.000000e+00> : vector<8x384xf32>
    %92 = tpu.matmul %90, %91, %cst_54 {dimension_numbers = #tpu.dot_dimension_numbers<[1], [0], [0], [1], [0, 0, 1, 1], [], []>} : vector<8x128xf32>, vector<128x384xf32>, vector<8x384xf32> -> vector<8x384xf32>
    %93 = vector.extract_strided_slice %89 {offsets = [0, 0], sizes = [8, 256], strides = [1, 1]} : vector<8x384xf32> to vector<8x256xf32>
    %94 = vector.extract_strided_slice %92 {offsets = [0, 0], sizes = [8, 256], strides = [1, 1]} : vector<8x384xf32> to vector<8x256xf32>
    %95 = arith.addf %93, %94 : vector<8x256xf32>
    %96 = arith.negf %95 : vector<8x256xf32>
    %97 = math.exp %96 : vector<8x256xf32>
    %cst_55 = arith.constant 1.000000e+00 : f32
    %98 = vector.broadcast %cst_55 : f32 to vector<8x256xf32>
    %99 = arith.addf %98, %97 : vector<8x256xf32>
    %100 = arith.divf %98, %99 : vector<8x256xf32>
    %101 = vector.extract_strided_slice %100 {offsets = [0, 0], sizes = [8, 128], strides = [1, 1]} : vector<8x256xf32> to vector<8x128xf32>
    %102 = vector.extract_strided_slice %100 {offsets = [0, 128], sizes = [8, 128], strides = [1, 1]} : vector<8x256xf32> to vector<8x128xf32>
    %103 = vector.extract_strided_slice %89 {offsets = [0, 256], sizes = [8, 128], strides = [1, 1]} : vector<8x384xf32> to vector<8x128xf32>
    %104 = vector.extract_strided_slice %92 {offsets = [0, 256], sizes = [8, 128], strides = [1, 1]} : vector<8x384xf32> to vector<8x128xf32>
    %105 = arith.addf %104, %5 : vector<8x128xf32>
    %106 = arith.mulf %101, %105 : vector<8x128xf32>
    %107 = arith.addf %103, %106 : vector<8x128xf32>
    %108 = math.tanh %107 : vector<8x128xf32>
    %109 = arith.subf %90, %108 : vector<8x128xf32>
    %110 = arith.mulf %102, %109 : vector<8x128xf32>
    %111 = arith.addf %108, %110 : vector<8x128xf32>
    %c0_56 = arith.constant 0 : index
    %c0_57 = arith.constant 0 : index
    %112 = vector.load %arg16[%c0_56, %c0_57] : memref<8x128xf32, #tpu.memory_space<vmem>>, vector<8x128xf32>
    tpu.vector_store %arg16[%c0_56, %c0_57], %111 {strides = array<i32>} : memref<8x128xf32, #tpu.memory_space<vmem>>, vector<8x128xf32>,
    %c24_58 = arith.constant 24 : index
    %c0_59 = arith.constant 0 : index
    %113 = vector.load %arg15[%c24_58, %c0_59] : memref<64x128xf32, #tpu.memory_space<vmem>>, vector<8x128xf32>
    tpu.vector_store %arg15[%c24_58, %c0_59], %111 {strides = array<i32>} : memref<64x128xf32, #tpu.memory_space<vmem>>, vector<8x128xf32>,
    %c32 = arith.constant 32 : index
    %c0_60 = arith.constant 0 : index
    %114 = vector.load %arg14[%c32, %c0_60] : memref<64x384xf32, #tpu.memory_space<vmem>>, vector<8x384xf32>
    %c0_61 = arith.constant 0 : index
    %c0_62 = arith.constant 0 : index
    %115 = vector.load %arg16[%c0_61, %c0_62] : memref<8x128xf32, #tpu.memory_space<vmem>>, vector<8x128xf32>
    %c0_63 = arith.constant 0 : index
    %c0_64 = arith.constant 0 : index
    %116 = vector.load %arg4[%c0_63, %c0_64] : memref<128x384xf32, #tpu.memory_space<vmem>>, vector<128x384xf32>
    %cst_65 = arith.constant dense<0.000000e+00> : vector<8x384xf32>
    %117 = tpu.matmul %115, %116, %cst_65 {dimension_numbers = #tpu.dot_dimension_numbers<[1], [0], [0], [1], [0, 0, 1, 1], [], []>} : vector<8x128xf32>, vector<128x384xf32>, vector<8x384xf32> -> vector<8x384xf32>
    %118 = vector.extract_strided_slice %114 {offsets = [0, 0], sizes = [8, 256], strides = [1, 1]} : vector<8x384xf32> to vector<8x256xf32>
    %119 = vector.extract_strided_slice %117 {offsets = [0, 0], sizes = [8, 256], strides = [1, 1]} : vector<8x384xf32> to vector<8x256xf32>
    %120 = arith.addf %118, %119 : vector<8x256xf32>
    %121 = arith.negf %120 : vector<8x256xf32>
    %122 = math.exp %121 : vector<8x256xf32>
    %cst_66 = arith.constant 1.000000e+00 : f32
    %123 = vector.broadcast %cst_66 : f32 to vector<8x256xf32>
    %124 = arith.addf %123, %122 : vector<8x256xf32>
    %125 = arith.divf %123, %124 : vector<8x256xf32>
    %126 = vector.extract_strided_slice %125 {offsets = [0, 0], sizes = [8, 128], strides = [1, 1]} : vector<8x256xf32> to vector<8x128xf32>
    %127 = vector.extract_strided_slice %125 {offsets = [0, 128], sizes = [8, 128], strides = [1, 1]} : vector<8x256xf32> to vector<8x128xf32>
    %128 = vector.extract_strided_slice %114 {offsets = [0, 256], sizes = [8, 128], strides = [1, 1]} : vector<8x384xf32> to vector<8x128xf32>
    %129 = vector.extract_strided_slice %117 {offsets = [0, 256], sizes = [8, 128], strides = [1, 1]} : vector<8x384xf32> to vector<8x128xf32>
    %130 = arith.addf %129, %5 : vector<8x128xf32>
    %131 = arith.mulf %126, %130 : vector<8x128xf32>
    %132 = arith.addf %128, %131 : vector<8x128xf32>
    %133 = math.tanh %132 : vector<8x128xf32>
    %134 = arith.subf %115, %133 : vector<8x128xf32>
    %135 = arith.mulf %127, %134 : vector<8x128xf32>
    %136 = arith.addf %133, %135 : vector<8x128xf32>
    %c0_67 = arith.constant 0 : index
    %c0_68 = arith.constant 0 : index
    %137 = vector.load %arg16[%c0_67, %c0_68] : memref<8x128xf32, #tpu.memory_space<vmem>>, vector<8x128xf32>
    tpu.vector_store %arg16[%c0_67, %c0_68], %136 {strides = array<i32>} : memref<8x128xf32, #tpu.memory_space<vmem>>, vector<8x128xf32>,
    %c32_69 = arith.constant 32 : index
    %c0_70 = arith.constant 0 : index
    %138 = vector.load %arg15[%c32_69, %c0_70] : memref<64x128xf32, #tpu.memory_space<vmem>>, vector<8x128xf32>
    tpu.vector_store %arg15[%c32_69, %c0_70], %136 {strides = array<i32>} : memref<64x128xf32, #tpu.memory_space<vmem>>, vector<8x128xf32>,
    %c40 = arith.constant 40 : index
    %c0_71 = arith.constant 0 : index
    %139 = vector.load %arg14[%c40, %c0_71] : memref<64x384xf32, #tpu.memory_space<vmem>>, vector<8x384xf32>
    %c0_72 = arith.constant 0 : index
    %c0_73 = arith.constant 0 : index
    %140 = vector.load %arg16[%c0_72, %c0_73] : memref<8x128xf32, #tpu.memory_space<vmem>>, vector<8x128xf32>
    %c0_74 = arith.constant 0 : index
    %c0_75 = arith.constant 0 : index
    %141 = vector.load %arg4[%c0_74, %c0_75] : memref<128x384xf32, #tpu.memory_space<vmem>>, vector<128x384xf32>
    %cst_76 = arith.constant dense<0.000000e+00> : vector<8x384xf32>
    %142 = tpu.matmul %140, %141, %cst_76 {dimension_numbers = #tpu.dot_dimension_numbers<[1], [0], [0], [1], [0, 0, 1, 1], [], []>} : vector<8x128xf32>, vector<128x384xf32>, vector<8x384xf32> -> vector<8x384xf32>
    %143 = vector.extract_strided_slice %139 {offsets = [0, 0], sizes = [8, 256], strides = [1, 1]} : vector<8x384xf32> to vector<8x256xf32>
    %144 = vector.extract_strided_slice %142 {offsets = [0, 0], sizes = [8, 256], strides = [1, 1]} : vector<8x384xf32> to vector<8x256xf32>
    %145 = arith.addf %143, %144 : vector<8x256xf32>
    %146 = arith.negf %145 : vector<8x256xf32>
    %147 = math.exp %146 : vector<8x256xf32>
    %cst_77 = arith.constant 1.000000e+00 : f32
    %148 = vector.broadcast %cst_77 : f32 to vector<8x256xf32>
    %149 = arith.addf %148, %147 : vector<8x256xf32>
    %150 = arith.divf %148, %149 : vector<8x256xf32>
    %151 = vector.extract_strided_slice %150 {offsets = [0, 0], sizes = [8, 128], strides = [1, 1]} : vector<8x256xf32> to vector<8x128xf32>
    %152 = vector.extract_strided_slice %150 {offsets = [0, 128], sizes = [8, 128], strides = [1, 1]} : vector<8x256xf32> to vector<8x128xf32>
    %153 = vector.extract_strided_slice %139 {offsets = [0, 256], sizes = [8, 128], strides = [1, 1]} : vector<8x384xf32> to vector<8x128xf32>
    %154 = vector.extract_strided_slice %142 {offsets = [0, 256], sizes = [8, 128], strides = [1, 1]} : vector<8x384xf32> to vector<8x128xf32>
    %155 = arith.addf %154, %5 : vector<8x128xf32>
    %156 = arith.mulf %151, %155 : vector<8x128xf32>
    %157 = arith.addf %153, %156 : vector<8x128xf32>
    %158 = math.tanh %157 : vector<8x128xf32>
    %159 = arith.subf %140, %158 : vector<8x128xf32>
    %160 = arith.mulf %152, %159 : vector<8x128xf32>
    %161 = arith.addf %158, %160 : vector<8x128xf32>
    %c0_78 = arith.constant 0 : index
    %c0_79 = arith.constant 0 : index
    %162 = vector.load %arg16[%c0_78, %c0_79] : memref<8x128xf32, #tpu.memory_space<vmem>>, vector<8x128xf32>
    tpu.vector_store %arg16[%c0_78, %c0_79], %161 {strides = array<i32>} : memref<8x128xf32, #tpu.memory_space<vmem>>, vector<8x128xf32>,
    %c40_80 = arith.constant 40 : index
    %c0_81 = arith.constant 0 : index
    %163 = vector.load %arg15[%c40_80, %c0_81] : memref<64x128xf32, #tpu.memory_space<vmem>>, vector<8x128xf32>
    tpu.vector_store %arg15[%c40_80, %c0_81], %161 {strides = array<i32>} : memref<64x128xf32, #tpu.memory_space<vmem>>, vector<8x128xf32>,
    %c48 = arith.constant 48 : index
    %c0_82 = arith.constant 0 : index
    %164 = vector.load %arg14[%c48, %c0_82] : memref<64x384xf32, #tpu.memory_space<vmem>>, vector<8x384xf32>
    %c0_83 = arith.constant 0 : index
    %c0_84 = arith.constant 0 : index
    %165 = vector.load %arg16[%c0_83, %c0_84] : memref<8x128xf32, #tpu.memory_space<vmem>>, vector<8x128xf32>
    %c0_85 = arith.constant 0 : index
    %c0_86 = arith.constant 0 : index
    %166 = vector.load %arg4[%c0_85, %c0_86] : memref<128x384xf32, #tpu.memory_space<vmem>>, vector<128x384xf32>
    %cst_87 = arith.constant dense<0.000000e+00> : vector<8x384xf32>
    %167 = tpu.matmul %165, %166, %cst_87 {dimension_numbers = #tpu.dot_dimension_numbers<[1], [0], [0], [1], [0, 0, 1, 1], [], []>} : vector<8x128xf32>, vector<128x384xf32>, vector<8x384xf32> -> vector<8x384xf32>
    %168 = vector.extract_strided_slice %164 {offsets = [0, 0], sizes = [8, 256], strides = [1, 1]} : vector<8x384xf32> to vector<8x256xf32>
    %169 = vector.extract_strided_slice %167 {offsets = [0, 0], sizes = [8, 256], strides = [1, 1]} : vector<8x384xf32> to vector<8x256xf32>
    %170 = arith.addf %168, %169 : vector<8x256xf32>
    %171 = arith.negf %170 : vector<8x256xf32>
    %172 = math.exp %171 : vector<8x256xf32>
    %cst_88 = arith.constant 1.000000e+00 : f32
    %173 = vector.broadcast %cst_88 : f32 to vector<8x256xf32>
    %174 = arith.addf %173, %172 : vector<8x256xf32>
    %175 = arith.divf %173, %174 : vector<8x256xf32>
    %176 = vector.extract_strided_slice %175 {offsets = [0, 0], sizes = [8, 128], strides = [1, 1]} : vector<8x256xf32> to vector<8x128xf32>
    %177 = vector.extract_strided_slice %175 {offsets = [0, 128], sizes = [8, 128], strides = [1, 1]} : vector<8x256xf32> to vector<8x128xf32>
    %178 = vector.extract_strided_slice %164 {offsets = [0, 256], sizes = [8, 128], strides = [1, 1]} : vector<8x384xf32> to vector<8x128xf32>
    %179 = vector.extract_strided_slice %167 {offsets = [0, 256], sizes = [8, 128], strides = [1, 1]} : vector<8x384xf32> to vector<8x128xf32>
    %180 = arith.addf %179, %5 : vector<8x128xf32>
    %181 = arith.mulf %176, %180 : vector<8x128xf32>
    %182 = arith.addf %178, %181 : vector<8x128xf32>
    %183 = math.tanh %182 : vector<8x128xf32>
    %184 = arith.subf %165, %183 : vector<8x128xf32>
    %185 = arith.mulf %177, %184 : vector<8x128xf32>
    %186 = arith.addf %183, %185 : vector<8x128xf32>
    %c0_89 = arith.constant 0 : index
    %c0_90 = arith.constant 0 : index
    %187 = vector.load %arg16[%c0_89, %c0_90] : memref<8x128xf32, #tpu.memory_space<vmem>>, vector<8x128xf32>
    tpu.vector_store %arg16[%c0_89, %c0_90], %186 {strides = array<i32>} : memref<8x128xf32, #tpu.memory_space<vmem>>, vector<8x128xf32>,
    %c48_91 = arith.constant 48 : index
    %c0_92 = arith.constant 0 : index
    %188 = vector.load %arg15[%c48_91, %c0_92] : memref<64x128xf32, #tpu.memory_space<vmem>>, vector<8x128xf32>
    tpu.vector_store %arg15[%c48_91, %c0_92], %186 {strides = array<i32>} : memref<64x128xf32, #tpu.memory_space<vmem>>, vector<8x128xf32>,
    %c56 = arith.constant 56 : index
    %c0_93 = arith.constant 0 : index
    %189 = vector.load %arg14[%c56, %c0_93] : memref<64x384xf32, #tpu.memory_space<vmem>>, vector<8x384xf32>
    %c0_94 = arith.constant 0 : index
    %c0_95 = arith.constant 0 : index
    %190 = vector.load %arg16[%c0_94, %c0_95] : memref<8x128xf32, #tpu.memory_space<vmem>>, vector<8x128xf32>
    %c0_96 = arith.constant 0 : index
    %c0_97 = arith.constant 0 : index
    %191 = vector.load %arg4[%c0_96, %c0_97] : memref<128x384xf32, #tpu.memory_space<vmem>>, vector<128x384xf32>
    %cst_98 = arith.constant dense<0.000000e+00> : vector<8x384xf32>
    %192 = tpu.matmul %190, %191, %cst_98 {dimension_numbers = #tpu.dot_dimension_numbers<[1], [0], [0], [1], [0, 0, 1, 1], [], []>} : vector<8x128xf32>, vector<128x384xf32>, vector<8x384xf32> -> vector<8x384xf32>
    %193 = vector.extract_strided_slice %189 {offsets = [0, 0], sizes = [8, 256], strides = [1, 1]} : vector<8x384xf32> to vector<8x256xf32>
    %194 = vector.extract_strided_slice %192 {offsets = [0, 0], sizes = [8, 256], strides = [1, 1]} : vector<8x384xf32> to vector<8x256xf32>
    %195 = arith.addf %193, %194 : vector<8x256xf32>
    %196 = arith.negf %195 : vector<8x256xf32>
    %197 = math.exp %196 : vector<8x256xf32>
    %cst_99 = arith.constant 1.000000e+00 : f32
    %198 = vector.broadcast %cst_99 : f32 to vector<8x256xf32>
    %199 = arith.addf %198, %197 : vector<8x256xf32>
    %200 = arith.divf %198, %199 : vector<8x256xf32>
    %201 = vector.extract_strided_slice %200 {offsets = [0, 0], sizes = [8, 128], strides = [1, 1]} : vector<8x256xf32> to vector<8x128xf32>
    %202 = vector.extract_strided_slice %200 {offsets = [0, 128], sizes = [8, 128], strides = [1, 1]} : vector<8x256xf32> to vector<8x128xf32>
    %203 = vector.extract_strided_slice %189 {offsets = [0, 256], sizes = [8, 128], strides = [1, 1]} : vector<8x384xf32> to vector<8x128xf32>
    %204 = vector.extract_strided_slice %192 {offsets = [0, 256], sizes = [8, 128], strides = [1, 1]} : vector<8x384xf32> to vector<8x128xf32>
    %205 = arith.addf %204, %5 : vector<8x128xf32>
    %206 = arith.mulf %201, %205 : vector<8x128xf32>
    %207 = arith.addf %203, %206 : vector<8x128xf32>
    %208 = math.tanh %207 : vector<8x128xf32>
    %209 = arith.subf %190, %208 : vector<8x128xf32>
    %210 = arith.mulf %202, %209 : vector<8x128xf32>
    %211 = arith.addf %208, %210 : vector<8x128xf32>
    %c0_100 = arith.constant 0 : index
    %c0_101 = arith.constant 0 : index
    %212 = vector.load %arg16[%c0_100, %c0_101] : memref<8x128xf32, #tpu.memory_space<vmem>>, vector<8x128xf32>
    tpu.vector_store %arg16[%c0_100, %c0_101], %211 {strides = array<i32>} : memref<8x128xf32, #tpu.memory_space<vmem>>, vector<8x128xf32>,
    %c56_102 = arith.constant 56 : index
    %c0_103 = arith.constant 0 : index
    %213 = vector.load %arg15[%c56_102, %c0_103] : memref<64x128xf32, #tpu.memory_space<vmem>>, vector<8x128xf32>
    tpu.vector_store %arg15[%c56_102, %c0_103], %211 {strides = array<i32>} : memref<64x128xf32, #tpu.memory_space<vmem>>, vector<8x128xf32>,
    %c0_104 = arith.constant 0 : index
    %c8_105 = arith.constant 8 : index
    %c0_106 = arith.constant 0 : index
    %214 = vector.load %arg2[%c0_104, %c8_105, %c0_106] : memref<1x16x128xf32, #tpu.memory_space<vmem>>, vector<1x8x128xf32>
    %215 = vector.shape_cast %214 : vector<1x8x128xf32> to vector<8x128xf32>
    %c0_107 = arith.constant 0 : index
    %c0_108 = arith.constant 0 : index
    %216 = vector.load %arg16[%c0_107, %c0_108] : memref<8x128xf32, #tpu.memory_space<vmem>>, vector<8x128xf32>
    tpu.vector_store %arg16[%c0_107, %c0_108], %215 {strides = array<i32>} : memref<8x128xf32, #tpu.memory_space<vmem>>, vector<8x128xf32>,
    %c0_109 = arith.constant 0 : index
    %c0_110 = arith.constant 0 : index
    %217 = vector.load %arg10[%c0_109, %c0_110] : memref<1x128xf32, #tpu.memory_space<vmem>>, vector<1x128xf32>
    %218 = vector.shape_cast %217 : vector<1x128xf32> to vector<1x128xf32>
    %219 = vector.broadcast %218 : vector<1x128xf32> to vector<8x128xf32>
    %c0_111 = arith.constant 0 : index
    %c0_112 = arith.constant 0 : index
    %220 = vector.load %arg15[%c0_111, %c0_112] : memref<64x128xf32, #tpu.memory_space<vmem>>, vector<64x128xf32>
    %c0_113 = arith.constant 0 : index
    %c0_114 = arith.constant 0 : index
    %221 = vector.load %arg7[%c0_113, %c0_114] : memref<128x384xf32, #tpu.memory_space<vmem>>, vector<128x384xf32>
    %cst_115 = arith.constant dense<0.000000e+00> : vector<64x384xf32>
    %222 = tpu.matmul %220, %221, %cst_115 {dimension_numbers = #tpu.dot_dimension_numbers<[1], [0], [0], [1], [0, 0, 1, 1], [], []>} : vector<64x128xf32>, vector<128x384xf32>, vector<64x384xf32> -> vector<64x384xf32>
    %c0_116 = arith.constant 0 : index
    %c0_117 = arith.constant 0 : index
    %223 = vector.load %arg9[%c0_116, %c0_117] : memref<1x384xf32, #tpu.memory_space<vmem>>, vector<1x384xf32>
    %224 = vector.broadcast %223 : vector<1x384xf32> to vector<64x384xf32>
    %225 = arith.addf %222, %224 : vector<64x384xf32>
    %c0_118 = arith.constant 0 : index
    %c0_119 = arith.constant 0 : index
    %226 = vector.load %arg14[%c0_118, %c0_119] : memref<64x384xf32, #tpu.memory_space<vmem>>, vector<64x384xf32>
    tpu.vector_store %arg14[%c0_118, %c0_119], %225 {strides = array<i32>} : memref<64x384xf32, #tpu.memory_space<vmem>>, vector<64x384xf32>,
    %c0_120 = arith.constant 0 : index
    %c0_121 = arith.constant 0 : index
    %227 = vector.load %arg14[%c0_120, %c0_121] : memref<64x384xf32, #tpu.memory_space<vmem>>, vector<8x384xf32>
    %c0_122 = arith.constant 0 : index
    %c0_123 = arith.constant 0 : index
    %228 = vector.load %arg16[%c0_122, %c0_123] : memref<8x128xf32, #tpu.memory_space<vmem>>, vector<8x128xf32>
    %c0_124 = arith.constant 0 : index
    %c0_125 = arith.constant 0 : index
    %229 = vector.load %arg8[%c0_124, %c0_125] : memref<128x384xf32, #tpu.memory_space<vmem>>, vector<128x384xf32>
    %cst_126 = arith.constant dense<0.000000e+00> : vector<8x384xf32>
    %230 = tpu.matmul %228, %229, %cst_126 {dimension_numbers = #tpu.dot_dimension_numbers<[1], [0], [0], [1], [0, 0, 1, 1], [], []>} : vector<8x128xf32>, vector<128x384xf32>, vector<8x384xf32> -> vector<8x384xf32>
    %231 = vector.extract_strided_slice %227 {offsets = [0, 0], sizes = [8, 256], strides = [1, 1]} : vector<8x384xf32> to vector<8x256xf32>
    %232 = vector.extract_strided_slice %230 {offsets = [0, 0], sizes = [8, 256], strides = [1, 1]} : vector<8x384xf32> to vector<8x256xf32>
    %233 = arith.addf %231, %232 : vector<8x256xf32>
    %234 = arith.negf %233 : vector<8x256xf32>
    %235 = math.exp %234 : vector<8x256xf32>
    %cst_127 = arith.constant 1.000000e+00 : f32
    %236 = vector.broadcast %cst_127 : f32 to vector<8x256xf32>
    %237 = arith.addf %236, %235 : vector<8x256xf32>
    %238 = arith.divf %236, %237 : vector<8x256xf32>
    %239 = vector.extract_strided_slice %238 {offsets = [0, 0], sizes = [8, 128], strides = [1, 1]} : vector<8x256xf32> to vector<8x128xf32>
    %240 = vector.extract_strided_slice %238 {offsets = [0, 128], sizes = [8, 128], strides = [1, 1]} : vector<8x256xf32> to vector<8x128xf32>
    %241 = vector.extract_strided_slice %227 {offsets = [0, 256], sizes = [8, 128], strides = [1, 1]} : vector<8x384xf32> to vector<8x128xf32>
    %242 = vector.extract_strided_slice %230 {offsets = [0, 256], sizes = [8, 128], strides = [1, 1]} : vector<8x384xf32> to vector<8x128xf32>
    %243 = arith.addf %242, %219 : vector<8x128xf32>
    %244 = arith.mulf %239, %243 : vector<8x128xf32>
    %245 = arith.addf %241, %244 : vector<8x128xf32>
    %246 = math.tanh %245 : vector<8x128xf32>
    %247 = arith.subf %228, %246 : vector<8x128xf32>
    %248 = arith.mulf %240, %247 : vector<8x128xf32>
    %249 = arith.addf %246, %248 : vector<8x128xf32>
    %c0_128 = arith.constant 0 : index
    %c0_129 = arith.constant 0 : index
    %250 = vector.load %arg16[%c0_128, %c0_129] : memref<8x128xf32, #tpu.memory_space<vmem>>, vector<8x128xf32>
    tpu.vector_store %arg16[%c0_128, %c0_129], %249 {strides = array<i32>} : memref<8x128xf32, #tpu.memory_space<vmem>>, vector<8x128xf32>,
    %c8_130 = arith.constant 8 : index
    %c0_131 = arith.constant 0 : index
    %251 = vector.load %arg14[%c8_130, %c0_131] : memref<64x384xf32, #tpu.memory_space<vmem>>, vector<8x384xf32>
    %c0_132 = arith.constant 0 : index
    %c0_133 = arith.constant 0 : index
    %252 = vector.load %arg16[%c0_132, %c0_133] : memref<8x128xf32, #tpu.memory_space<vmem>>, vector<8x128xf32>
    %c0_134 = arith.constant 0 : index
    %c0_135 = arith.constant 0 : index
    %253 = vector.load %arg8[%c0_134, %c0_135] : memref<128x384xf32, #tpu.memory_space<vmem>>, vector<128x384xf32>
    %cst_136 = arith.constant dense<0.000000e+00> : vector<8x384xf32>
    %254 = tpu.matmul %252, %253, %cst_136 {dimension_numbers = #tpu.dot_dimension_numbers<[1], [0], [0], [1], [0, 0, 1, 1], [], []>} : vector<8x128xf32>, vector<128x384xf32>, vector<8x384xf32> -> vector<8x384xf32>
    %255 = vector.extract_strided_slice %251 {offsets = [0, 0], sizes = [8, 256], strides = [1, 1]} : vector<8x384xf32> to vector<8x256xf32>
    %256 = vector.extract_strided_slice %254 {offsets = [0, 0], sizes = [8, 256], strides = [1, 1]} : vector<8x384xf32> to vector<8x256xf32>
    %257 = arith.addf %255, %256 : vector<8x256xf32>
    %258 = arith.negf %257 : vector<8x256xf32>
    %259 = math.exp %258 : vector<8x256xf32>
    %cst_137 = arith.constant 1.000000e+00 : f32
    %260 = vector.broadcast %cst_137 : f32 to vector<8x256xf32>
    %261 = arith.addf %260, %259 : vector<8x256xf32>
    %262 = arith.divf %260, %261 : vector<8x256xf32>
    %263 = vector.extract_strided_slice %262 {offsets = [0, 0], sizes = [8, 128], strides = [1, 1]} : vector<8x256xf32> to vector<8x128xf32>
    %264 = vector.extract_strided_slice %262 {offsets = [0, 128], sizes = [8, 128], strides = [1, 1]} : vector<8x256xf32> to vector<8x128xf32>
    %265 = vector.extract_strided_slice %251 {offsets = [0, 256], sizes = [8, 128], strides = [1, 1]} : vector<8x384xf32> to vector<8x128xf32>
    %266 = vector.extract_strided_slice %254 {offsets = [0, 256], sizes = [8, 128], strides = [1, 1]} : vector<8x384xf32> to vector<8x128xf32>
    %267 = arith.addf %266, %219 : vector<8x128xf32>
    %268 = arith.mulf %263, %267 : vector<8x128xf32>
    %269 = arith.addf %265, %268 : vector<8x128xf32>
    %270 = math.tanh %269 : vector<8x128xf32>
    %271 = arith.subf %252, %270 : vector<8x128xf32>
    %272 = arith.mulf %264, %271 : vector<8x128xf32>
    %273 = arith.addf %270, %272 : vector<8x128xf32>
    %c0_138 = arith.constant 0 : index
    %c0_139 = arith.constant 0 : index
    %274 = vector.load %arg16[%c0_138, %c0_139] : memref<8x128xf32, #tpu.memory_space<vmem>>, vector<8x128xf32>
    tpu.vector_store %arg16[%c0_138, %c0_139], %273 {strides = array<i32>} : memref<8x128xf32, #tpu.memory_space<vmem>>, vector<8x128xf32>,
    %c16_140 = arith.constant 16 : index
    %c0_141 = arith.constant 0 : index
    %275 = vector.load %arg14[%c16_140, %c0_141] : memref<64x384xf32, #tpu.memory_space<vmem>>, vector<8x384xf32>
    %c0_142 = arith.constant 0 : index
    %c0_143 = arith.constant 0 : index
    %276 = vector.load %arg16[%c0_142, %c0_143] : memref<8x128xf32, #tpu.memory_space<vmem>>, vector<8x128xf32>
    %c0_144 = arith.constant 0 : index
    %c0_145 = arith.constant 0 : index
    %277 = vector.load %arg8[%c0_144, %c0_145] : memref<128x384xf32, #tpu.memory_space<vmem>>, vector<128x384xf32>
    %cst_146 = arith.constant dense<0.000000e+00> : vector<8x384xf32>
    %278 = tpu.matmul %276, %277, %cst_146 {dimension_numbers = #tpu.dot_dimension_numbers<[1], [0], [0], [1], [0, 0, 1, 1], [], []>} : vector<8x128xf32>, vector<128x384xf32>, vector<8x384xf32> -> vector<8x384xf32>
    %279 = vector.extract_strided_slice %275 {offsets = [0, 0], sizes = [8, 256], strides = [1, 1]} : vector<8x384xf32> to vector<8x256xf32>
    %280 = vector.extract_strided_slice %278 {offsets = [0, 0], sizes = [8, 256], strides = [1, 1]} : vector<8x384xf32> to vector<8x256xf32>
    %281 = arith.addf %279, %280 : vector<8x256xf32>
    %282 = arith.negf %281 : vector<8x256xf32>
    %283 = math.exp %282 : vector<8x256xf32>
    %cst_147 = arith.constant 1.000000e+00 : f32
    %284 = vector.broadcast %cst_147 : f32 to vector<8x256xf32>
    %285 = arith.addf %284, %283 : vector<8x256xf32>
    %286 = arith.divf %284, %285 : vector<8x256xf32>
    %287 = vector.extract_strided_slice %286 {offsets = [0, 0], sizes = [8, 128], strides = [1, 1]} : vector<8x256xf32> to vector<8x128xf32>
    %288 = vector.extract_strided_slice %286 {offsets = [0, 128], sizes = [8, 128], strides = [1, 1]} : vector<8x256xf32> to vector<8x128xf32>
    %289 = vector.extract_strided_slice %275 {offsets = [0, 256], sizes = [8, 128], strides = [1, 1]} : vector<8x384xf32> to vector<8x128xf32>
    %290 = vector.extract_strided_slice %278 {offsets = [0, 256], sizes = [8, 128], strides = [1, 1]} : vector<8x384xf32> to vector<8x128xf32>
    %291 = arith.addf %290, %219 : vector<8x128xf32>
    %292 = arith.mulf %287, %291 : vector<8x128xf32>
    %293 = arith.addf %289, %292 : vector<8x128xf32>
    %294 = math.tanh %293 : vector<8x128xf32>
    %295 = arith.subf %276, %294 : vector<8x128xf32>
    %296 = arith.mulf %288, %295 : vector<8x128xf32>
    %297 = arith.addf %294, %296 : vector<8x128xf32>
    %c0_148 = arith.constant 0 : index
    %c0_149 = arith.constant 0 : index
    %298 = vector.load %arg16[%c0_148, %c0_149] : memref<8x128xf32, #tpu.memory_space<vmem>>, vector<8x128xf32>
    tpu.vector_store %arg16[%c0_148, %c0_149], %297 {strides = array<i32>} : memref<8x128xf32, #tpu.memory_space<vmem>>, vector<8x128xf32>,
    %c24_150 = arith.constant 24 : index
    %c0_151 = arith.constant 0 : index
    %299 = vector.load %arg14[%c24_150, %c0_151] : memref<64x384xf32, #tpu.memory_space<vmem>>, vector<8x384xf32>
    %c0_152 = arith.constant 0 : index
    %c0_153 = arith.constant 0 : index
    %300 = vector.load %arg16[%c0_152, %c0_153] : memref<8x128xf32, #tpu.memory_space<vmem>>, vector<8x128xf32>
    %c0_154 = arith.constant 0 : index
    %c0_155 = arith.constant 0 : index
    %301 = vector.load %arg8[%c0_154, %c0_155] : memref<128x384xf32, #tpu.memory_space<vmem>>, vector<128x384xf32>
    %cst_156 = arith.constant dense<0.000000e+00> : vector<8x384xf32>
    %302 = tpu.matmul %300, %301, %cst_156 {dimension_numbers = #tpu.dot_dimension_numbers<[1], [0], [0], [1], [0, 0, 1, 1], [], []>} : vector<8x128xf32>, vector<128x384xf32>, vector<8x384xf32> -> vector<8x384xf32>
    %303 = vector.extract_strided_slice %299 {offsets = [0, 0], sizes = [8, 256], strides = [1, 1]} : vector<8x384xf32> to vector<8x256xf32>
    %304 = vector.extract_strided_slice %302 {offsets = [0, 0], sizes = [8, 256], strides = [1, 1]} : vector<8x384xf32> to vector<8x256xf32>
    %305 = arith.addf %303, %304 : vector<8x256xf32>
    %306 = arith.negf %305 : vector<8x256xf32>
    %307 = math.exp %306 : vector<8x256xf32>
    %cst_157 = arith.constant 1.000000e+00 : f32
    %308 = vector.broadcast %cst_157 : f32 to vector<8x256xf32>
    %309 = arith.addf %308, %307 : vector<8x256xf32>
    %310 = arith.divf %308, %309 : vector<8x256xf32>
    %311 = vector.extract_strided_slice %310 {offsets = [0, 0], sizes = [8, 128], strides = [1, 1]} : vector<8x256xf32> to vector<8x128xf32>
    %312 = vector.extract_strided_slice %310 {offsets = [0, 128], sizes = [8, 128], strides = [1, 1]} : vector<8x256xf32> to vector<8x128xf32>
    %313 = vector.extract_strided_slice %299 {offsets = [0, 256], sizes = [8, 128], strides = [1, 1]} : vector<8x384xf32> to vector<8x128xf32>
    %314 = vector.extract_strided_slice %302 {offsets = [0, 256], sizes = [8, 128], strides = [1, 1]} : vector<8x384xf32> to vector<8x128xf32>
    %315 = arith.addf %314, %219 : vector<8x128xf32>
    %316 = arith.mulf %311, %315 : vector<8x128xf32>
    %317 = arith.addf %313, %316 : vector<8x128xf32>
    %318 = math.tanh %317 : vector<8x128xf32>
    %319 = arith.subf %300, %318 : vector<8x128xf32>
    %320 = arith.mulf %312, %319 : vector<8x128xf32>
    %321 = arith.addf %318, %320 : vector<8x128xf32>
    %c0_158 = arith.constant 0 : index
    %c0_159 = arith.constant 0 : index
    %322 = vector.load %arg16[%c0_158, %c0_159] : memref<8x128xf32, #tpu.memory_space<vmem>>, vector<8x128xf32>
    tpu.vector_store %arg16[%c0_158, %c0_159], %321 {strides = array<i32>} : memref<8x128xf32, #tpu.memory_space<vmem>>, vector<8x128xf32>,
    %c32_160 = arith.constant 32 : index
    %c0_161 = arith.constant 0 : index
    %323 = vector.load %arg14[%c32_160, %c0_161] : memref<64x384xf32, #tpu.memory_space<vmem>>, vector<8x384xf32>
    %c0_162 = arith.constant 0 : index
    %c0_163 = arith.constant 0 : index
    %324 = vector.load %arg16[%c0_162, %c0_163] : memref<8x128xf32, #tpu.memory_space<vmem>>, vector<8x128xf32>
    %c0_164 = arith.constant 0 : index
    %c0_165 = arith.constant 0 : index
    %325 = vector.load %arg8[%c0_164, %c0_165] : memref<128x384xf32, #tpu.memory_space<vmem>>, vector<128x384xf32>
    %cst_166 = arith.constant dense<0.000000e+00> : vector<8x384xf32>
    %326 = tpu.matmul %324, %325, %cst_166 {dimension_numbers = #tpu.dot_dimension_numbers<[1], [0], [0], [1], [0, 0, 1, 1], [], []>} : vector<8x128xf32>, vector<128x384xf32>, vector<8x384xf32> -> vector<8x384xf32>
    %327 = vector.extract_strided_slice %323 {offsets = [0, 0], sizes = [8, 256], strides = [1, 1]} : vector<8x384xf32> to vector<8x256xf32>
    %328 = vector.extract_strided_slice %326 {offsets = [0, 0], sizes = [8, 256], strides = [1, 1]} : vector<8x384xf32> to vector<8x256xf32>
    %329 = arith.addf %327, %328 : vector<8x256xf32>
    %330 = arith.negf %329 : vector<8x256xf32>
    %331 = math.exp %330 : vector<8x256xf32>
    %cst_167 = arith.constant 1.000000e+00 : f32
    %332 = vector.broadcast %cst_167 : f32 to vector<8x256xf32>
    %333 = arith.addf %332, %331 : vector<8x256xf32>
    %334 = arith.divf %332, %333 : vector<8x256xf32>
    %335 = vector.extract_strided_slice %334 {offsets = [0, 0], sizes = [8, 128], strides = [1, 1]} : vector<8x256xf32> to vector<8x128xf32>
    %336 = vector.extract_strided_slice %334 {offsets = [0, 128], sizes = [8, 128], strides = [1, 1]} : vector<8x256xf32> to vector<8x128xf32>
    %337 = vector.extract_strided_slice %323 {offsets = [0, 256], sizes = [8, 128], strides = [1, 1]} : vector<8x384xf32> to vector<8x128xf32>
    %338 = vector.extract_strided_slice %326 {offsets = [0, 256], sizes = [8, 128], strides = [1, 1]} : vector<8x384xf32> to vector<8x128xf32>
    %339 = arith.addf %338, %219 : vector<8x128xf32>
    %340 = arith.mulf %335, %339 : vector<8x128xf32>
    %341 = arith.addf %337, %340 : vector<8x128xf32>
    %342 = math.tanh %341 : vector<8x128xf32>
    %343 = arith.subf %324, %342 : vector<8x128xf32>
    %344 = arith.mulf %336, %343 : vector<8x128xf32>
    %345 = arith.addf %342, %344 : vector<8x128xf32>
    %c0_168 = arith.constant 0 : index
    %c0_169 = arith.constant 0 : index
    %346 = vector.load %arg16[%c0_168, %c0_169] : memref<8x128xf32, #tpu.memory_space<vmem>>, vector<8x128xf32>
    tpu.vector_store %arg16[%c0_168, %c0_169], %345 {strides = array<i32>} : memref<8x128xf32, #tpu.memory_space<vmem>>, vector<8x128xf32>,
    %c40_170 = arith.constant 40 : index
    %c0_171 = arith.constant 0 : index
    %347 = vector.load %arg14[%c40_170, %c0_171] : memref<64x384xf32, #tpu.memory_space<vmem>>, vector<8x384xf32>
    %c0_172 = arith.constant 0 : index
    %c0_173 = arith.constant 0 : index
    %348 = vector.load %arg16[%c0_172, %c0_173] : memref<8x128xf32, #tpu.memory_space<vmem>>, vector<8x128xf32>
    %c0_174 = arith.constant 0 : index
    %c0_175 = arith.constant 0 : index
    %349 = vector.load %arg8[%c0_174, %c0_175] : memref<128x384xf32, #tpu.memory_space<vmem>>, vector<128x384xf32>
    %cst_176 = arith.constant dense<0.000000e+00> : vector<8x384xf32>
    %350 = tpu.matmul %348, %349, %cst_176 {dimension_numbers = #tpu.dot_dimension_numbers<[1], [0], [0], [1], [0, 0, 1, 1], [], []>} : vector<8x128xf32>, vector<128x384xf32>, vector<8x384xf32> -> vector<8x384xf32>
    %351 = vector.extract_strided_slice %347 {offsets = [0, 0], sizes = [8, 256], strides = [1, 1]} : vector<8x384xf32> to vector<8x256xf32>
    %352 = vector.extract_strided_slice %350 {offsets = [0, 0], sizes = [8, 256], strides = [1, 1]} : vector<8x384xf32> to vector<8x256xf32>
    %353 = arith.addf %351, %352 : vector<8x256xf32>
    %354 = arith.negf %353 : vector<8x256xf32>
    %355 = math.exp %354 : vector<8x256xf32>
    %cst_177 = arith.constant 1.000000e+00 : f32
    %356 = vector.broadcast %cst_177 : f32 to vector<8x256xf32>
    %357 = arith.addf %356, %355 : vector<8x256xf32>
    %358 = arith.divf %356, %357 : vector<8x256xf32>
    %359 = vector.extract_strided_slice %358 {offsets = [0, 0], sizes = [8, 128], strides = [1, 1]} : vector<8x256xf32> to vector<8x128xf32>
    %360 = vector.extract_strided_slice %358 {offsets = [0, 128], sizes = [8, 128], strides = [1, 1]} : vector<8x256xf32> to vector<8x128xf32>
    %361 = vector.extract_strided_slice %347 {offsets = [0, 256], sizes = [8, 128], strides = [1, 1]} : vector<8x384xf32> to vector<8x128xf32>
    %362 = vector.extract_strided_slice %350 {offsets = [0, 256], sizes = [8, 128], strides = [1, 1]} : vector<8x384xf32> to vector<8x128xf32>
    %363 = arith.addf %362, %219 : vector<8x128xf32>
    %364 = arith.mulf %359, %363 : vector<8x128xf32>
    %365 = arith.addf %361, %364 : vector<8x128xf32>
    %366 = math.tanh %365 : vector<8x128xf32>
    %367 = arith.subf %348, %366 : vector<8x128xf32>
    %368 = arith.mulf %360, %367 : vector<8x128xf32>
    %369 = arith.addf %366, %368 : vector<8x128xf32>
    %c0_178 = arith.constant 0 : index
    %c0_179 = arith.constant 0 : index
    %370 = vector.load %arg16[%c0_178, %c0_179] : memref<8x128xf32, #tpu.memory_space<vmem>>, vector<8x128xf32>
    tpu.vector_store %arg16[%c0_178, %c0_179], %369 {strides = array<i32>} : memref<8x128xf32, #tpu.memory_space<vmem>>, vector<8x128xf32>,
    %c48_180 = arith.constant 48 : index
    %c0_181 = arith.constant 0 : index
    %371 = vector.load %arg14[%c48_180, %c0_181] : memref<64x384xf32, #tpu.memory_space<vmem>>, vector<8x384xf32>
    %c0_182 = arith.constant 0 : index
    %c0_183 = arith.constant 0 : index
    %372 = vector.load %arg16[%c0_182, %c0_183] : memref<8x128xf32, #tpu.memory_space<vmem>>, vector<8x128xf32>
    %c0_184 = arith.constant 0 : index
    %c0_185 = arith.constant 0 : index
    %373 = vector.load %arg8[%c0_184, %c0_185] : memref<128x384xf32, #tpu.memory_space<vmem>>, vector<128x384xf32>
    %cst_186 = arith.constant dense<0.000000e+00> : vector<8x384xf32>
    %374 = tpu.matmul %372, %373, %cst_186 {dimension_numbers = #tpu.dot_dimension_numbers<[1], [0], [0], [1], [0, 0, 1, 1], [], []>} : vector<8x128xf32>, vector<128x384xf32>, vector<8x384xf32> -> vector<8x384xf32>
    %375 = vector.extract_strided_slice %371 {offsets = [0, 0], sizes = [8, 256], strides = [1, 1]} : vector<8x384xf32> to vector<8x256xf32>
    %376 = vector.extract_strided_slice %374 {offsets = [0, 0], sizes = [8, 256], strides = [1, 1]} : vector<8x384xf32> to vector<8x256xf32>
    %377 = arith.addf %375, %376 : vector<8x256xf32>
    %378 = arith.negf %377 : vector<8x256xf32>
    %379 = math.exp %378 : vector<8x256xf32>
    %cst_187 = arith.constant 1.000000e+00 : f32
    %380 = vector.broadcast %cst_187 : f32 to vector<8x256xf32>
    %381 = arith.addf %380, %379 : vector<8x256xf32>
    %382 = arith.divf %380, %381 : vector<8x256xf32>
    %383 = vector.extract_strided_slice %382 {offsets = [0, 0], sizes = [8, 128], strides = [1, 1]} : vector<8x256xf32> to vector<8x128xf32>
    %384 = vector.extract_strided_slice %382 {offsets = [0, 128], sizes = [8, 128], strides = [1, 1]} : vector<8x256xf32> to vector<8x128xf32>
    %385 = vector.extract_strided_slice %371 {offsets = [0, 256], sizes = [8, 128], strides = [1, 1]} : vector<8x384xf32> to vector<8x128xf32>
    %386 = vector.extract_strided_slice %374 {offsets = [0, 256], sizes = [8, 128], strides = [1, 1]} : vector<8x384xf32> to vector<8x128xf32>
    %387 = arith.addf %386, %219 : vector<8x128xf32>
    %388 = arith.mulf %383, %387 : vector<8x128xf32>
    %389 = arith.addf %385, %388 : vector<8x128xf32>
    %390 = math.tanh %389 : vector<8x128xf32>
    %391 = arith.subf %372, %390 : vector<8x128xf32>
    %392 = arith.mulf %384, %391 : vector<8x128xf32>
    %393 = arith.addf %390, %392 : vector<8x128xf32>
    %c0_188 = arith.constant 0 : index
    %c0_189 = arith.constant 0 : index
    %394 = vector.load %arg16[%c0_188, %c0_189] : memref<8x128xf32, #tpu.memory_space<vmem>>, vector<8x128xf32>
    tpu.vector_store %arg16[%c0_188, %c0_189], %393 {strides = array<i32>} : memref<8x128xf32, #tpu.memory_space<vmem>>, vector<8x128xf32>,
    %c56_190 = arith.constant 56 : index
    %c0_191 = arith.constant 0 : index
    %395 = vector.load %arg14[%c56_190, %c0_191] : memref<64x384xf32, #tpu.memory_space<vmem>>, vector<8x384xf32>
    %c0_192 = arith.constant 0 : index
    %c0_193 = arith.constant 0 : index
    %396 = vector.load %arg16[%c0_192, %c0_193] : memref<8x128xf32, #tpu.memory_space<vmem>>, vector<8x128xf32>
    %c0_194 = arith.constant 0 : index
    %c0_195 = arith.constant 0 : index
    %397 = vector.load %arg8[%c0_194, %c0_195] : memref<128x384xf32, #tpu.memory_space<vmem>>, vector<128x384xf32>
    %cst_196 = arith.constant dense<0.000000e+00> : vector<8x384xf32>
    %398 = tpu.matmul %396, %397, %cst_196 {dimension_numbers = #tpu.dot_dimension_numbers<[1], [0], [0], [1], [0, 0, 1, 1], [], []>} : vector<8x128xf32>, vector<128x384xf32>, vector<8x384xf32> -> vector<8x384xf32>
    %399 = vector.extract_strided_slice %395 {offsets = [0, 0], sizes = [8, 256], strides = [1, 1]} : vector<8x384xf32> to vector<8x256xf32>
    %400 = vector.extract_strided_slice %398 {offsets = [0, 0], sizes = [8, 256], strides = [1, 1]} : vector<8x384xf32> to vector<8x256xf32>
    %401 = arith.addf %399, %400 : vector<8x256xf32>
    %402 = arith.negf %401 : vector<8x256xf32>
    %403 = math.exp %402 : vector<8x256xf32>
    %cst_197 = arith.constant 1.000000e+00 : f32
    %404 = vector.broadcast %cst_197 : f32 to vector<8x256xf32>
    %405 = arith.addf %404, %403 : vector<8x256xf32>
    %406 = arith.divf %404, %405 : vector<8x256xf32>
    %407 = vector.extract_strided_slice %406 {offsets = [0, 0], sizes = [8, 128], strides = [1, 1]} : vector<8x256xf32> to vector<8x128xf32>
    %408 = vector.extract_strided_slice %406 {offsets = [0, 128], sizes = [8, 128], strides = [1, 1]} : vector<8x256xf32> to vector<8x128xf32>
    %409 = vector.extract_strided_slice %395 {offsets = [0, 256], sizes = [8, 128], strides = [1, 1]} : vector<8x384xf32> to vector<8x128xf32>
    %410 = vector.extract_strided_slice %398 {offsets = [0, 256], sizes = [8, 128], strides = [1, 1]} : vector<8x384xf32> to vector<8x128xf32>
    %411 = arith.addf %410, %219 : vector<8x128xf32>
    %412 = arith.mulf %407, %411 : vector<8x128xf32>
    %413 = arith.addf %409, %412 : vector<8x128xf32>
    %414 = math.tanh %413 : vector<8x128xf32>
    %415 = arith.subf %396, %414 : vector<8x128xf32>
    %416 = arith.mulf %408, %415 : vector<8x128xf32>
    %417 = arith.addf %414, %416 : vector<8x128xf32>
    %c0_198 = arith.constant 0 : index
    %c0_199 = arith.constant 0 : index
    %418 = vector.load %arg16[%c0_198, %c0_199] : memref<8x128xf32, #tpu.memory_space<vmem>>, vector<8x128xf32>
    tpu.vector_store %arg16[%c0_198, %c0_199], %417 {strides = array<i32>} : memref<8x128xf32, #tpu.memory_space<vmem>>, vector<8x128xf32>,
    %c0_200 = arith.constant 0 : index
    %c0_201 = arith.constant 0 : index
    %419 = vector.load %arg16[%c0_200, %c0_201] : memref<8x128xf32, #tpu.memory_space<vmem>>, vector<8x128xf32>
    %c0_202 = arith.constant 0 : index
    %c0_203 = arith.constant 0 : index
    %420 = vector.load %arg11[%c0_202, %c0_203] : memref<128x128xf32, #tpu.memory_space<vmem>>, vector<128x128xf32>
    %cst_204 = arith.constant dense<0.000000e+00> : vector<8x128xf32>
    %421 = tpu.matmul %419, %420, %cst_204 {dimension_numbers = #tpu.dot_dimension_numbers<[1], [0], [0], [1], [0, 0, 1, 1], [], []>} : vector<8x128xf32>, vector<128x128xf32>, vector<8x128xf32> -> vector<8x128xf32>
    %c0_205 = arith.constant 0 : index
    %c0_206 = arith.constant 0 : index
    %422 = vector.load %arg12[%c0_205, %c0_206] : memref<1x128xf32, #tpu.memory_space<vmem>>, vector<1x128xf32>
    %423 = vector.broadcast %422 : vector<1x128xf32> to vector<8x128xf32>
    %424 = arith.addf %421, %423 : vector<8x128xf32>
    %c0_207 = arith.constant 0 : index
    %c0_208 = arith.constant 0 : index
    %c0_209 = arith.constant 0 : index
    %425 = vector.load %arg13[%c0_207, %c0_208, %c0_209] : memref<1x8x128xf32, #tpu.memory_space<vmem>>, vector<1x8x128xf32>
    %426 = vector.shape_cast %425 : vector<1x8x128xf32> to vector<8x128xf32>
    %427 = vector.shape_cast %424 : vector<8x128xf32> to vector<1x8x128xf32>
    tpu.vector_store %arg13[%c0_207, %c0_208, %c0_209], %427 {strides = array<i32>} : memref<1x8x128xf32, #tpu.memory_space<vmem>>, vector<1x8x128xf32>,
    return
  }
  func.func @transform_0(%arg0: i32) -> (i32, i32, i32) {
    %c0_i32 = arith.constant 0 : i32
    %c0_i32_0 = arith.constant 0 : i32
    %c0_i32_1 = arith.constant 0 : i32
    return %arg0, %c0_i32, %c0_i32_0 : i32, i32, i32
  }
  func.func @transform_1(%arg0: i32) -> (i32, i32, i32) {
    %c0_i32 = arith.constant 0 : i32
    %c0_i32_0 = arith.constant 0 : i32
    %c0_i32_1 = arith.constant 0 : i32
    return %arg0, %c0_i32, %c0_i32_0 : i32, i32, i32
  }
  func.func @transform_2(%arg0: i32) -> (i32, i32) {
    %c0_i32 = arith.constant 0 : i32
    %c0_i32_0 = arith.constant 0 : i32
    %c0_i32_1 = arith.constant 0 : i32
    return %c0_i32, %c0_i32_0 : i32, i32
  }
  func.func @transform_3(%arg0: i32) -> (i32, i32) {
    %c0_i32 = arith.constant 0 : i32
    %c0_i32_0 = arith.constant 0 : i32
    %c0_i32_1 = arith.constant 0 : i32
    return %c0_i32, %c0_i32_0 : i32, i32
  }
  func.func @transform_4(%arg0: i32) -> (i32, i32) {
    %c0_i32 = arith.constant 0 : i32
    %c0_i32_0 = arith.constant 0 : i32
    %c0_i32_1 = arith.constant 0 : i32
    return %c0_i32, %c0_i32_0 : i32, i32
  }
  func.func @transform_5(%arg0: i32) -> (i32, i32) {
    %c0_i32 = arith.constant 0 : i32
    %c0_i32_0 = arith.constant 0 : i32
    %c0_i32_1 = arith.constant 0 : i32
    return %c0_i32, %c0_i32_0 : i32, i32
  }
  func.func @transform_6(%arg0: i32) -> (i32, i32) {
    %c0_i32 = arith.constant 0 : i32
    %c0_i32_0 = arith.constant 0 : i32
    %c0_i32_1 = arith.constant 0 : i32
    return %c0_i32, %c0_i32_0 : i32, i32
  }
  func.func @transform_7(%arg0: i32) -> (i32, i32) {
    %c0_i32 = arith.constant 0 : i32
    %c0_i32_0 = arith.constant 0 : i32
    %c0_i32_1 = arith.constant 0 : i32
    return %c0_i32, %c0_i32_0 : i32, i32
  }
  func.func @transform_8(%arg0: i32) -> (i32, i32) {
    %c0_i32 = arith.constant 0 : i32
    %c0_i32_0 = arith.constant 0 : i32
    %c0_i32_1 = arith.constant 0 : i32
    return %c0_i32, %c0_i32_0 : i32, i32
  }
  func.func @transform_9(%arg0: i32) -> (i32, i32) {
    %c0_i32 = arith.constant 0 : i32
    %c0_i32_0 = arith.constant 0 : i32
    %c0_i32_1 = arith.constant 0 : i32
    return %c0_i32, %c0_i32_0 : i32, i32
  }
  func.func @transform_10(%arg0: i32) -> (i32, i32) {
    %c0_i32 = arith.constant 0 : i32
    %c0_i32_0 = arith.constant 0 : i32
    %c0_i32_1 = arith.constant 0 : i32
    return %c0_i32, %c0_i32_0 : i32, i32
  }
  func.func @transform_11(%arg0: i32) -> (i32, i32) {
    %c0_i32 = arith.constant 0 : i32
    %c0_i32_0 = arith.constant 0 : i32
    %c0_i32_1 = arith.constant 0 : i32
    return %c0_i32, %c0_i32_0 : i32, i32
  }
  func.func @transform_12(%arg0: i32) -> (i32, i32, i32) {
    %c0_i32 = arith.constant 0 : i32
    %c0_i32_0 = arith.constant 0 : i32
    %c0_i32_1 = arith.constant 0 : i32
    return %arg0, %c0_i32, %c0_i32_0 : i32, i32, i32
  }
}

</mosaic_0001>

<bundles_post_ra>
// kernel: gru_model_forward.1
= control target key start
LH: loop header
LB: loop body
LE: loop exit
PB: predicated region body
PF: predicated region fallthrough
CT: control target
= control target key end

     0   :  { %17 = vsyncpa [#allocation6], 0  ;;  %s5077_s0 = inlined_call_operand.vmem [shape: f32[1,64,128], index: 0, kind: input, shape index: {}]   ;;  %s5078_s1 = inlined_call_operand.vmem [shape: f32[1,16,128], index: 1, kind: input, shape index: {}]   ;;  %s5079_s2 = inlined_call_operand.hbm [shape: f32[128,384], index: 2, kind: input, shape index: {}]   ;;  %s5080_s3 = inlined_call_operand.hbm [shape: f32[128,384], index: 3, kind: input, shape index: {}]   ;;  %s5081_s4 = inlined_call_operand.vmem [shape: f32[1,384], index: 4, kind: input, shape index: {}]   ;;  %s5082_s5 = inlined_call_operand.vmem [shape: f32[1,128], index: 5, kind: input, shape index: {}]   ;;  %s5083_s6 = inlined_call_operand.hbm [shape: f32[128,384], index: 6, kind: input, shape index: {}]   ;;  %s5084_s7 = inlined_call_operand.hbm [shape: f32[128,384], index: 7, kind: input, shape index: {}]   ;;  %s5085_s8 = inlined_call_operand.vmem [shape: f32[1,384], index: 8, kind: input, shape index: {}]   ;;  %s5086_s9 = inlined_call_operand.vmem [shape: f32[1,128], index: 9, kind: input, shape index: {}]   ;;  %s5087_s10 = inlined_call_operand.hbm [shape: f32[128,128], index: 10, kind: input, shape index: {}]   ;;  %s5088_s11 = inlined_call_operand.vmem [shape: f32[1,128], index: 11, kind: input, shape index: {}]   ;;  %s5089_s12 = inlined_call_operand.vmem [shape: f32[1,8,128], index: 12, kind: output, shape index: {}]  }
   0x1   :  { %18 = vsyncpa [#allocation8], 0 }
   0x2   :  { %19 = vsyncpa [#allocation11], 0  ;;  %s41_s23 = sshll.u32 %s5080_s3, 4  ;;  %s3502_s24 = smov [#allocation7]   ;;  %s42_s23 = int_to_ptr.hbm [resolvable:$true] %s41_s23 }
   0x3   :  { %s43_s25 = sshll.u32 %s3502_s24, 4  ;;  %s71_s28 = sshll.u32 %s5084_s7, 4  ;;  %s44_s25 = int_to_ptr.vmem [resolvable:$true] %s43_s25  ;;  %s72_s28 = int_to_ptr.hbm [resolvable:$true] %s71_s28 }
   0x4   :  { %s3503_s29 = smov 384   ;;  %s3504_s30 = smov 24  }
   0x5   :  { %49 = dma.hbm_to_vmem [thread:$0]  %s42_s23, 6144, %s44_s25, [#allocation8], %s3503_s29, %s3503_s29, %s3504_s30  }
   0x6   :  { %s3505_s13 = smov [#allocation10]   ;;  %s28_s17 = sshll.u32 %s5079_s2, 4  ;;  %s29_s17 = int_to_ptr.hbm [resolvable:$true] %s28_s17 }
   0x7   :  { %s73_s14 = sshll.u32 %s3505_s13, 4  ;;  %s58_s19 = sshll.u32 %s5083_s6, 4  ;;  %s74_s14 = int_to_ptr.vmem [resolvable:$true] %s73_s14  ;;  %s59_s19 = int_to_ptr.hbm [resolvable:$true] %s58_s19 }
   0x8   :  { %79 = dma.hbm_to_vmem [thread:$0]  %s72_s28, 6144, %s74_s14, [#allocation11], %s3503_s29, %s3503_s29, %s3504_s30  }
   0x9   :  { %s3506_s20 = smov [#allocation5]   ;;  %s3507_s7 = smov [#allocation9]  }
   0xa   :  { %s30_s21 = sshll.u32 %s3506_s20, 4  ;;  %s60_s22 = sshll.u32 %s3507_s7, 4  ;;  %s31_s21 = int_to_ptr.vmem [resolvable:$true] %s30_s21  ;;  %s61_s22 = int_to_ptr.vmem [resolvable:$true] %s60_s22 }
   0xb   :  { %36 = dma.hbm_to_vmem [thread:$0]  %s29_s17, 6144, %s31_s21, [#allocation6], %s3503_s29, %s3503_s29, %s3504_s30  }
   0xc   :  { %s88_s25 = sshll.u32 %s5087_s10, 4  ;;  %s3508_s2 = smov [#allocation12]   ;;  %s89_s25 = int_to_ptr.hbm [resolvable:$true] %s88_s25 }
   0xd   :  { %66 = dma.hbm_to_vmem [thread:$0]  %s59_s19, 6144, %s61_s22, [#allocation8], %s3503_s29, %s3503_s29, %s3504_s30  }
   0xe   :  { %s90_s26 = sshll.u32 %s3508_s2, 4  ;;  %s3509_s27 = smov 128   ;;  %s91_s26 = int_to_ptr.vmem [resolvable:$true] %s90_s26 }
   0xf   :  { %s3510_s28 = smov 8  }
  0x10   :  { %96 = dma.hbm_to_vmem [thread:$0]  %s89_s25, 2048, %s91_s26, [#allocation11], %s3509_s27, %s3509_s27, %s3510_s28  }
  0x11   :  { %3496 = dma.done.wait [#allocation6], 6144  }
  0x12   :  { %3497 = vsyncadd [#allocation6], 4294961152 }
  0x13   :  { %3498 = dma.done.wait [#allocation8], 12288  }
  0x14   :  { %3499 = vsyncadd [#allocation8], 4294955008 }
  0x15   :  { %3500 = dma.done.wait [#allocation11], 8192  }
  0x16   :  { %3501 = vsyncadd [#allocation11], 4294959104  ;;  %v178_v0 = vld [vmem:[#allocation5 + $0x168] sm:$0xff]  ;;  %v175_v2 = vld [vmem:[#allocation5 + $0x150] sm:$0xff] }
  0x17   :  { %v3591_v1 = vld [vmem:[#allocation7 + $0x168] sm:$0xff]  ;;  %189 = vmatpush.msra.mxu0 %v178_v0  ;;  %v3594_v3 = vld [vmem:[#allocation7 + $0x150] sm:$0xff]  ;;  %v172_v4 = vld [vmem:[#allocation5 + $0x138] sm:$0xff] }
  0x18   :  { %388 = vmatpush.msra.mxu3 %v3591_v1  ;;  %v3596_v5 = vld [vmem:[#allocation7 + $0x138] sm:$0xff]  ;;  %v169_v6 = vld [vmem:[#allocation5 + $0x120] sm:$0xff]  ;;  %v166_v8 = vld [vmem:[#allocation5 + $0x108] sm:$0xff] }
  0x19   :  { %190 = vmatpush.msra.mxu0 %v175_v2  ;;  %v3599_v7 = vld [vmem:[#allocation7 + $0x120] sm:$0xff]  ;;  %v3602_v9 = vld [vmem:[#allocation7 + $0x108] sm:$0xff]  ;;  %v163_v10 = vld [vmem:[#allocation5 + $0xf0] sm:$0xff] }
  0x1a   :  { %389 = vmatpush.msra.mxu3 %v3594_v3  ;;  %v3605_v11 = vld [vmem:[#allocation7 + $0xf0] sm:$0xff]  ;;  %v160_v12 = vld [vmem:[#allocation5 + $0xd8] sm:$0xff]  ;;  %v157_v14 = vld [vmem:[#allocation5 + $0xc0] sm:$0xff] }
  0x1b   :  { %191 = vmatpush.msra.mxu0 %v172_v4  ;;  %v3608_v13 = vld [vmem:[#allocation7 + $0xd8] sm:$0xff]  ;;  %v3611_v15 = vld [vmem:[#allocation7 + $0xc0] sm:$0xff]  ;;  %v179_v16 = vld [vmem:[#allocation5 + $0x170] sm:$0xff] }
  0x1c   :  { %390 = vmatpush.msra.mxu3 %v3596_v5  ;;  %v176_v17 = vld [vmem:[#allocation5 + $0x158] sm:$0xff]  ;;  %v154_v18 = vld [vmem:[#allocation5 + $0xa8] sm:$0xff]  ;;  %230 = vmatpush.msra.mxu1 %v179_v16  ;;  %v173_v20 = vld [vmem:[#allocation5 + $0x140] sm:$0xff] }
  0x1d   :  { %192 = vmatpush.msra.mxu0 %v169_v6  ;;  %v3614_v19 = vld [vmem:[#allocation7 + $0xa8] sm:$0xff]  ;;  %v151_v21 = vld [vmem:[#allocation5 + $0x90] sm:$0xff]  ;;  %v148_v24 = vld [vmem:[#allocation5 + $0x78] sm:$0xff] }
  0x1e   :  { %391 = vmatpush.msra.mxu3 %v3599_v7  ;;  %v3617_v22 = vld [vmem:[#allocation7 + $0x90] sm:$0xff]  ;;  %231 = vmatpush.msra.mxu1 %v176_v17  ;;  %v170_v23 = vld [vmem:[#allocation5 + $0x128] sm:$0xff]  ;;  %v3620_v25 = vld [vmem:[#allocation7 + $0x78] sm:$0xff] }
  0x1f   :  { %193 = vmatpush.msra.mxu0 %v166_v8  ;;  %v145_v26 = vld [vmem:[#allocation5 + $0x60] sm:$0xff]  ;;  %v167_v27 = vld [vmem:[#allocation5 + $0x110] sm:$0xff]  ;;  %v164_v29 = vld [vmem:[#allocation5 + $0xf8] sm:$0xff] }
  0x20   :  { %392 = vmatpush.msra.mxu3 %v3602_v9  ;;  %232 = vmatpush.msra.mxu1 %v173_v20  ;;  %v3623_v28 = vld [vmem:[#allocation7 + $0x60] sm:$0xff]  ;;  %v142_v30 = vld [vmem:[#allocation5 + $0x48] sm:$0xff]  ;;  %v139_v33 = vld [vmem:[#allocation5 + $0x30] sm:$0xff] }
  0x21   :  { %194 = vmatpush.msra.mxu0 %v163_v10  ;;  %v3626_v31 = vld [vmem:[#allocation7 + $0x48] sm:$0xff]  ;;  %v161_v32 = vld [vmem:[#allocation5 + $0xe0] sm:$0xff]  ;;  %v3629_v34 = vld [vmem:[#allocation7 + $0x30] sm:$0xff] }
  0x22   :  { %393 = vmatpush.msra.mxu3 %v3605_v11  ;;  %233 = vmatpush.msra.mxu1 %v170_v23  ;;  %v158_v35 = vld [vmem:[#allocation5 + $0xc8] sm:$0xff]  ;;  %v136_v36 = vld [vmem:[#allocation5 + $0x18] sm:$0xff]  ;;  %v155_v38 = vld [vmem:[#allocation5 + $0xb0] sm:$0xff] }
  0x23   :  { %195 = vmatpush.msra.mxu0 %v160_v12  ;;  %v3632_v37 = vld [vmem:[#allocation7 + $0x18] sm:$0xff]  ;;  %v133_v39 = vld [vmem:[#allocation5] sm:$0xff]  ;;  %v3648_v44 = vld [vmem:[#allocation7 + $0x170] sm:$0xff] }
  0x24   :  { %394 = vmatpush.msra.mxu3 %v3608_v13  ;;  %234 = vmatpush.msra.mxu1 %v167_v27  ;;  %v3635_v40 = vld [vmem:[#allocation7] sm:$0xff]  ;;  %v180_v43 = vld [vmem:[#allocation5 + $0x178] sm:$0xff]  ;;  %v174_v51 = vld [vmem:[#allocation5 + $0x148] sm:$0xff] }
  0x25   :  { %196 = vmatpush.msra.mxu0 %v157_v14  ;;  %v3641_v41 = vld [vmem:[%s5077_s0] sm:$0xff]  ;;  %v3650_v45 = vld [vmem:[#allocation7 + $0x178] sm:$0xff]  ;;  %271 = vmatpush.msra.mxu2 %v180_v43  ;;  %v3663_v53 = vld [vmem:[#allocation7 + $0x148] sm:$0xff] }
  0x26   :  { %395 = vmatpush.msra.mxu3 %v3611_v15  ;;  %235 = vmatpush.msra.mxu1 %v164_v29  ;;  %v3646_v42 = vld [vmem:[%s5078_s1] sm:$0xff]  ;;  %v152_v46 = vld [vmem:[#allocation5 + $0x98] sm:$0xff]  ;;  %v146_v54 = vld [vmem:[#allocation5 + $0x68] sm:$0xff] }
  0x27   :  { %197 = vmatpush.msra.mxu0 %v154_v18  ;;  %v177_v47 = vld [vmem:[#allocation5 + $0x160] sm:$0xff]  ;;  %v3655_v48 = vld [vmem:[#allocation7 + $0x158] sm:$0xff]  ;;  %v171_v55 = vld [vmem:[#allocation5 + $0x130] sm:$0xff] }
  0x28   :  { %396 = vmatpush.msra.mxu3 %v3614_v19  ;;  %236 = vmatpush.msra.mxu1 %v161_v32  ;;  %v3657_v49 = vld [vmem:[#allocation7 + $0x160] sm:$0xff]  ;;  %v3667_v56 = vld [vmem:[#allocation7 + $0x128] sm:$0xff]  ;;  %v3669_v57 = vld [vmem:[#allocation7 + $0x130] sm:$0xff] }
  0x29   :  { %198 = vmatpush.msra.mxu0 %v151_v21  ;;  %v149_v50 = vld [vmem:[#allocation5 + $0x80] sm:$0xff]  ;;  %272 = vmatpush.msra.mxu2 %v177_v47  ;;  %v3675_v58 = vld [vmem:[%s5077_s0 + $0x8] sm:$0xff]  ;;  %v143_v59 = vld [vmem:[#allocation5 + $0x50] sm:$0xff] }
  0x2a   :  { %397 = vmatpush.msra.mxu3 %v3617_v22  ;;  %237 = vmatpush.msra.mxu1 %v158_v35  ;;  %v3661_v52 = vld [vmem:[#allocation7 + $0x140] sm:$0xff]  ;;  %v3678_v60 = vld [vmem:[#allocation7 + $0x110] sm:$0xff]  ;;  %v3680_v61 = vld [vmem:[#allocation7 + $0x118] sm:$0xff] }
  0x2b   :  { %199 = vmatpush.msra.mxu0 %v148_v24  ;;  %273 = vmatpush.msra.mxu2 %v174_v51  ;;  %v140_v62 = vld [vmem:[#allocation5 + $0x38] sm:$0xff]  ;;  %v3687_v2 = vld [vmem:[#allocation7 + $0x100] sm:$0xff]  ;;  %v3693_v10 = vld [vmem:[#allocation7 + $0xe8] sm:$0xff] }
  0x2c   :  { %398 = vmatpush.msra.mxu3 %v3620_v25  ;;  %238 = vmatpush.msra.mxu1 %v155_v38  ;;  %v168_v63 = vld [vmem:[#allocation5 + $0x118] sm:$0xff]  ;;  %v137_v4 = vld [vmem:[#allocation5 + $0x20] sm:$0xff]  ;;  %v134_v12 = vld [vmem:[#allocation5 + $0x8] sm:$0xff] }
  0x2d   :  { %200 = vmatpush.msra.mxu0 %v145_v26  ;;  %274 = vmatpush.msra.mxu2 %v171_v55  ;;  %v3685_v0 = vld [vmem:[#allocation7 + $0xf8] sm:$0xff]  ;;  %v165_v6 = vld [vmem:[#allocation5 + $0x100] sm:$0xff]  ;;  %v162_v14 = vld [vmem:[#allocation5 + $0xe8] sm:$0xff] }
  0x2e   :  { %399 = vmatpush.msra.mxu3 %v3623_v28  ;;  %239 = vmatpush.msra.mxu1 %v152_v46  ;;  %v3691_v8 = vld [vmem:[#allocation7 + $0xe0] sm:$0xff]  ;;  %v3697_v16 = vld [vmem:[#allocation7 + $0xc8] sm:$0xff]  ;;  %v3699_v17 = vld [vmem:[#allocation7 + $0xd0] sm:$0xff] }
  0x2f   :  { %201 = vmatpush.msra.mxu0 %v142_v30  ;;  %275 = vmatpush.msra.mxu2 %v168_v63  ;;  %v3705_v18 = vld [vmem:[%s5077_s0 + $0x10] sm:$0xff]  ;;  %v3710_v21 = vld [vmem:[#allocation7 + $0xb8] sm:$0xff]  ;;  %v3718_v26 = vld [vmem:[#allocation7 + $0xa0] sm:$0xff] }
  0x30   :  { %400 = vmatpush.msra.mxu3 %v3626_v31  ;;  %240 = vmatpush.msra.mxu1 %v149_v50  ;;  %v3708_v20 = vld [vmem:[#allocation7 + $0xb0] sm:$0xff]  ;;  %v3715_v24 = vld [vmem:[#allocation7 + $0x98] sm:$0xff]  ;;  %v3722_v29 = vld [vmem:[#allocation7 + $0x80] sm:$0xff] }
  0x31   :  { %202 = vmatpush.msra.mxu0 %v139_v33  ;;  %276 = vmatpush.msra.mxu2 %v165_v6  ;;  %v159_v23 = vld [vmem:[#allocation5 + $0xd0] sm:$0xff]  ;;  %v156_v27 = vld [vmem:[#allocation5 + $0xb8] sm:$0xff]  ;;  %v3724_v30 = vld [vmem:[#allocation7 + $0x88] sm:$0xff] }
  0x32   :  { %401 = vmatpush.msra.mxu3 %v3629_v34  ;;  %241 = vmatpush.msra.mxu1 %v146_v54  ;;  %v153_v32 = vld [vmem:[#allocation5 + $0xa0] sm:$0xff]  ;;  %v3729_v33 = vld [vmem:[#allocation7 + $0x68] sm:$0xff]  ;;  %v3731_v35 = vld [vmem:[#allocation7 + $0x70] sm:$0xff] }
  0x33   :  { %203 = vmatpush.msra.mxu0 %v136_v36  ;;  %277 = vmatpush.msra.mxu2 %v162_v14  ;;  %v3738_v36 = vld [vmem:[%s5077_s0 + $0x18] sm:$0xff]  ;;  %v150_v38 = vld [vmem:[#allocation5 + $0x88] sm:$0xff]  ;;  %v147_v46 = vld [vmem:[#allocation5 + $0x70] sm:$0xff] }
  0x34   :  { %402 = vmatpush.msra.mxu3 %v3632_v37  ;;  %242 = vmatpush.msra.mxu1 %v143_v59  ;;  %v3743_v43 = vld [vmem:[#allocation7 + $0x58] sm:$0xff]  ;;  %v3751_v50 = vld [vmem:[#allocation7 + $0x40] sm:$0xff]  ;;  %v3757_v55 = vld [vmem:[#allocation7 + $0x28] sm:$0xff] }
  0x35   :  { %204 = vmatpush.msra.mxu0 %v133_v39  ;;  %278 = vmatpush.msra.mxu2 %v159_v23  ;;  %v3741_v39 = vld [vmem:[#allocation7 + $0x50] sm:$0xff]  ;;  %v3749_v47 = vld [vmem:[#allocation7 + $0x38] sm:$0xff]  ;;  %v3755_v54 = vld [vmem:[#allocation7 + $0x20] sm:$0xff] }
  0x36   :  { %403 = vmatpush.msra.mxu3 %v3635_v40  ;;  %205 = vmatmul.f32.vlgmr.msra.gmra.mxu0 %v3641_v41  ;;  %v144_v51 = vld [vmem:[#allocation5 + $0x58] sm:$0xff]  ;;  %v141_v59 = vld [vmem:[#allocation5 + $0x40] sm:$0xff]  ;;  %v3764_v63 = vld [vmem:[#allocation7 + $0x10] sm:$0xff] }
  0x37   :  { %404 = vmatmul.f32.vlgmr.msra.gmra.mxu3 %v3646_v42  ;;  %428 = vmatpush.msrb.mxu0 %v3650_v45  ;;  %v138_v6 = vld [vmem:[#allocation5 + $0x28] sm:$0xff] }
  0x38   :  { %408 = vmatpush.msrb.mxu3 %v3648_v44  ;;  %243 = vmatpush.msra.mxu1 %v140_v62  ;;  %v3762_v62 = vld [vmem:[#allocation7 + $0x8] sm:$0xff] }
  0x39   :  { %429 = vmatpush.msrb.mxu0 %v3657_v49  ;;  %279 = vmatpush.msra.mxu2 %v156_v27  ;;  %v3788_v14 = vld [vmem:[%s5077_s0 + $0x28] sm:$0xff] }
  0x3a   :  { %409 = vmatpush.msrb.mxu3 %v3655_v48  ;;  %244 = vmatpush.msra.mxu1 %v137_v4  ;;  %v3771_v4 = vld [vmem:[%s5077_s0 + $0x20] sm:$0xff] }
  0x3b   :  { %430 = vmatpush.msrb.mxu0 %v3663_v53  ;;  %280 = vmatpush.msra.mxu2 %v153_v32  ;;  %v3935_v32 = vld [vmem:[%s5082_s5] ss:$0 sm:$0xff] }
  0x3c   :  { %410 = vmatpush.msrb.mxu3 %v3661_v52  ;;  %245 = vmatpush.msra.mxu1 %v134_v12  ;;  %v135_v12 = vld [vmem:[#allocation5 + $0x10] sm:$0xff] }
  0x3d   :  { %431 = vmatpush.msrb.mxu0 %v3669_v57  ;;  %246 = vmatmul.f32.vlgmr.msra.gmra.mxu1 %v3641_v41 }
  0x3e   :  { %411 = vmatpush.msrb.mxu3 %v3667_v56  ;;  %208 = vmatmul.f32.gmra.mxu0 %v3675_v58 }
  0x3f   :  { %432 = vmatpush.msrb.mxu0 %v3680_v61  ;;  %549 = vmatpush.msrb.mxu1 %v3591_v1 }
  0x40   :  { %412 = vmatpush.msrb.mxu3 %v3678_v60  ;;  %281 = vmatpush.msra.mxu2 %v150_v38 }
  0x41   :  { %433 = vmatpush.msrb.mxu0 %v3687_v2  ;;  %550 = vmatpush.msrb.mxu1 %v3594_v3 }
  0x42   :  { %413 = vmatpush.msrb.mxu3 %v3685_v0  ;;  %282 = vmatpush.msra.mxu2 %v147_v46 }
  0x43   :  { %434 = vmatpush.msrb.mxu0 %v3693_v10  ;;  %551 = vmatpush.msrb.mxu1 %v3596_v5 }
  0x44   :  { %414 = vmatpush.msrb.mxu3 %v3691_v8  ;;  %283 = vmatpush.msra.mxu2 %v144_v51 }
  0x45   :  { %435 = vmatpush.msrb.mxu0 %v3699_v17  ;;  %249 = vmatmul.f32.gmra.mxu1 %v3675_v58 }
  0x46   :  { %415 = vmatpush.msrb.mxu3 %v3697_v16  ;;  %211 = vmatmul.f32.gmra.mxu0 %v3705_v18 }
  0x47   :  { %436 = vmatpush.msrb.mxu0 %v3710_v21  ;;  %552 = vmatpush.msrb.mxu1 %v3599_v7 }
  0x48   :  { %416 = vmatpush.msrb.mxu3 %v3708_v20  ;;  %284 = vmatpush.msra.mxu2 %v141_v59 }
  0x49   :  { %437 = vmatpush.msrb.mxu0 %v3718_v26  ;;  %553 = vmatpush.msrb.mxu1 %v3602_v9 }
  0x4a   :  { %417 = vmatpush.msrb.mxu3 %v3715_v24  ;;  %285 = vmatpush.msra.mxu2 %v138_v6 }
  0x4b   :  { %438 = vmatpush.msrb.mxu0 %v3724_v30  ;;  %554 = vmatpush.msrb.mxu1 %v3605_v11 }
  0x4c   :  { %418 = vmatpush.msrb.mxu3 %v3722_v29  ;;  %286 = vmatpush.msra.mxu2 %v135_v12 }
  0x4d   :  { %439 = vmatpush.msrb.mxu0 %v3731_v35  ;;  %252 = vmatmul.f32.gmra.mxu1 %v3705_v18 }
  0x4e   :  { %419 = vmatpush.msrb.mxu3 %v3729_v33  ;;  %214 = vmatmul.f32.gmra.mxu0 %v3738_v36 }
  0x4f   :  { %440 = vmatpush.msrb.mxu0 %v3743_v43  ;;  %555 = vmatpush.msrb.mxu1 %v3608_v13 }
  0x50   :  { %420 = vmatpush.msrb.mxu3 %v3741_v39  ;;  %287 = vmatmul.f32.vlgmr.msra.gmra.mxu2 %v3641_v41 }
  0x51   :  { %441 = vmatpush.msrb.mxu0 %v3751_v50  ;;  %569 = vmatpush.msrb.mxu2 %v3648_v44 }
  0x52   :  { %421 = vmatpush.msrb.mxu3 %v3749_v47  ;;  %556 = vmatpush.msrb.mxu1 %v3611_v15 }
  0x53   :  { %442 = vmatpush.msrb.mxu0 %v3757_v55  ;;  %570 = vmatpush.msrb.mxu2 %v3655_v48 }
  0x54   :  { %422 = vmatpush.msrb.mxu3 %v3755_v54  ;;  %557 = vmatpush.msrb.mxu1 %v3614_v19 }
  0x55   :  { %443 = vmatpush.msrb.mxu0 %v3764_v63  ;;  %571 = vmatpush.msrb.mxu2 %v3661_v52 }
  0x56   :  { %423 = vmatpush.msrb.mxu3 %v3762_v62  ;;  %217 = vmatmul.f32.gmra.mxu0 %v3771_v4 }
  0x57   :  { %424 = vmatmul.f32.vlgmr.msrb.gmra.mxu3 %v3646_v42  ;;  %710 = vmatpush.msra.mxu0 %v3591_v1  ;;  %v3809_v1 = vld [vmem:[%s5077_s0 + $0x30] sm:$0xff] }
  0x58   :  { %589 = vmatpush.msra.mxu3 %v3650_v45  ;;  %558 = vmatpush.msrb.mxu1 %v3617_v22 }
  0x59   :  { %255 = vmatmul.f32.gmra.mxu1 %v3738_v36  ;;  %572 = vmatpush.msrb.mxu2 %v3667_v56 }
  0x5a   :  { %590 = vmatpush.msra.mxu3 %v3657_v49  ;;  %559 = vmatpush.msrb.mxu1 %v3620_v25 }
  0x5b   :  { %290 = vmatmul.f32.gmra.mxu2 %v3675_v58  ;;  %711 = vmatpush.msra.mxu0 %v3594_v3  ;;  %v3830_v3 = vld [vmem:[%s5077_s0 + $0x38] sm:$0xff] }
  0x5c   :  { %591 = vmatpush.msra.mxu3 %v3663_v53  ;;  %573 = vmatpush.msrb.mxu2 %v3678_v60 }
  0x5d   :  { %560 = vmatpush.msrb.mxu1 %v3623_v28  ;;  %712 = vmatpush.msra.mxu0 %v3596_v5 }
  0x5e   :  { %220 = vmatmul.f32.gmra.mxu0 %v3788_v14  ;;  %592 = vmatpush.msra.mxu3 %v3669_v57 }
  0x5f   :  { %574 = vmatpush.msrb.mxu2 %v3685_v0  ;;  %561 = vmatpush.msrb.mxu1 %v3626_v31 }
  0x60   :  { %593 = vmatpush.msra.mxu3 %v3680_v61  ;;  %713 = vmatpush.msra.mxu0 %v3599_v7  ;;  %v181_v7 = vld [vmem:[%s5081_s4] sm:$0x7] }
  0x61   :  { %575 = vmatpush.msrb.mxu2 %v3691_v8  ;;  %562 = vmatpush.msrb.mxu1 %v3629_v34 }
  0x62   :  { %594 = vmatpush.msra.mxu3 %v3687_v2  ;;  %258 = vmatmul.f32.gmra.mxu1 %v3771_v4 }
  0x63   :  { %576 = vmatpush.msrb.mxu2 %v3697_v16  ;;  %563 = vmatpush.msrb.mxu1 %v3632_v37 }
  0x64   :  { %595 = vmatpush.msra.mxu3 %v3693_v10  ;;  %293 = vmatmul.f32.gmra.mxu2 %v3705_v18 }
  0x65   :  { %577 = vmatpush.msrb.mxu2 %v3708_v20  ;;  %564 = vmatpush.msrb.mxu1 %v3635_v40 }
  0x66   :  { %223 = vmatmul.f32.gmra.mxu0 %v3809_v1  ;;  %596 = vmatpush.msra.mxu3 %v3699_v17 }
  0x67   :  { %730 = vmatpush.msra.mxu1 %v3648_v44  ;;  %578 = vmatpush.msrb.mxu2 %v3715_v24 }
  0x68   :  { %597 = vmatpush.msra.mxu3 %v3710_v21  ;;  %714 = vmatpush.msra.mxu0 %v3602_v9 }
  0x69   :  { %579 = vmatpush.msrb.mxu2 %v3722_v29  ;;  %731 = vmatpush.msra.mxu1 %v3655_v48 }
  0x6a   :  { %598 = vmatpush.msra.mxu3 %v3718_v26  ;;  %261 = vmatmul.f32.gmra.mxu1 %v3788_v14 }
  0x6b   :  { %580 = vmatpush.msrb.mxu2 %v3729_v33  ;;  %732 = vmatpush.msra.mxu1 %v3661_v52 }
  0x6c   :  { %599 = vmatpush.msra.mxu3 %v3724_v30  ;;  %296 = vmatmul.f32.gmra.mxu2 %v3738_v36  ;;  %v3937_v36 = vperm.slane %v181_v7, 2 }
  0x6d   :  { %581 = vmatpush.msrb.mxu2 %v3741_v39  ;;  %733 = vmatpush.msra.mxu1 %v3667_v56 }
  0x6e   :  { %226 = vmatmul.f32.gmra.mxu0 %v3830_v3  ;;  %600 = vmatpush.msra.mxu3 %v3731_v35 }
  0x6f   :  { %582 = vmatpush.msrb.mxu2 %v3749_v47  ;;  %734 = vmatpush.msra.mxu1 %v3678_v60 }
  0x70   :  { %601 = vmatpush.msra.mxu3 %v3743_v43  ;;  %715 = vmatpush.msra.mxu0 %v3605_v11  ;;  %v3908_v11 = vperm.slane %v181_v7, 0 }
  0x71   :  { %583 = vmatpush.msrb.mxu2 %v3755_v54  ;;  %735 = vmatpush.msra.mxu1 %v3685_v0 }
  0x72   :  { %602 = vmatpush.msra.mxu3 %v3751_v50  ;;  %264 = vmatmul.f32.gmra.mxu1 %v3809_v1 }
  0x73   :  { %584 = vmatpush.msrb.mxu2 %v3762_v62  ;;  %716 = vmatpush.msra.mxu0 %v3608_v13 }
  0x74   :  { %603 = vmatpush.msra.mxu3 %v3757_v55  ;;  %299 = vmatmul.f32.gmra.mxu2 %v3771_v4 }
  0x75   :  { %750 = vmatpush.msra.mxu2 %v3650_v45  ;;  %736 = vmatpush.msra.mxu1 %v3691_v8 }
  0x76   :  { %444 = vmatmul.f32.vlgmr.msrb.gmra.mxu0 %v3646_v42  ;;  %604 = vmatpush.msra.mxu3 %v3764_v63 }
  0x77   :  { %717 = vmatpush.msra.mxu0 %v3611_v15  ;;  %751 = vmatpush.msra.mxu2 %v3657_v49 }
  0x78   :  { %737 = vmatpush.msra.mxu1 %v3697_v16 }
  0x79   :  { %718 = vmatpush.msra.mxu0 %v3614_v19  ;;  %752 = vmatpush.msra.mxu2 %v3663_v53 }
  0x7a   :  { %738 = vmatpush.msra.mxu1 %v3708_v20 }
  0x7b   :  { %267 = vmatmul.f32.gmra.mxu1 %v3830_v3  ;;  %719 = vmatpush.msra.mxu0 %v3617_v22 }
  0x7c   :  { %753 = vmatpush.msra.mxu2 %v3669_v57  ;;  %739 = vmatpush.msra.mxu1 %v3715_v24 }
  0x7d   :  { %302 = vmatmul.f32.gmra.mxu2 %v3788_v14  ;;  %720 = vmatpush.msra.mxu0 %v3620_v25 }
  0x7e   :  { %754 = vmatpush.msra.mxu2 %v3680_v61  ;;  %740 = vmatpush.msra.mxu1 %v3722_v29 }
  0x7f   :  { %721 = vmatpush.msra.mxu0 %v3623_v28 }
  0x80   :  { %755 = vmatpush.msra.mxu2 %v3687_v2  ;;  %741 = vmatpush.msra.mxu1 %v3729_v33 }
  0x81   :  { %722 = vmatpush.msra.mxu0 %v3626_v31 }
  0x82   :  { %756 = vmatpush.msra.mxu2 %v3693_v10  ;;  %742 = vmatpush.msra.mxu1 %v3741_v39 }
  0x83   :  { %723 = vmatpush.msra.mxu0 %v3629_v34  ;;  %v3915_v34 = vperm.slane %v181_v7, 1 }
  0x84   :  { %757 = vmatpush.msra.mxu2 %v3699_v17  ;;  %743 = vmatpush.msra.mxu1 %v3749_v47 }
  0x85   :  { %305 = vmatmul.f32.gmra.mxu2 %v3809_v1  ;;  %724 = vmatpush.msra.mxu0 %v3632_v37 }
  0x86   :  { %758 = vmatpush.msra.mxu2 %v3710_v21  ;;  %744 = vmatpush.msra.mxu1 %v3755_v54 }
  0x87   :  { %725 = vmatpush.msra.mxu0 %v3635_v40 }
  0x88   :  { %759 = vmatpush.msra.mxu2 %v3718_v26  ;;  %745 = vmatpush.msra.mxu1 %v3762_v62 }
  0x8a   :  { %760 = vmatpush.msra.mxu2 %v3724_v30 }
  0x8c   :  { %761 = vmatpush.msra.mxu2 %v3731_v35 }
  0x8d   :  { %308 = vmatmul.f32.gmra.mxu2 %v3830_v3 }
  0x8e   :  { %762 = vmatpush.msra.mxu2 %v3743_v43 }
  0x90   :  { %763 = vmatpush.msra.mxu2 %v3751_v50 }
  0x92   :  { %764 = vmatpush.msra.mxu2 %v3757_v55 }
  0x94   :  { %765 = vmatpush.msra.mxu2 %v3764_v63 }
  0xb3   :  { %v206_v5 = vpop.f32.mrf.mxu0 }
  0xb4   :  { %v207_v15 = vadd.f32 %v206_v5, %v3908_v11 }
  0xba   :  { %v405_v13 = vpop.f32.mrf.mxu3  ;;  %v247_v40 = vpop.f32.mrf.mxu1 }
  0xbb   :  { %v3906_v9 = vpop.f32.mrf.mxu0  ;;  %v448_v22 = vadd.f32 %v405_v13, %v207_v15  ;;  %v248_v45 = vadd.f32 %v247_v40, %v3915_v34 }
  0xbd   :  { %v3170_v25 = vmul.f32 -1.442695, %v448_v22 }
  0xbf   :  { %3214 = vpow2.f32 %v3170_v25 }
  0xc3   :  { %v3911_v19 = vpop.f32.mrf.mxu0 }
  0xc5   :  { %v3215_v31 = vpop.eup %3214 }
  0xc6   :  { %v456_v44 = vadd.f32 1.0, %v3215_v31 }
  0xc8   :  { %3216 = vrcp.f32 %v456_v44  ;;  %v469_v29 = vand.u32 2147483648, %v456_v44  ;;  %vm463_vm1 = vweird.f32 %v456_v44  ;;  %v467_v33 = vand.u32 2147483647, %v456_v44 }
  0xca   :  { %v470_v51 = vor.u32 1.1754944e-38, %v469_v29  ;;  %vm468_vm3 = vcmp.eq.f32.partialorder %v467_v33, 8.507059e+37 }
  0xcb   :  { %v3913_v28 = vpop.f32.mrf.mxu0 }
  0xce   :  { %v3217_v57 = vpop.eup %3216 }
  0xcf   :  { %v459_v60 = vmul.f32 %v3217_v57, %v456_v44  ;;  %vm464_vm0 = vweird.f32 %v3217_v57 }
  0xd0   :  { %vm465_vm2 = vmor %vm463_vm1, %vm464_vm0 }
  0xd1   :  { %v460_v10 = vsub.f32 1.0, %v459_v60 }
  0xd3   :  { %v218_v37 = vpop.f32.mrf.mxu0  ;;  %v288_v58 = vpop.f32.mrf.mxu2  ;;  %v461_v17 = vmul.f32 %v3217_v57, %v460_v10 }
  0xd4   :  { %v3918_v41 = vadd.f32 %v218_v37, %v3908_v11  ;;  %v289_v59 = vadd.f32 %v288_v58, %v3937_v36 }
  0xd5   :  { %v462_v24 = vadd.f32 %v3217_v57, %v461_v17  ;;  %v210_v17 = vadd.f32 %v3906_v9, %v3908_v11 }
  0xd6   :  { %5092 = vst [vmem:[#allocation16_spill] sm:$0xff] %v3918_v41 }
  0xd7   :  { %v466_v39 = vsel %vm465_vm2, %v3217_v57, %v462_v24 }
  0xd8   :  { %v471_v62 = vsel %vm468_vm3, %v470_v51, %v466_v39 }
  0xda   :  { %v425_v48 = vpop.f32.mrf.mxu3 }
  0xdb   :  { %v449_v49 = vadd.f32 %v425_v48, %v248_v45  ;;  %v221_v52 = vpop.f32.mrf.mxu0 }
  0xdc   :  { %v3922_v56 = vadd.f32 %v221_v52, %v3908_v11 }
  0xdd   :  { %v3171_v53 = vmul.f32 -1.442695, %v449_v49 }
  0xde   :  { %5093 = vst [vmem:[#allocation17_spill] sm:$0xff] %v3922_v56  ;;  %v3927_v16 = vpop.f32.mrf.mxu2 }
  0xdf   :  { %3218 = vpow2.f32 %v3171_v53  ;;  %v250_v53 = vpop.f32.mrf.mxu1 }
  0xe3   :  { %v224_v61 = vpop.f32.mrf.mxu0 }
  0xe4   :  { %v3925_v2 = vadd.f32 %v224_v61, %v3908_v11 }
  0xe5   :  { %v3219_v0 = vpop.eup %3218 }
  0xe6   :  { %5094 = vst [vmem:[#allocation18_spill] sm:$0xff] %v3925_v2  ;;  %v457_v8 = vadd.f32 1.0, %v3219_v0 }
  0xe7   :  { %v3939_v38 = vpop.f32.mrf.mxu2  ;;  %v3961_v57 = vpop.f32.mrf.mxu1 }
  0xe8   :  { %3220 = vrcp.f32 %v457_v8  ;;  %vm478_vm4 = vweird.f32 %v457_v8  ;;  %v484_v3 = vand.u32 2147483648, %v457_v8  ;;  %v482_v7 = vand.u32 2147483647, %v457_v8 }
  0xea   :  { %v485_v13 = vor.u32 1.1754944e-38, %v484_v3  ;;  %vm483_vm7 = vcmp.eq.f32.partialorder %v482_v7, 8.507059e+37 }
  0xeb   :  { %v227_v18 = vpop.f32.mrf.mxu0 }
  0xec   :  { %v3930_v20 = vadd.f32 %v227_v18, %v3908_v11 }
  0xee   :  { %5095 = vst [vmem:[#allocation19_spill] sm:$0xff] %v3930_v20  ;;  %v3221_v23 = vpop.eup %3220 }
  0xef   :  { %v474_v27 = vmul.f32 %v3221_v23, %v457_v8  ;;  %v297_v14 = vpop.f32.mrf.mxu2  ;;  %vm479_vm5 = vweird.f32 %v3221_v23  ;;  %v3963_v58 = vpop.f32.mrf.mxu1 }
  0xf0   :  { %v3944_v1 = vadd.f32 %v297_v14, %v3937_v36  ;;  %vm480_vm6 = vmor %vm478_vm4, %vm479_vm5 }
  0xf1   :  { %v475_v46 = vsub.f32 1.0, %v474_v27  ;;  %v251_v27 = vadd.f32 %v250_v53, %v3915_v34 }
  0xf3   :  { %v445_v47 = vpop.f32.mrf.mxu0  ;;  %v476_v6 = vmul.f32 %v3221_v23, %v475_v46 }
  0xf4   :  { %v488_v54 = vadd.f32 %v3935_v32, %v445_v47 }
  0xf5   :  { %v477_v5 = vadd.f32 %v3221_v23, %v476_v6 }
  0xf6   :  { %v489_v4 = vmul.f32 %v488_v54, %v471_v62 }
  0xf7   :  { %v481_v15 = vsel %vm480_vm6, %v3221_v23, %v477_v5  ;;  %v300_v25 = vpop.f32.mrf.mxu2  ;;  %v3965_v60 = vpop.f32.mrf.mxu1 }
  0xf8   :  { %v490_v12 = vadd.f32 %v489_v4, %v289_v59  ;;  %v3948_v37 = vadd.f32 %v300_v25, %v3937_v36  ;;  %v486_v40 = vsel %vm483_vm7, %v485_v13, %v481_v15 }
  0xfa   :  { %3222 = vtanh.f32 %v490_v12  ;;  %5096 = vst [vmem:[#allocation20_spill] sm:$0xff] %v3948_v37 }
  0xff   :  { %v3967_v61 = vpop.f32.mrf.mxu1 }
 0x100   :  { %v3223_v22 = vpop.eup %3222  ;;  %v303_v48 = vpop.f32.mrf.mxu2  ;;  %5100 = vst [vmem:[#allocation24_spill] sm:$0xff] %v3967_v61 }
 0x101   :  { %v492_v31 = vsub.f32 %v3646_v42, %v3223_v22  ;;  %v3956_v49 = vadd.f32 %v303_v48, %v3937_v36 }
 0x103   :  { %v493_v44 = vmul.f32 %v492_v31, %v486_v40  ;;  %5098 = vst [vmem:[#allocation22_spill] sm:$0xff] %v3956_v49  ;;  %v292_v40 = vadd.f32 %v3927_v16, %v3937_v36  ;;  %v3987_v16 = vld [vmem:[#allocation7 + $0x168] sm:$0xff] }
 0x104   :  { %871 = vmatpush.msrb.mxu3 %v3987_v16 }
 0x105   :  { %v3950_v45 = vadd.f32 %v3223_v22, %v493_v44 }
 0x107   :  { %5097 = vst [vmem:[#allocation21_spill] sm:$0xff] %v3950_v45  ;;  %565 = vmatmul.f32.vlgmr.msrb.gmra.mxu1 %v3950_v45  ;;  %585 = vmatmul.f32.vlgmr.msrb.gmra.mxu2 %v3950_v45  ;;  %v3969_v0 = vpop.f32.mrf.mxu1 }
 0x108   :  { %605 = vmatmul.f32.vlgmr.msra.gmra.mxu3 %v3950_v45  ;;  %v306_v52 = vpop.f32.mrf.mxu2  ;;  %5101 = vst [vmem:[#allocation25_spill] sm:$0xff] %v3969_v0  ;;  %1032 = vmatpush.msrb.mxu2 %v3987_v16 }
 0x109   :  { %v3959_v42 = vadd.f32 %v306_v52, %v3937_v36 }
 0x10b   :  { %5099 = vst [vmem:[#allocation23_spill] sm:$0xff] %v3959_v42  ;;  %v4122_v42 = vld [vmem:[#allocation7 + $0x20] sm:$0xff] }
 0x10f   :  { %v3971_v8 = vpop.f32.mrf.mxu1 }
 0x110   :  { %5102 = vst [vmem:[#allocation26_spill] sm:$0xff] %v3971_v8  ;;  %v3973_v10 = vpop.f32.mrf.mxu2  ;;  %v4120_v8 = vld [vmem:[#allocation7 + $0x18] sm:$0xff] }
 0x111   :  { %5103 = vst [vmem:[#allocation27_spill] sm:$0xff] %v3973_v10  ;;  %v4078_v10 = vld [vmem:[#allocation7 + $0x90] sm:$0xff] }
 0x184   :  { %v566_v18 = vpop.f32.mrf.mxu1 }
 0x185   :  { %v609_v23 = vadd.f32 %v566_v18, %v210_v17 }
 0x187   :  { %v3172_v24 = vmul.f32 -1.442695, %v609_v23 }
 0x189   :  { %3224 = vpow2.f32 %v3172_v24 }
 0x18a   :  { %v586_v29 = vpop.f32.mrf.mxu2 }
 0x18b   :  { %v610_v33 = vadd.f32 %v586_v29, %v251_v27  ;;  %v606_v3 = vpop.f32.mrf.mxu3 }
 0x18c   :  { %v649_v25 = vadd.f32 %v3935_v32, %v606_v3  ;;  %v4020_v3 = vld [vmem:[#allocation7 + $0x130] sm:$0xff] }
 0x18d   :  { %v3173_v39 = vmul.f32 -1.442695, %v610_v33 }
 0x18f   :  { %v3225_v46 = vpop.eup %3224  ;;  %3226 = vpow2.f32 %v3173_v39 }
 0x190   :  { %v617_v47 = vadd.f32 1.0, %v3225_v46 }
 0x192   :  { %3228 = vrcp.f32 %v617_v47  ;;  %v630_v9 = vand.u32 2147483648, %v617_v47  ;;  %v628_v12 = vand.u32 2147483647, %v617_v47  ;;  %vm624_vm9 = vweird.f32 %v617_v47 }
 0x194   :  { %v631_v13 = vor.u32 1.1754944e-38, %v630_v9  ;;  %vm629_vm11 = vcmp.eq.f32.partialorder %v628_v12, 8.507059e+37  ;;  %v4008_v9 = vld [vmem:[#allocation7 + $0x140] sm:$0xff] }
 0x195   :  { %v3227_v51 = vpop.eup %3226  ;;  %v4016_v12 = vld [vmem:[#allocation7 + $0x120] sm:$0xff] }
 0x196   :  { %v618_v54 = vadd.f32 1.0, %v3227_v51  ;;  %v3991_v51 = vld [vmem:[#allocation7 + $0x178] sm:$0xff] }
 0x197   :  { %911 = vmatpush.msrb.mxu1 %v3991_v51 }
 0x198   :  { %v3229_v59 = vpop.eup %3228  ;;  %3230 = vrcp.f32 %v618_v54  ;;  %v645_v17 = vand.u32 2147483648, %v618_v54  ;;  %vm639_vm13 = vweird.f32 %v618_v54  ;;  %v643_v18 = vand.u32 2147483647, %v618_v54 }
 0x199   :  { %v620_v62 = vmul.f32 %v3229_v59, %v617_v47  ;;  %vm625_vm8 = vweird.f32 %v3229_v59  ;;  %v3989_v47 = vld [vmem:[#allocation7 + $0x170] sm:$0xff] }
 0x19a   :  { %vm626_vm10 = vmor %vm624_vm9, %vm625_vm8  ;;  %v646_v27 = vor.u32 1.1754944e-38, %v645_v17  ;;  %vm644_vm15 = vcmp.eq.f32.partialorder %v643_v18, 8.507059e+37  ;;  %891 = vmatpush.msrb.mxu0 %v3989_v47  ;;  %v4062_v17 = vld [vmem:[#allocation7 + $0xc8] sm:$0xff]  ;;  %v4064_v18 = vld [vmem:[#allocation7 + $0xd0] sm:$0xff] }
 0x19b   :  { %v621_v4 = vsub.f32 1.0, %v620_v62  ;;  %v4000_v62 = vld [vmem:[#allocation7 + $0x160] sm:$0xff] }
 0x19c   :  { %912 = vmatpush.msrb.mxu1 %v4000_v62 }
 0x19d   :  { %v622_v6 = vmul.f32 %v3229_v59, %v621_v4  ;;  %v4006_v4 = vld [vmem:[#allocation7 + $0x138] sm:$0xff] }
 0x19e   :  { %v3231_v14 = vpop.eup %3230 }
 0x19f   :  { %v635_v5 = vmul.f32 %v3231_v14, %v618_v54  ;;  %v623_v7 = vadd.f32 %v3229_v59, %v622_v6  ;;  %vm640_vm12 = vweird.f32 %v3231_v14  ;;  %v3996_v54 = vld [vmem:[#allocation7 + $0x150] sm:$0xff]  ;;  %v4010_v6 = vld [vmem:[#allocation7 + $0x148] sm:$0xff] }
 0x1a0   :  { %vm641_vm14 = vmor %vm639_vm13, %vm640_vm12  ;;  %872 = vmatpush.msrb.mxu3 %v3996_v54  ;;  %1033 = vmatpush.msrb.mxu2 %v3996_v54 }
 0x1a1   :  { %v636_v15 = vsub.f32 1.0, %v635_v5  ;;  %v627_v22 = vsel %vm626_vm10, %v3229_v59, %v623_v7  ;;  %v3998_v59 = vld [vmem:[#allocation7 + $0x158] sm:$0xff]  ;;  %913 = vmatpush.msrb.mxu1 %v4010_v6  ;;  %v4026_v5 = vld [vmem:[#allocation7 + $0x108] sm:$0xff]  ;;  %v4028_v7 = vld [vmem:[#allocation7 + $0x110] sm:$0xff] }
 0x1a2   :  { %v632_v31 = vsel %vm629_vm11, %v631_v13, %v627_v22  ;;  %892 = vmatpush.msrb.mxu0 %v3998_v59  ;;  %873 = vmatpush.msrb.mxu3 %v4006_v4  ;;  %v4030_v13 = vld [vmem:[#allocation7 + $0x118] sm:$0xff] }
 0x1a3   :  { %v650_v44 = vmul.f32 %v649_v25, %v632_v31  ;;  %v637_v48 = vmul.f32 %v3231_v14, %v636_v15  ;;  %1034 = vmatpush.msrb.mxu2 %v4006_v4  ;;  %914 = vmatpush.msrb.mxu1 %v4020_v3  ;;  %v4036_v15 = vld [vmem:[#allocation7 + $0xf0] sm:$0xff]  ;;  %v4038_v22 = vld [vmem:[#allocation7 + $0xf8] sm:$0xff]  ;;  %v4040_v25 = vld [vmem:[#allocation7 + $0x100] sm:$0xff] }
 0x1a4   :  { %893 = vmatpush.msrb.mxu0 %v4008_v9  ;;  %874 = vmatpush.msrb.mxu3 %v4016_v12  ;;  %v4046_v31 = vld [vmem:[#allocation7 + $0xd8] sm:$0xff] }
 0x1a5   :  { %v651_v52 = vadd.f32 %v650_v44, %v292_v40  ;;  %v638_v53 = vadd.f32 %v3231_v14, %v637_v48  ;;  %1035 = vmatpush.msrb.mxu2 %v4016_v12  ;;  %915 = vmatpush.msrb.mxu1 %v4030_v13  ;;  %v4048_v40 = vld [vmem:[#allocation7 + $0xe0] sm:$0xff]  ;;  %v4050_v44 = vld [vmem:[#allocation7 + $0xe8] sm:$0xff]  ;;  %v213_v48 = vadd.f32 %v3911_v19, %v3908_v11 }
 0x1a6   :  { %875 = vmatpush.msrb.mxu3 %v4026_v5 }
 0x1a7   :  { %3232 = vtanh.f32 %v651_v52  ;;  %v642_v23 = vsel %vm641_vm14, %v3231_v14, %v638_v53  ;;  %v4018_v14 = vld [vmem:[#allocation7 + $0x128] sm:$0xff]  ;;  %1036 = vmatpush.msrb.mxu2 %v4026_v5  ;;  %916 = vmatpush.msrb.mxu1 %v4040_v25  ;;  %v254_v52 = vadd.f32 %v3961_v57, %v3915_v34  ;;  %v4060_v53 = vld [vmem:[#allocation7 + $0xc0] sm:$0xff] }
 0x1a8   :  { %v647_v33 = vsel %vm644_vm15, %v646_v27, %v642_v23  ;;  %894 = vmatpush.msrb.mxu0 %v4018_v14  ;;  %876 = vmatpush.msrb.mxu3 %v4036_v15  ;;  %v4070_v57 = vld [vmem:[#allocation7 + $0xa8] sm:$0xff] }
 0x1a9   :  { %1037 = vmatpush.msrb.mxu2 %v4036_v15  ;;  %917 = vmatpush.msrb.mxu1 %v4050_v44 }
 0x1aa   :  { %895 = vmatpush.msrb.mxu0 %v4028_v7  ;;  %877 = vmatpush.msrb.mxu3 %v4046_v31 }
 0x1ab   :  { %1038 = vmatpush.msrb.mxu2 %v4046_v31  ;;  %918 = vmatpush.msrb.mxu1 %v4064_v18 }
 0x1ac   :  { %896 = vmatpush.msrb.mxu0 %v4038_v22  ;;  %878 = vmatpush.msrb.mxu3 %v4060_v53 }
 0x1ad   :  { %v3233_v24 = vpop.eup %3232  ;;  %1039 = vmatpush.msrb.mxu2 %v4060_v53  ;;  %919 = vmatpush.msrb.mxu1 %v3710_v21  ;;  %v4094_v21 = vld [vmem:[#allocation7 + $0x60] sm:$0xff] }
 0x1ae   :  { %v653_v29 = vsub.f32 %v3950_v45, %v3233_v24  ;;  %897 = vmatpush.msrb.mxu0 %v4048_v40  ;;  %879 = vmatpush.msrb.mxu3 %v4070_v57 }
 0x1af   :  { %1040 = vmatpush.msrb.mxu2 %v4070_v57  ;;  %920 = vmatpush.msrb.mxu1 %v3718_v26  ;;  %v4102_v26 = vld [vmem:[#allocation7 + $0x48] sm:$0xff] }
 0x1b0   :  { %v654_v39 = vmul.f32 %v653_v29, %v647_v33  ;;  %898 = vmatpush.msrb.mxu0 %v4062_v17  ;;  %v4072_v29 = vld [vmem:[#allocation7 + $0xb0] sm:$0xff]  ;;  %880 = vmatpush.msrb.mxu3 %v4078_v10 }
 0x1b1   :  { %1041 = vmatpush.msrb.mxu2 %v4078_v10  ;;  %921 = vmatpush.msrb.mxu1 %v3724_v30 }
 0x1b2   :  { %v3982_v46 = vadd.f32 %v3233_v24, %v654_v39  ;;  %899 = vmatpush.msrb.mxu0 %v4072_v29 }
 0x1b3   :  { %922 = vmatpush.msrb.mxu1 %v3731_v35 }
 0x1b4   :  { %726 = vmatmul.f32.vlgmr.msra.gmra.mxu0 %v3982_v46  ;;  %746 = vmatmul.f32.vlgmr.msra.gmra.mxu1 %v3982_v46 }
 0x1b5   :  { %766 = vmatmul.f32.vlgmr.msra.gmra.mxu2 %v3982_v46  ;;  %923 = vmatpush.msrb.mxu1 %v3743_v43  ;;  %v4127_v43 = vld [vmem:[#allocation7] sm:$0xff] }
 0x1b7   :  { %924 = vmatpush.msrb.mxu1 %v3751_v50 }
 0x1b9   :  { %925 = vmatpush.msrb.mxu1 %v3757_v55 }
 0x1bb   :  { %926 = vmatpush.msrb.mxu1 %v3764_v63 }
 0x1bd   :  { %1193 = vmatpush.msra.mxu1 %v3987_v16 }
 0x1bf   :  { %1194 = vmatpush.msra.mxu1 %v3996_v54 }
 0x1c1   :  { %1195 = vmatpush.msra.mxu1 %v4006_v4 }
 0x1c3   :  { %1196 = vmatpush.msra.mxu1 %v4016_v12 }
 0x1c5   :  { %1197 = vmatpush.msra.mxu1 %v4026_v5 }
 0x1c7   :  { %1198 = vmatpush.msra.mxu1 %v4036_v15 }
 0x1c9   :  { %1199 = vmatpush.msra.mxu1 %v4046_v31 }
 0x1cb   :  { %1200 = vmatpush.msra.mxu1 %v4060_v53 }
 0x1cd   :  { %1201 = vmatpush.msra.mxu1 %v4070_v57 }
 0x1cf   :  { %1202 = vmatpush.msra.mxu1 %v4078_v10 }
 0x231   :  { %v727_v23 = vpop.f32.mrf.mxu0  ;;  %v747_v24 = vpop.f32.mrf.mxu1 }
 0x232   :  { %v770_v19 = vadd.f32 %v727_v23, %v213_v48  ;;  %v771_v27 = vadd.f32 %v747_v24, %v254_v52  ;;  %v4080_v48 = vld [vmem:[#allocation7 + $0x98] sm:$0xff]  ;;  %v4088_v23 = vld [vmem:[#allocation7 + $0x80] sm:$0xff]  ;;  %v4096_v24 = vld [vmem:[#allocation7 + $0x68] sm:$0xff] }
 0x233   :  { %900 = vmatpush.msrb.mxu0 %v4080_v48  ;;  %v4086_v52 = vld [vmem:[#allocation7 + $0x78] sm:$0xff] }
 0x234   :  { %v3174_v33 = vmul.f32 -1.442695, %v770_v19  ;;  %v3175_v39 = vmul.f32 -1.442695, %v771_v27  ;;  %881 = vmatpush.msrb.mxu3 %v4086_v52  ;;  %1042 = vmatpush.msrb.mxu2 %v4086_v52  ;;  %v4104_v19 = vld [vmem:[#allocation7 + $0x50] sm:$0xff] }
 0x235   :  { %901 = vmatpush.msrb.mxu0 %v4088_v23  ;;  %v4110_v27 = vld [vmem:[#allocation7 + $0x30] sm:$0xff]  ;;  %1203 = vmatpush.msra.mxu1 %v4086_v52 }
 0x236   :  { %3234 = vpow2.f32 %v3174_v33  ;;  %882 = vmatpush.msrb.mxu3 %v4094_v21  ;;  %1043 = vmatpush.msrb.mxu2 %v4094_v21  ;;  %v4112_v33 = vld [vmem:[#allocation7 + $0x38] sm:$0xff] }
 0x237   :  { %3236 = vpow2.f32 %v3175_v39  ;;  %902 = vmatpush.msrb.mxu0 %v4096_v24  ;;  %1204 = vmatpush.msra.mxu1 %v4094_v21 }
 0x238   :  { %883 = vmatpush.msrb.mxu3 %v4102_v26  ;;  %1044 = vmatpush.msrb.mxu2 %v4102_v26 }
 0x239   :  { %903 = vmatpush.msrb.mxu0 %v4104_v19  ;;  %1205 = vmatpush.msra.mxu1 %v4102_v26 }
 0x23a   :  { %884 = vmatpush.msrb.mxu3 %v4110_v27  ;;  %1045 = vmatpush.msrb.mxu2 %v4110_v27 }
 0x23b   :  { %904 = vmatpush.msrb.mxu0 %v4112_v33  ;;  %1206 = vmatpush.msra.mxu1 %v4110_v27 }
 0x23c   :  { %v3235_v30 = vpop.eup %3234  ;;  %885 = vmatpush.msrb.mxu3 %v4120_v8  ;;  %1046 = vmatpush.msrb.mxu2 %v4120_v8 }
 0x23d   :  { %v3237_v35 = vpop.eup %3236  ;;  %v778_v39 = vadd.f32 1.0, %v3235_v30  ;;  %905 = vmatpush.msrb.mxu0 %v4122_v42  ;;  %v4129_v30 = vld [vmem:[#allocation7 + $0x8] sm:$0xff]  ;;  %1207 = vmatpush.msra.mxu1 %v4120_v8 }
 0x23e   :  { %v4117_v20 = vadd.f32 1.0, %v3237_v35  ;;  %886 = vmatpush.msrb.mxu3 %v4127_v43  ;;  %1047 = vmatpush.msrb.mxu2 %v4127_v43 }
 0x23f   :  { %3238 = vrcp.f32 %v778_v39  ;;  %906 = vmatpush.msrb.mxu0 %v4129_v30  ;;  %v791_v0 = vand.u32 2147483648, %v778_v39  ;;  %v789_v49 = vand.u32 2147483647, %v778_v39  ;;  %vm785_vm1 = vweird.f32 %v778_v39  ;;  %1208 = vmatpush.msra.mxu1 %v4127_v43 }
 0x240   :  { %3240 = vrcp.f32 %v4117_v20  ;;  %1052 = vmatpush.msra.mxu3 %v3989_v47  ;;  %1213 = vmatpush.msra.mxu2 %v3989_v47  ;;  %vm800_vm5 = vweird.f32 %v4117_v20 }
 0x241   :  { %1072 = vmatpush.msra.mxu0 %v3991_v51  ;;  %vm790_vm3 = vcmp.eq.f32.partialorder %v789_v49, 8.507059e+37 }
 0x242   :  { %1053 = vmatpush.msra.mxu3 %v3998_v59  ;;  %1214 = vmatpush.msra.mxu2 %v3998_v59 }
 0x243   :  { %1073 = vmatpush.msra.mxu0 %v4000_v62 }
 0x244   :  { %1054 = vmatpush.msra.mxu3 %v4008_v9  ;;  %1215 = vmatpush.msra.mxu2 %v4008_v9 }
 0x245   :  { %v3239_v50 = vpop.eup %3238  ;;  %1074 = vmatpush.msra.mxu0 %v4010_v6 }
 0x246   :  { %v4144_v55 = vpop.eup %3240  ;;  %v781_v35 = vmul.f32 %v3239_v50, %v778_v39  ;;  %1055 = vmatpush.msra.mxu3 %v4018_v14  ;;  %vm786_vm0 = vweird.f32 %v3239_v50  ;;  %1216 = vmatpush.msra.mxu2 %v4018_v14 }
 0x247   :  { %v796_v2 = vmul.f32 %v4144_v55, %v4117_v20  ;;  %1075 = vmatpush.msra.mxu0 %v4020_v3  ;;  %vm787_vm2 = vmor %vm785_vm1, %vm786_vm0  ;;  %vm801_vm4 = vweird.f32 %v4144_v55 }
 0x248   :  { %v782_v63 = vsub.f32 1.0, %v781_v35  ;;  %1056 = vmatpush.msra.mxu3 %v4028_v7  ;;  %v767_v35 = vpop.f32.mrf.mxu2  ;;  %1217 = vmatpush.msra.mxu2 %v4028_v7  ;;  %vm802_vm6 = vmor %vm800_vm5, %vm801_vm4 }
 0x249   :  { %1076 = vmatpush.msra.mxu0 %v4030_v13  ;;  %v797_v56 = vsub.f32 1.0, %v796_v2  ;;  %v810_v41 = vadd.f32 %v3935_v32, %v767_v35  ;;  %v295_v2 = vadd.f32 %v3939_v38, %v3937_v36  ;;  %v804_v38 = vand.u32 2147483647, %v4117_v20 }
 0x24a   :  { %v783_v45 = vmul.f32 %v3239_v50, %v782_v63  ;;  %1057 = vmatpush.msra.mxu3 %v4038_v22  ;;  %v792_v63 = vor.u32 1.1754944e-38, %v791_v0  ;;  %1218 = vmatpush.msra.mxu2 %v4038_v22 }
 0x24b   :  { %1077 = vmatpush.msra.mxu0 %v4040_v25  ;;  %v798_v49 = vmul.f32 %v4144_v55, %v797_v56  ;;  %v806_v56 = vand.u32 2147483648, %v4117_v20  ;;  %vm805_vm7 = vcmp.eq.f32.partialorder %v804_v38, 8.507059e+37 }
 0x24c   :  { %v784_v61 = vadd.f32 %v3239_v50, %v783_v45  ;;  %1058 = vmatpush.msra.mxu3 %v4048_v40  ;;  %1219 = vmatpush.msra.mxu2 %v4048_v40 }
 0x24d   :  { %1078 = vmatpush.msra.mxu0 %v4050_v44 }
 0x24e   :  { %v788_v37 = vsel %vm787_vm2, %v3239_v50, %v784_v61  ;;  %1059 = vmatpush.msra.mxu3 %v4062_v17  ;;  %1220 = vmatpush.msra.mxu2 %v4062_v17  ;;  %v807_v50 = vor.u32 1.1754944e-38, %v806_v56 }
 0x24f   :  { %v793_v45 = vsel %vm790_vm3, %v792_v63, %v788_v37  ;;  %1079 = vmatpush.msra.mxu0 %v4064_v18 }
 0x250   :  { %v811_v0 = vmul.f32 %v810_v41, %v793_v45  ;;  %1060 = vmatpush.msra.mxu3 %v4072_v29  ;;  %v799_v41 = vadd.f32 %v4144_v55, %v798_v49  ;;  %1221 = vmatpush.msra.mxu2 %v4072_v29  ;;  %v4268_v45 = vld [vmem:[#allocation7 + $0x10] sm:$0xff] }
 0x252   :  { %v812_v61 = vadd.f32 %v811_v0, %v295_v2  ;;  %1061 = vmatpush.msra.mxu3 %v4080_v48  ;;  %1222 = vmatpush.msra.mxu2 %v4080_v48  ;;  %v803_v37 = vsel %vm802_vm6, %v4144_v55, %v799_v41 }
 0x253   :  { %v808_v35 = vsel %vm805_vm7, %v807_v50, %v803_v37 }
 0x254   :  { %3242 = vtanh.f32 %v812_v61  ;;  %1062 = vmatpush.msra.mxu3 %v4088_v23  ;;  %1223 = vmatpush.msra.mxu2 %v4088_v23 }
 0x256   :  { %1063 = vmatpush.msra.mxu3 %v4096_v24  ;;  %1224 = vmatpush.msra.mxu2 %v4096_v24 }
 0x258   :  { %1064 = vmatpush.msra.mxu3 %v4104_v19  ;;  %1225 = vmatpush.msra.mxu2 %v4104_v19 }
 0x25a   :  { %v3243_v39 = vpop.eup %3242  ;;  %1065 = vmatpush.msra.mxu3 %v4112_v33  ;;  %1226 = vmatpush.msra.mxu2 %v4112_v33 }
 0x25b   :  { %v814_v20 = vsub.f32 %v3982_v46, %v3243_v39 }
 0x25c   :  { %1066 = vmatpush.msra.mxu3 %v4122_v42  ;;  %1227 = vmatpush.msra.mxu2 %v4122_v42 }
 0x25d   :  { %v815_v63 = vmul.f32 %v814_v20, %v808_v35 }
 0x25e   :  { %1067 = vmatpush.msra.mxu3 %v4129_v30  ;;  %1228 = vmatpush.msra.mxu2 %v4129_v30 }
 0x25f   :  { %v4203_v55 = vadd.f32 %v3243_v39, %v815_v63 }
 0x261   :  { %887 = vmatmul.f32.vlgmr.msrb.gmra.mxu3 %v4203_v55  ;;  %907 = vmatmul.f32.vlgmr.msrb.gmra.mxu0 %v4203_v55 }
 0x262   :  { %927 = vmatmul.f32.vlgmr.msrb.gmra.mxu1 %v4203_v55  ;;  %1233 = vmatpush.msrb.mxu3 %v3991_v51 }
 0x263   :  { %1374 = vmatpush.msrb.mxu1 %v3989_v47  ;;  %v257_v47 = vadd.f32 %v3963_v58, %v3915_v34 }
 0x264   :  { %1234 = vmatpush.msrb.mxu3 %v4000_v62 }
 0x265   :  { %1375 = vmatpush.msrb.mxu1 %v3998_v59 }
 0x266   :  { %1235 = vmatpush.msrb.mxu3 %v4010_v6 }
 0x267   :  { %1376 = vmatpush.msrb.mxu1 %v4008_v9 }
 0x268   :  { %1236 = vmatpush.msrb.mxu3 %v4020_v3 }
 0x269   :  { %1377 = vmatpush.msrb.mxu1 %v4018_v14 }
 0x26a   :  { %1237 = vmatpush.msrb.mxu3 %v4030_v13 }
 0x26b   :  { %1378 = vmatpush.msrb.mxu1 %v4028_v7  ;;  %v216_v7 = vadd.f32 %v3913_v28, %v3908_v11  ;;  %v4252_v11 = vld [vmem:[#allocation7 + $0x70] sm:$0xff]  ;;  %v4256_v28 = vld [vmem:[#allocation7 + $0x58] sm:$0xff] }
 0x26c   :  { %1238 = vmatpush.msrb.mxu3 %v4040_v25 }
 0x26d   :  { %1379 = vmatpush.msrb.mxu1 %v4038_v22 }
 0x26e   :  { %1239 = vmatpush.msrb.mxu3 %v4050_v44 }
 0x26f   :  { %1380 = vmatpush.msrb.mxu1 %v4048_v40 }
 0x270   :  { %1240 = vmatpush.msrb.mxu3 %v4064_v18 }
 0x271   :  { %1381 = vmatpush.msrb.mxu1 %v4062_v17  ;;  %v4242_v17 = vld [vmem:[#allocation7 + $0xb8] sm:$0xff] }
 0x272   :  { %1080 = vmatpush.msra.mxu0 %v4242_v17  ;;  %1241 = vmatpush.msrb.mxu3 %v4242_v17 }
 0x273   :  { %1382 = vmatpush.msrb.mxu1 %v4072_v29  ;;  %v4246_v29 = vld [vmem:[#allocation7 + $0xa0] sm:$0xff] }
 0x274   :  { %1081 = vmatpush.msra.mxu0 %v4246_v29  ;;  %1242 = vmatpush.msrb.mxu3 %v4246_v29 }
 0x275   :  { %1383 = vmatpush.msrb.mxu1 %v4080_v48  ;;  %v4248_v48 = vld [vmem:[#allocation7 + $0x88] sm:$0xff] }
 0x276   :  { %1082 = vmatpush.msra.mxu0 %v4248_v48  ;;  %1243 = vmatpush.msrb.mxu3 %v4248_v48 }
 0x277   :  { %1384 = vmatpush.msrb.mxu1 %v4088_v23  ;;  %v4260_v23 = vld [vmem:[#allocation7 + $0x40] sm:$0xff] }
 0x278   :  { %1083 = vmatpush.msra.mxu0 %v4252_v11  ;;  %1244 = vmatpush.msrb.mxu3 %v4252_v11 }
 0x279   :  { %1385 = vmatpush.msrb.mxu1 %v4096_v24 }
 0x27a   :  { %1084 = vmatpush.msra.mxu0 %v4256_v28  ;;  %1245 = vmatpush.msrb.mxu3 %v4256_v28 }
 0x27b   :  { %1386 = vmatpush.msrb.mxu1 %v4104_v19 }
 0x27c   :  { %1085 = vmatpush.msra.mxu0 %v4260_v23  ;;  %1246 = vmatpush.msrb.mxu3 %v4260_v23 }
 0x27d   :  { %1387 = vmatpush.msrb.mxu1 %v4112_v33  ;;  %v4264_v33 = vld [vmem:[#allocation7 + $0x28] sm:$0xff] }
 0x27e   :  { %1086 = vmatpush.msra.mxu0 %v4264_v33  ;;  %1247 = vmatpush.msrb.mxu3 %v4264_v33 }
 0x27f   :  { %1388 = vmatpush.msrb.mxu1 %v4122_v42 }
 0x280   :  { %1087 = vmatpush.msra.mxu0 %v4268_v45  ;;  %1248 = vmatpush.msrb.mxu3 %v4268_v45 }
 0x281   :  { %1389 = vmatpush.msrb.mxu1 %v4129_v30 }
 0x282   :  { %1354 = vmatpush.msrb.mxu0 %v3987_v16 }
 0x284   :  { %1355 = vmatpush.msrb.mxu0 %v3996_v54 }
 0x286   :  { %1356 = vmatpush.msrb.mxu0 %v4006_v4 }
 0x288   :  { %1357 = vmatpush.msrb.mxu0 %v4016_v12 }
 0x28a   :  { %1358 = vmatpush.msrb.mxu0 %v4026_v5 }
 0x28c   :  { %1359 = vmatpush.msrb.mxu0 %v4036_v15 }
 0x28e   :  { %1360 = vmatpush.msrb.mxu0 %v4046_v31 }
 0x290   :  { %1361 = vmatpush.msrb.mxu0 %v4060_v53 }
 0x292   :  { %1362 = vmatpush.msrb.mxu0 %v4070_v57 }
 0x294   :  { %1363 = vmatpush.msrb.mxu0 %v4078_v10 }
 0x296   :  { %1364 = vmatpush.msrb.mxu0 %v4086_v52 }
 0x298   :  { %1365 = vmatpush.msrb.mxu0 %v4094_v21 }
 0x29a   :  { %1366 = vmatpush.msrb.mxu0 %v4102_v26 }
 0x29c   :  { %1367 = vmatpush.msrb.mxu0 %v4110_v27 }
 0x29e   :  { %1368 = vmatpush.msrb.mxu0 %v4120_v8  ;;  %v260_v8 = vadd.f32 %v3965_v60, %v3915_v34 }
 0x2a0   :  { %1369 = vmatpush.msrb.mxu0 %v4127_v43 }
 0x2de   :  { %v908_v59 = vpop.f32.mrf.mxu0 }
 0x2df   :  { %v932_v9 = vadd.f32 %v908_v59, %v257_v47  ;;  %v928_v39 = vpop.f32.mrf.mxu1 }
 0x2e0   :  { %v971_v4 = vadd.f32 %v3935_v32, %v928_v39 }
 0x2e1   :  { %v3177_v14 = vmul.f32 -1.442695, %v932_v9 }
 0x2e3   :  { %3244 = vpow2.f32 %v3177_v14 }
 0x2e4   :  { %v888_v22 = vpop.f32.mrf.mxu3 }
 0x2e5   :  { %v931_v40 = vadd.f32 %v888_v22, %v216_v7 }
 0x2e7   :  { %v3176_v42 = vmul.f32 -1.442695, %v931_v40 }
 0x2e9   :  { %3246 = vpow2.f32 %v3176_v42  ;;  %v3245_v58 = vpop.eup %3244 }
 0x2ea   :  { %v940_v19 = vadd.f32 1.0, %v3245_v58 }
 0x2ec   :  { %v967_v47 = vand.u32 2147483648, %v940_v19  ;;  %vm961_vm13 = vweird.f32 %v940_v19  ;;  %v965_v59 = vand.u32 2147483647, %v940_v19 }
 0x2ee   :  { %v968_v9 = vor.u32 1.1754944e-38, %v967_v47  ;;  %vm966_vm15 = vcmp.eq.f32.partialorder %v965_v59, 8.507059e+37  ;;  %v1677_v47 = vld [vmem:[#allocation9 + $0x138] sm:$0xff]  ;;  %v1674_v59 = vld [vmem:[#allocation9 + $0x120] sm:$0xff] }
 0x2ef   :  { %v3247_v24 = vpop.eup %3246 }
 0x2f0   :  { %v939_v30 = vadd.f32 1.0, %v3247_v24 }
 0x2f2   :  { %3248 = vrcp.f32 %v939_v30  ;;  %v952_v56 = vand.u32 2147483648, %v939_v30  ;;  %v950_v37 = vand.u32 2147483647, %v939_v30  ;;  %vm946_vm9 = vweird.f32 %v939_v30 }
 0x2f3   :  { %3250 = vrcp.f32 %v940_v19 }
 0x2f4   :  { %v953_v54 = vor.u32 1.1754944e-38, %v952_v56  ;;  %vm951_vm11 = vcmp.eq.f32.partialorder %v950_v37, 8.507059e+37 }
 0x2f8   :  { %v3249_v2 = vpop.eup %3248 }
 0x2f9   :  { %v3251_v0 = vpop.eup %3250  ;;  %v942_v49 = vmul.f32 %v3249_v2, %v939_v30  ;;  %vm947_vm8 = vweird.f32 %v3249_v2 }
 0x2fa   :  { %v957_v41 = vmul.f32 %v3251_v0, %v940_v19  ;;  %vm948_vm10 = vmor %vm946_vm9, %vm947_vm8  ;;  %vm962_vm12 = vweird.f32 %v3251_v0 }
 0x2fb   :  { %v943_v61 = vsub.f32 1.0, %v942_v49  ;;  %vm963_vm14 = vmor %vm961_vm13, %vm962_vm12 }
 0x2fc   :  { %v958_v16 = vsub.f32 1.0, %v957_v41 }
 0x2fd   :  { %v944_v38 = vmul.f32 %v3249_v2, %v943_v61 }
 0x2fe   :  { %v959_v63 = vmul.f32 %v3251_v0, %v958_v16 }
 0x2ff   :  { %v945_v50 = vadd.f32 %v3249_v2, %v944_v38  ;;  %v5105_v38 = vld [vmem:[#allocation20_spill] sm:$0xff] }
 0x300   :  { %v960_v15 = vadd.f32 %v3251_v0, %v959_v63 }
 0x301   :  { %v949_v20 = vsel %vm948_vm10, %v3249_v2, %v945_v50 }
 0x302   :  { %v954_v12 = vsel %vm951_vm11, %v953_v54, %v949_v20  ;;  %v964_v31 = vsel %vm963_vm14, %v3251_v0, %v960_v15  ;;  %v1680_v15 = vld [vmem:[#allocation9 + $0x150] sm:$0xff] }
 0x303   :  { %v972_v35 = vmul.f32 %v971_v4, %v954_v12  ;;  %v969_v57 = vsel %vm966_vm15, %v968_v9, %v964_v31 }
 0x305   :  { %v973_v5 = vadd.f32 %v972_v35, %v3944_v1 }
 0x307   :  { %3252 = vtanh.f32 %v973_v5  ;;  %v1683_v5 = vld [vmem:[#allocation9 + $0x168] sm:$0xff] }
 0x30d   :  { %v3253_v53 = vpop.eup %3252 }
 0x30e   :  { %v975_v1 = vsub.f32 %v4203_v55, %v3253_v53 }
 0x310   :  { %v976_v10 = vmul.f32 %v975_v1, %v969_v57  ;;  %v1671_v1 = vld [vmem:[#allocation9 + $0x108] sm:$0xff] }
 0x312   :  { %v4292_v52 = vadd.f32 %v3253_v53, %v976_v10  ;;  %v5106_v53 = vld [vmem:[#allocation17_spill] sm:$0xff]  ;;  %v1668_v10 = vld [vmem:[#allocation9 + $0xf0] sm:$0xff] }
 0x314   :  { %1048 = vmatmul.f32.vlgmr.msrb.gmra.mxu2 %v4292_v52  ;;  %1068 = vmatmul.f32.vlgmr.msra.gmra.mxu3 %v4292_v52 }
 0x315   :  { %1088 = vmatmul.f32.vlgmr.msra.gmra.mxu0 %v4292_v52  ;;  %1394 = vmatpush.msrb.mxu2 %v3991_v51 }
 0x317   :  { %1395 = vmatpush.msrb.mxu2 %v4000_v62 }
 0x319   :  { %1396 = vmatpush.msrb.mxu2 %v4010_v6  ;;  %v5104_v6 = vld [vmem:[#allocation16_spill] sm:$0xff] }
 0x31b   :  { %1397 = vmatpush.msrb.mxu2 %v4020_v3 }
 0x31d   :  { %1398 = vmatpush.msrb.mxu2 %v4030_v13 }
 0x31f   :  { %1399 = vmatpush.msrb.mxu2 %v4040_v25 }
 0x321   :  { %1400 = vmatpush.msrb.mxu2 %v4050_v44 }
 0x323   :  { %1401 = vmatpush.msrb.mxu2 %v4064_v18 }
 0x325   :  { %1402 = vmatpush.msrb.mxu2 %v4242_v17 }
 0x327   :  { %1403 = vmatpush.msrb.mxu2 %v4246_v29 }
 0x329   :  { %1404 = vmatpush.msrb.mxu2 %v4248_v48 }
 0x32b   :  { %1405 = vmatpush.msrb.mxu2 %v4252_v11 }
 0x32d   :  { %1406 = vmatpush.msrb.mxu2 %v4256_v28 }
 0x32f   :  { %1407 = vmatpush.msrb.mxu2 %v4260_v23 }
 0x331   :  { %1408 = vmatpush.msrb.mxu2 %v4264_v33 }
 0x333   :  { %1409 = vmatpush.msrb.mxu2 %v4268_v45 }
 0x392   :  { %v1089_v24 = vpop.f32.mrf.mxu0 }
 0x393   :  { %v1132_v0 = vadd.f32 %v3935_v32, %v1089_v24  ;;  %v1638_v24 = vld [vmem:[#allocation9] sm:$0xff] }
 0x397   :  { %v1049_v51 = vpop.f32.mrf.mxu2  ;;  %v1069_v62 = vpop.f32.mrf.mxu3 }
 0x398   :  { %v1092_v3 = vadd.f32 %v1049_v51, %v5104_v6  ;;  %v1093_v13 = vadd.f32 %v1069_v62, %v260_v8  ;;  %v5107_v8 = vld [vmem:[#allocation24_spill] sm:$0xff]  ;;  %v1665_v62 = vld [vmem:[#allocation9 + $0xd8] sm:$0xff] }
 0x399   :  { %v263_v51 = vadd.f32 %v5107_v8, %v3915_v34  ;;  %v1514_v8 = vld [vmem:[#allocation7 + $0x178] sm:$0xff] }
 0x39a   :  { %v3178_v25 = vmul.f32 -1.442695, %v1092_v3  ;;  %v3179_v44 = vmul.f32 -1.442695, %v1093_v13  ;;  %v1662_v13 = vld [vmem:[#allocation9 + $0xc0] sm:$0xff] }
 0x39c   :  { %3254 = vpow2.f32 %v3178_v25 }
 0x39d   :  { %3256 = vpow2.f32 %v3179_v44  ;;  %v1659_v44 = vld [vmem:[#allocation9 + $0xa8] sm:$0xff] }
 0x3a2   :  { %v3255_v18 = vpop.eup %3254 }
 0x3a3   :  { %v3257_v21 = vpop.eup %3256  ;;  %v1100_v26 = vadd.f32 1.0, %v3255_v18 }
 0x3a4   :  { %v1101_v27 = vadd.f32 1.0, %v3257_v21  ;;  %v1656_v21 = vld [vmem:[#allocation9 + $0x90] sm:$0xff] }
 0x3a5   :  { %3258 = vrcp.f32 %v1100_v26  ;;  %v1113_v60 = vand.u32 2147483648, %v1100_v26  ;;  %v1111_v58 = vand.u32 2147483647, %v1100_v26  ;;  %vm1107_vm1 = vweird.f32 %v1100_v26 }
 0x3a6   :  { %3260 = vrcp.f32 %v1101_v27  ;;  %v1128_v50 = vand.u32 2147483648, %v1101_v27  ;;  %vm1122_vm5 = vweird.f32 %v1101_v27  ;;  %v1126_v16 = vand.u32 2147483647, %v1101_v27 }
 0x3a7   :  { %v1114_v30 = vor.u32 1.1754944e-38, %v1113_v60  ;;  %vm1112_vm3 = vcmp.eq.f32.partialorder %v1111_v58, 8.507059e+37 }
 0x3a8   :  { %v1129_v20 = vor.u32 1.1754944e-38, %v1128_v50  ;;  %vm1127_vm7 = vcmp.eq.f32.partialorder %v1126_v16, 8.507059e+37  ;;  %v4331_v50 = vld [vmem:[%s5082_s5] ss:$0 sm:$0xff] }
 0x3ab   :  { %v3259_v43 = vpop.eup %3258 }
 0x3ac   :  { %v3261_v14 = vpop.eup %3260  ;;  %v1103_v7 = vmul.f32 %v3259_v43, %v1100_v26  ;;  %vm1108_vm0 = vweird.f32 %v3259_v43 }
 0x3ad   :  { %v1118_v40 = vmul.f32 %v3261_v14, %v1101_v27  ;;  %vm1109_vm2 = vmor %vm1107_vm1, %vm1108_vm0  ;;  %vm1123_vm4 = vweird.f32 %v3261_v14  ;;  %v1653_v27 = vld [vmem:[#allocation9 + $0x78] sm:$0xff] }
 0x3ae   :  { %v1104_v22 = vsub.f32 1.0, %v1103_v7  ;;  %vm1124_vm6 = vmor %vm1122_vm5, %vm1123_vm4  ;;  %v1647_v7 = vld [vmem:[#allocation9 + $0x48] sm:$0xff] }
 0x3af   :  { %v1119_v2 = vsub.f32 1.0, %v1118_v40  ;;  %v1641_v40 = vld [vmem:[#allocation9 + $0x18] sm:$0xff] }
 0x3b0   :  { %v1105_v42 = vmul.f32 %v3259_v43, %v1104_v22  ;;  %v1644_v22 = vld [vmem:[#allocation9 + $0x30] sm:$0xff] }
 0x3b1   :  { %v1120_v56 = vmul.f32 %v3261_v14, %v1119_v2 }
 0x3b2   :  { %v1106_v19 = vadd.f32 %v3259_v43, %v1105_v42 }
 0x3b3   :  { %v1121_v39 = vadd.f32 %v3261_v14, %v1120_v56 }
 0x3b4   :  { %v1110_v49 = vsel %vm1109_vm2, %v3259_v43, %v1106_v19  ;;  %v1650_v43 = vld [vmem:[#allocation9 + $0x60] sm:$0xff] }
 0x3b5   :  { %v1115_v61 = vsel %vm1112_vm3, %v1114_v30, %v1110_v49  ;;  %v1125_v54 = vsel %vm1124_vm6, %v3261_v14, %v1121_v39 }
 0x3b6   :  { %v1133_v41 = vmul.f32 %v1132_v0, %v1115_v61  ;;  %v1130_v12 = vsel %vm1127_vm7, %v1129_v20, %v1125_v54 }
 0x3b8   :  { %v1134_v37 = vadd.f32 %v1133_v41, %v5105_v38 }
 0x3ba   :  { %3262 = vtanh.f32 %v1134_v37 }
 0x3c0   :  { %v3263_v4 = vpop.eup %3262 }
 0x3c1   :  { %v1136_v32 = vsub.f32 %v4292_v52, %v3263_v4 }
 0x3c3   :  { %v1137_v35 = vmul.f32 %v1136_v32, %v1130_v12  ;;  %v5108_v32 = vld [vmem:[#allocation22_spill] sm:$0xff] }
 0x3c5   :  { %v4320_v63 = vadd.f32 %v3263_v4, %v1137_v35 }
 0x3c7   :  { %1209 = vmatmul.f32.vlgmr.msra.gmra.mxu1 %v4320_v63  ;;  %1229 = vmatmul.f32.vlgmr.msra.gmra.mxu2 %v4320_v63 }
 0x3c8   :  { %1249 = vmatmul.f32.vlgmr.msrb.gmra.mxu3 %v4320_v63  ;;  %1694 = vmatpush.msra.mxu2 %v1683_v5 }
 0x3c9   :  { %1555 = vmatpush.msra.mxu1 %v1514_v8  ;;  %v1675_v8 = vld [vmem:[#allocation9 + $0x128] sm:$0xff] }
 0x3ca   :  { %1695 = vmatpush.msra.mxu2 %v1680_v15 }
 0x3cc   :  { %1696 = vmatpush.msra.mxu2 %v1677_v47 }
 0x3ce   :  { %1697 = vmatpush.msra.mxu2 %v1674_v59 }
 0x3d0   :  { %1698 = vmatpush.msra.mxu2 %v1671_v1 }
 0x3d2   :  { %1699 = vmatpush.msra.mxu2 %v1668_v10  ;;  %v5109_v10 = vld [vmem:[#allocation21_spill] sm:$0xff] }
 0x3d4   :  { %1700 = vmatpush.msra.mxu2 %v1665_v62  ;;  %v1512_v62 = vld [vmem:[#allocation7 + $0x168] sm:$0xff] }
 0x3d5   :  { %1515 = vmatpush.msra.mxu3 %v1512_v62  ;;  %v4378_v62 = vld [vmem:[#allocation10 + $0xc0] sm:$0xff] }
 0x3d6   :  { %1701 = vmatpush.msra.mxu2 %v1662_v13  ;;  %v1509_v13 = vld [vmem:[#allocation7 + $0x150] sm:$0xff] }
 0x3d7   :  { %1516 = vmatpush.msra.mxu3 %v1509_v13  ;;  %v5111_v13 = vld [vmem:[#allocation18_spill] sm:$0xff] }
 0x3d8   :  { %1702 = vmatpush.msra.mxu2 %v1659_v44  ;;  %v1506_v44 = vld [vmem:[#allocation7 + $0x138] sm:$0xff] }
 0x3d9   :  { %1517 = vmatpush.msra.mxu3 %v1506_v44 }
 0x3da   :  { %1703 = vmatpush.msra.mxu2 %v1656_v21  ;;  %v1505_v21 = vld [vmem:[#allocation7 + $0x130] sm:$0xff] }
 0x3dc   :  { %1704 = vmatpush.msra.mxu2 %v1653_v27  ;;  %v1499_v27 = vld [vmem:[#allocation7 + $0x100] sm:$0xff] }
 0x3de   :  { %1705 = vmatpush.msra.mxu2 %v1650_v43  ;;  %v1496_v43 = vld [vmem:[#allocation7 + $0xe8] sm:$0xff] }
 0x3e0   :  { %1706 = vmatpush.msra.mxu2 %v1647_v7  ;;  %v1504_v7 = vld [vmem:[#allocation7 + $0x128] sm:$0xff] }
 0x3e2   :  { %1707 = vmatpush.msra.mxu2 %v1644_v22  ;;  %v1493_v22 = vld [vmem:[#allocation7 + $0xd0] sm:$0xff] }
 0x3e4   :  { %1708 = vmatpush.msra.mxu2 %v1641_v40  ;;  %v1501_v40 = vld [vmem:[#allocation7 + $0x110] sm:$0xff] }
 0x3e6   :  { %1709 = vmatpush.msra.mxu2 %v1638_v24  ;;  %v1494_v24 = vld [vmem:[#allocation7 + $0xd8] sm:$0xff] }
 0x444   :  { %v1210_v31 = vpop.f32.mrf.mxu1 }
 0x445   :  { %v1253_v9 = vadd.f32 %v1210_v31, %v5106_v53 }
 0x447   :  { %v3180_v57 = vmul.f32 -1.442695, %v1253_v9 }
 0x449   :  { %3264 = vpow2.f32 %v3180_v57 }
 0x44a   :  { %v1230_v6 = vpop.f32.mrf.mxu2 }
 0x44b   :  { %v1254_v3 = vadd.f32 %v1230_v6, %v263_v51  ;;  %v1250_v61 = vpop.f32.mrf.mxu3  ;;  %v1511_v51 = vld [vmem:[#allocation7 + $0x160] sm:$0xff]  ;;  %v1513_v6 = vld [vmem:[#allocation7 + $0x170] sm:$0xff] }
 0x44c   :  { %v1293_v16 = vadd.f32 %v4331_v50, %v1250_v61  ;;  %1535 = vmatpush.msra.mxu0 %v1513_v6  ;;  %1556 = vmatpush.msra.mxu1 %v1511_v51  ;;  %v1482_v61 = vld [vmem:[#allocation7 + $0x78] sm:$0xff]  ;;  %v1676_v51 = vld [vmem:[#allocation9 + $0x130] sm:$0xff] }
 0x44d   :  { %v3181_v25 = vmul.f32 -1.442695, %v1254_v3  ;;  %v1508_v3 = vld [vmem:[#allocation7 + $0x148] sm:$0xff] }
 0x44e   :  { %1557 = vmatpush.msra.mxu1 %v1508_v3 }
 0x44f   :  { %v3265_v18 = vpop.eup %3264  ;;  %3266 = vpow2.f32 %v3181_v25  ;;  %v1510_v25 = vld [vmem:[#allocation7 + $0x158] sm:$0xff] }
 0x450   :  { %v1261_v26 = vadd.f32 1.0, %v3265_v18  ;;  %v1507_v18 = vld [vmem:[#allocation7 + $0x140] sm:$0xff]  ;;  %1536 = vmatpush.msra.mxu0 %v1510_v25  ;;  %1558 = vmatpush.msra.mxu1 %v1505_v21  ;;  %v1673_v21 = vld [vmem:[#allocation9 + $0x118] sm:$0xff] }
 0x452   :  { %3268 = vrcp.f32 %v1261_v26  ;;  %v1274_v30 = vand.u32 2147483648, %v1261_v26  ;;  %v1272_v0 = vand.u32 2147483647, %v1261_v26  ;;  %vm1268_vm9 = vweird.f32 %v1261_v26  ;;  %1537 = vmatpush.msra.mxu0 %v1507_v18  ;;  %v1672_v18 = vld [vmem:[#allocation9 + $0x110] sm:$0xff] }
 0x454   :  { %v1275_v38 = vor.u32 1.1754944e-38, %v1274_v30  ;;  %vm1273_vm11 = vcmp.eq.f32.partialorder %v1272_v0, 8.507059e+37  ;;  %1538 = vmatpush.msra.mxu0 %v1504_v7  ;;  %v1491_v30 = vld [vmem:[#allocation7 + $0xc0] sm:$0xff]  ;;  %v1488_v0 = vld [vmem:[#allocation7 + $0xa8] sm:$0xff] }
 0x455   :  { %v3267_v14 = vpop.eup %3266  ;;  %v1670_v7 = vld [vmem:[#allocation9 + $0x100] sm:$0xff] }
 0x456   :  { %v1262_v60 = vadd.f32 1.0, %v3267_v14  ;;  %v1503_v14 = vld [vmem:[#allocation7 + $0x120] sm:$0xff]  ;;  %1539 = vmatpush.msra.mxu0 %v1501_v40  ;;  %v1667_v40 = vld [vmem:[#allocation9 + $0xe8] sm:$0xff] }
 0x457   :  { %1518 = vmatpush.msra.mxu3 %v1503_v14  ;;  %v1669_v14 = vld [vmem:[#allocation9 + $0xf8] sm:$0xff] }
 0x458   :  { %v3269_v42 = vpop.eup %3268  ;;  %3270 = vrcp.f32 %v1262_v60  ;;  %v1289_v5 = vand.u32 2147483648, %v1262_v60  ;;  %vm1283_vm13 = vweird.f32 %v1262_v60  ;;  %v1287_v15 = vand.u32 2147483647, %v1262_v60 }
 0x459   :  { %v1264_v58 = vmul.f32 %v3269_v42, %v1261_v26  ;;  %vm1269_vm8 = vweird.f32 %v3269_v42  ;;  %v1502_v26 = vld [vmem:[#allocation7 + $0x118] sm:$0xff] }
 0x45a   :  { %vm1270_vm10 = vmor %vm1268_vm9, %vm1269_vm8  ;;  %v1290_v31 = vor.u32 1.1754944e-38, %v1289_v5  ;;  %vm1288_vm15 = vcmp.eq.f32.partialorder %v1287_v15, 8.507059e+37  ;;  %1559 = vmatpush.msra.mxu1 %v1502_v26  ;;  %v1681_v5 = vld [vmem:[#allocation9 + $0x158] sm:$0xff]  ;;  %v1682_v15 = vld [vmem:[#allocation9 + $0x160] sm:$0xff] }
 0x45b   :  { %v1265_v19 = vsub.f32 1.0, %v1264_v58  ;;  %v1498_v58 = vld [vmem:[#allocation7 + $0xf8] sm:$0xff]  ;;  %v4382_v26 = vld [vmem:[#allocation10 + $0xa8] sm:$0xff] }
 0x45c   :  { %1560 = vmatpush.msra.mxu1 %v1499_v27  ;;  %1540 = vmatpush.msra.mxu0 %v1498_v58  ;;  %v1663_v58 = vld [vmem:[#allocation9 + $0xc8] sm:$0xff] }
 0x45d   :  { %v1266_v2 = vmul.f32 %v3269_v42, %v1265_v19  ;;  %v1495_v19 = vld [vmem:[#allocation7 + $0xe0] sm:$0xff] }
 0x45e   :  { %v3271_v49 = vpop.eup %3270  ;;  %1561 = vmatpush.msra.mxu1 %v1496_v43  ;;  %1541 = vmatpush.msra.mxu0 %v1495_v19  ;;  %v4391_v19 = vld [vmem:[#allocation10 + $0x60] sm:$0xff] }
 0x45f   :  { %v1279_v41 = vmul.f32 %v3271_v49, %v1262_v60  ;;  %v1267_v56 = vadd.f32 %v3269_v42, %v1266_v2  ;;  %vm1284_vm12 = vweird.f32 %v3271_v49  ;;  %v1500_v60 = vld [vmem:[#allocation7 + $0x108] sm:$0xff] }
 0x460   :  { %vm1285_vm14 = vmor %vm1283_vm13, %vm1284_vm12  ;;  %1562 = vmatpush.msra.mxu1 %v1493_v22  ;;  %1519 = vmatpush.msra.mxu3 %v1500_v60  ;;  %v1492_v2 = vld [vmem:[#allocation7 + $0xc8] sm:$0xff]  ;;  %v4385_v22 = vld [vmem:[#allocation10 + $0x90] sm:$0xff] }
 0x461   :  { %v1280_v37 = vsub.f32 1.0, %v1279_v41  ;;  %v1271_v39 = vsel %vm1270_vm10, %v3269_v42, %v1267_v56  ;;  %v1497_v42 = vld [vmem:[#allocation7 + $0xf0] sm:$0xff]  ;;  %1542 = vmatpush.msra.mxu0 %v1492_v2  ;;  %v1479_v41 = vld [vmem:[#allocation7 + $0x60] sm:$0xff]  ;;  %v4354_v56 = vld [vmem:[#allocation10 + $0x168] sm:$0xff] }
 0x462   :  { %v1276_v54 = vsel %vm1273_vm11, %v1275_v38, %v1271_v39  ;;  %1563 = vmatpush.msra.mxu1 %v4242_v17  ;;  %1520 = vmatpush.msra.mxu3 %v1497_v42  ;;  %v1489_v17 = vld [vmem:[#allocation7 + $0xb0] sm:$0xff]  ;;  %v1474_v39 = vld [vmem:[#allocation7 + $0x38] sm:$0xff]  ;;  %v1666_v60 = vld [vmem:[#allocation9 + $0xe0] sm:$0xff] }
 0x463   :  { %v1294_v4 = vmul.f32 %v1293_v16, %v1276_v54  ;;  %v1281_v20 = vmul.f32 %v3271_v49, %v1280_v37  ;;  %1543 = vmatpush.msra.mxu0 %v1489_v17  ;;  %v1477_v38 = vld [vmem:[#allocation7 + $0x50] sm:$0xff]  ;;  %v1470_v16 = vld [vmem:[#allocation7 + $0x18] sm:$0xff]  ;;  %v1471_v54 = vld [vmem:[#allocation7 + $0x20] sm:$0xff] }
 0x464   :  { %1564 = vmatpush.msra.mxu1 %v4246_v29  ;;  %1521 = vmatpush.msra.mxu3 %v1494_v24  ;;  %v1486_v29 = vld [vmem:[#allocation7 + $0x98] sm:$0xff]  ;;  %v1473_v37 = vld [vmem:[#allocation7 + $0x30] sm:$0xff] }
 0x465   :  { %v1295_v12 = vadd.f32 %v1294_v4, %v5108_v32  ;;  %v1282_v35 = vadd.f32 %v3271_v49, %v1281_v20  ;;  %1544 = vmatpush.msra.mxu0 %v1486_v29  ;;  %v1467_v4 = vld [vmem:[#allocation7] sm:$0xff]  ;;  %v1468_v20 = vld [vmem:[#allocation7 + $0x8] sm:$0xff]  ;;  %v1684_v32 = vld [vmem:[#allocation9 + $0x170] sm:$0xff] }
 0x466   :  { %1565 = vmatpush.msra.mxu1 %v4248_v48  ;;  %1522 = vmatpush.msra.mxu3 %v1491_v30  ;;  %v1483_v48 = vld [vmem:[#allocation7 + $0x80] sm:$0xff]  ;;  %v4388_v42 = vld [vmem:[#allocation10 + $0x78] sm:$0xff]  ;;  %v1664_v24 = vld [vmem:[#allocation9 + $0xd0] sm:$0xff] }
 0x467   :  { %3272 = vtanh.f32 %v1295_v12  ;;  %v1286_v47 = vsel %vm1285_vm14, %v3271_v49, %v1282_v35  ;;  %v1485_v49 = vld [vmem:[#allocation7 + $0x90] sm:$0xff]  ;;  %1545 = vmatpush.msra.mxu0 %v1483_v48  ;;  %v1685_v12 = vld [vmem:[#allocation9 + $0x178] sm:$0xff]  ;;  %v4367_v35 = vld [vmem:[#allocation10 + $0x108] sm:$0xff] }
 0x468   :  { %v1291_v9 = vsel %vm1288_vm15, %v1290_v31, %v1286_v47  ;;  %1566 = vmatpush.msra.mxu1 %v4252_v11  ;;  %1523 = vmatpush.msra.mxu3 %v1488_v0  ;;  %v1480_v11 = vld [vmem:[#allocation7 + $0x68] sm:$0xff]  ;;  %v4370_v47 = vld [vmem:[#allocation10 + $0xf0] sm:$0xff]  ;;  %v1661_v2 = vld [vmem:[#allocation9 + $0xb8] sm:$0xff] }
 0x469   :  { %1546 = vmatpush.msra.mxu0 %v1480_v11  ;;  %v1679_v31 = vld [vmem:[#allocation9 + $0x148] sm:$0xff]  ;;  %v1660_v30 = vld [vmem:[#allocation9 + $0xb0] sm:$0xff]  ;;  %v1658_v29 = vld [vmem:[#allocation9 + $0xa0] sm:$0xff] }
 0x46a   :  { %1567 = vmatpush.msra.mxu1 %v4256_v28  ;;  %1524 = vmatpush.msra.mxu3 %v1485_v49  ;;  %v1476_v28 = vld [vmem:[#allocation7 + $0x48] sm:$0xff]  ;;  %v1657_v49 = vld [vmem:[#allocation9 + $0x98] sm:$0xff] }
 0x46b   :  { %1547 = vmatpush.msra.mxu0 %v1477_v38  ;;  %v4394_v0 = vld [vmem:[#allocation10 + $0x48] sm:$0xff] }
 0x46c   :  { %1568 = vmatpush.msra.mxu1 %v4260_v23  ;;  %1525 = vmatpush.msra.mxu3 %v1482_v61  ;;  %v4358_v23 = vld [vmem:[#allocation10 + $0x150] sm:$0xff]  ;;  %v1655_v38 = vld [vmem:[#allocation9 + $0x88] sm:$0xff] }
 0x46d   :  { %v3273_v59 = vpop.eup %3272  ;;  %1548 = vmatpush.msra.mxu0 %v1474_v39  ;;  %v4397_v61 = vld [vmem:[#allocation10 + $0x30] sm:$0xff]  ;;  %v1651_v39 = vld [vmem:[#allocation9 + $0x68] sm:$0xff] }
 0x46e   :  { %v1297_v53 = vsub.f32 %v4320_v63, %v3273_v59  ;;  %1569 = vmatpush.msra.mxu1 %v4264_v33  ;;  %1526 = vmatpush.msra.mxu3 %v1479_v41  ;;  %v4361_v33 = vld [vmem:[#allocation10 + $0x138] sm:$0xff] }
 0x46f   :  { %1549 = vmatpush.msra.mxu0 %v1471_v54  ;;  %v4406_v54 = vld [vmem:[#allocation10] sm:$0xff] }
 0x470   :  { %v1298_v1 = vmul.f32 %v1297_v53, %v1291_v9  ;;  %1570 = vmatpush.msra.mxu1 %v4268_v45  ;;  %1527 = vmatpush.msra.mxu3 %v1476_v28  ;;  %v4364_v45 = vld [vmem:[#allocation10 + $0x120] sm:$0xff]  ;;  %v4373_v53 = vld [vmem:[#allocation10 + $0xd8] sm:$0xff]  ;;  %v5110_v9 = vld [vmem:[#allocation25_spill] sm:$0xff] }
 0x471   :  { %1550 = vmatpush.msra.mxu0 %v1468_v20  ;;  %v1654_v28 = vld [vmem:[#allocation9 + $0x80] sm:$0xff]  ;;  %v1649_v20 = vld [vmem:[#allocation9 + $0x58] sm:$0xff] }
 0x472   :  { %v4336_v57 = vadd.f32 %v3273_v59, %v1298_v1  ;;  %1528 = vmatpush.msra.mxu3 %v1473_v37  ;;  %v1678_v59 = vld [vmem:[#allocation9 + $0x140] sm:$0xff]  ;;  %v266_v1 = vadd.f32 %v5110_v9, %v3915_v34  ;;  %v4402_v37 = vld [vmem:[#allocation10 + $0x18] sm:$0xff]  ;;  %v1643_v9 = vld [vmem:[#allocation9 + $0x28] sm:$0xff] }
 0x474   :  { %1370 = vmatmul.f32.vlgmr.msrb.gmra.mxu0 %v4336_v57  ;;  %1390 = vmatmul.f32.vlgmr.msrb.gmra.mxu1 %v4336_v57 }
 0x475   :  { %1410 = vmatmul.f32.vlgmr.msrb.gmra.mxu2 %v4336_v57  ;;  %1893 = vmatpush.msrb.mxu1 %v4354_v56 }
 0x476   :  { %1529 = vmatpush.msra.mxu3 %v1470_v16  ;;  %1776 = vmatpush.msrb.mxu0 %v1685_v12  ;;  %v1652_v16 = vld [vmem:[#allocation9 + $0x70] sm:$0xff]  ;;  %v1645_v12 = vld [vmem:[#allocation9 + $0x38] sm:$0xff] }
 0x477   :  { %1894 = vmatpush.msrb.mxu1 %v4358_v23 }
 0x478   :  { %1530 = vmatpush.msra.mxu3 %v1467_v4  ;;  %1777 = vmatpush.msrb.mxu0 %v1682_v15  ;;  %v1648_v4 = vld [vmem:[#allocation9 + $0x50] sm:$0xff] }
 0x479   :  { %1895 = vmatpush.msrb.mxu1 %v4361_v33 }
 0x47a   :  { %1735 = vmatpush.msrb.mxu3 %v1684_v32  ;;  %1778 = vmatpush.msrb.mxu0 %v1679_v31  ;;  %v1642_v31 = vld [vmem:[#allocation9 + $0x20] sm:$0xff] }
 0x47b   :  { %1896 = vmatpush.msrb.mxu1 %v4364_v45 }
 0x47c   :  { %1736 = vmatpush.msrb.mxu3 %v1681_v5  ;;  %1779 = vmatpush.msrb.mxu0 %v1676_v51  ;;  %v1646_v5 = vld [vmem:[#allocation9 + $0x40] sm:$0xff] }
 0x47d   :  { %1710 = vmatmul.f32.vlgmr.msra.gmra.mxu2 %v5109_v10  ;;  %1897 = vmatpush.msrb.mxu1 %v4367_v35 }
 0x47e   :  { %1737 = vmatpush.msrb.mxu3 %v1678_v59  ;;  %1780 = vmatpush.msrb.mxu0 %v1673_v21 }
 0x47f   :  { %1898 = vmatpush.msrb.mxu1 %v4370_v47 }
 0x480   :  { %1738 = vmatpush.msrb.mxu3 %v1675_v8  ;;  %1781 = vmatpush.msrb.mxu0 %v1670_v7 }
 0x481   :  { %1899 = vmatpush.msrb.mxu1 %v4373_v53 }
 0x482   :  { %1739 = vmatpush.msrb.mxu3 %v1672_v18  ;;  %1782 = vmatpush.msrb.mxu0 %v1667_v40 }
 0x483   :  { %1900 = vmatpush.msrb.mxu1 %v4378_v62 }
 0x484   :  { %1740 = vmatpush.msrb.mxu3 %v1669_v14  ;;  %1783 = vmatpush.msrb.mxu0 %v1664_v24 }
 0x485   :  { %1713 = vmatmul.f32.gmra.mxu2 %v3982_v46  ;;  %1901 = vmatpush.msrb.mxu1 %v4382_v26 }
 0x486   :  { %1741 = vmatpush.msrb.mxu3 %v1666_v60  ;;  %1784 = vmatpush.msrb.mxu0 %v1661_v2 }
 0x487   :  { %1902 = vmatpush.msrb.mxu1 %v4385_v22 }
 0x488   :  { %1742 = vmatpush.msrb.mxu3 %v1663_v58  ;;  %1785 = vmatpush.msrb.mxu0 %v1658_v29  ;;  %v5112_v58 = vld [vmem:[#allocation23_spill] sm:$0xff] }
 0x489   :  { %1903 = vmatpush.msrb.mxu1 %v4388_v42 }
 0x48a   :  { %1743 = vmatpush.msrb.mxu3 %v1660_v30  ;;  %1786 = vmatpush.msrb.mxu0 %v1655_v38 }
 0x48b   :  { %1904 = vmatpush.msrb.mxu1 %v4391_v19 }
 0x48c   :  { %1744 = vmatpush.msrb.mxu3 %v1657_v49  ;;  %1787 = vmatpush.msrb.mxu0 %v1652_v16  ;;  %v4418_v16 = vld [vmem:[#allocation10 + $0x170] sm:$0xff] }
 0x48d   :  { %1716 = vmatmul.f32.gmra.mxu2 %v4203_v55  ;;  %1905 = vmatpush.msrb.mxu1 %v4394_v0 }
 0x48e   :  { %1745 = vmatpush.msrb.mxu3 %v1654_v28  ;;  %1788 = vmatpush.msrb.mxu0 %v1649_v20  ;;  %v4433_v20 = vld [vmem:[#allocation10 + $0x128] sm:$0xff] }
 0x48f   :  { %1906 = vmatpush.msrb.mxu1 %v4397_v61 }
 0x490   :  { %1746 = vmatpush.msrb.mxu3 %v1651_v39  ;;  %1789 = vmatpush.msrb.mxu0 %v1646_v5  ;;  %v4450_v5 = vld [vmem:[#allocation10 + $0xf8] sm:$0xff] }
 0x491   :  { %1907 = vmatpush.msrb.mxu1 %v4402_v37 }
 0x492   :  { %1747 = vmatpush.msrb.mxu3 %v1648_v4  ;;  %1790 = vmatpush.msrb.mxu0 %v1643_v9  ;;  %v4428_v4 = vld [vmem:[#allocation10 + $0x140] sm:$0xff] }
 0x493   :  { %1908 = vmatpush.msrb.mxu1 %v4406_v54  ;;  %v1861_v9 = vld [vmem:[#allocation10 + $0x80] sm:$0xff] }
 0x494   :  { %1748 = vmatpush.msrb.mxu3 %v1645_v12  ;;  %v4443_v12 = vld [vmem:[#allocation10 + $0x110] sm:$0xff] }
 0x495   :  { %1719 = vmatmul.f32.gmra.mxu2 %v4292_v52 }
 0x496   :  { %1749 = vmatpush.msrb.mxu3 %v1642_v31  ;;  %v1864_v31 = vld [vmem:[#allocation10 + $0x98] sm:$0xff] }
 0x49d   :  { %1722 = vmatmul.f32.gmra.mxu2 %v4320_v63 }
 0x4a5   :  { %1725 = vmatmul.f32.gmra.mxu2 %v4336_v57 }
 0x4f1   :  { %v1371_v6 = vpop.f32.mrf.mxu0  ;;  %v1391_v3 = vpop.f32.mrf.mxu1 }
 0x4f2   :  { %v1414_v25 = vadd.f32 %v1371_v6, %v5111_v13  ;;  %v1415_v44 = vadd.f32 %v1391_v3, %v266_v1  ;;  %v1639_v6 = vld [vmem:[#allocation9 + $0x8] sm:$0xff]  ;;  %v1640_v3 = vld [vmem:[#allocation9 + $0x10] sm:$0xff] }
 0x4f3   :  { %1750 = vmatpush.msrb.mxu3 %v1639_v6  ;;  %1791 = vmatpush.msrb.mxu0 %v1640_v3  ;;  %v1849_v6 = vld [vmem:[#allocation10 + $0x20] sm:$0xff]  ;;  %v1846_v3 = vld [vmem:[#allocation10 + $0x8] sm:$0xff] }
 0x4f4   :  { %v3182_v27 = vmul.f32 -1.442695, %v1414_v25  ;;  %v3183_v43 = vmul.f32 -1.442695, %v1415_v44 }
 0x4f6   :  { %3274 = vpow2.f32 %v3182_v27 }
 0x4f7   :  { %3276 = vpow2.f32 %v3183_v43 }
 0x4f8   :  { %v1411_v44 = vpop.f32.mrf.mxu2 }
 0x4f9   :  { %v1454_v14 = vadd.f32 %v4331_v50, %v1411_v44  ;;  %v4513_v44 = vld [vmem:[#allocation10 + $0x130] sm:$0xff] }
 0x4fc   :  { %v3275_v17 = vpop.eup %3274 }
 0x4fd   :  { %v3277_v48 = vpop.eup %3276  ;;  %v1422_v41 = vadd.f32 1.0, %v3275_v17 }
 0x4fe   :  { %v4399_v11 = vadd.f32 1.0, %v3277_v48 }
 0x4ff   :  { %3278 = vrcp.f32 %v1422_v41  ;;  %v1435_v51 = vand.u32 2147483648, %v1422_v41  ;;  %v1433_v25 = vand.u32 2147483647, %v1422_v41  ;;  %vm1429_vm1 = vweird.f32 %v1422_v41 }
 0x500   :  { %3280 = vrcp.f32 %v4399_v11  ;;  %v1450_v2 = vand.u32 2147483648, %v4399_v11  ;;  %vm1444_vm5 = vweird.f32 %v4399_v11  ;;  %v1448_v17 = vand.u32 2147483647, %v4399_v11 }
 0x501   :  { %v1436_v27 = vor.u32 1.1754944e-38, %v1435_v51  ;;  %vm1434_vm3 = vcmp.eq.f32.partialorder %v1433_v25, 8.507059e+37  ;;  %v4476_v51 = vld [vmem:[#allocation10 + $0x178] sm:$0xff]  ;;  %v4511_v25 = vld [vmem:[#allocation10 + $0x148] sm:$0xff] }
 0x502   :  { %v1451_v48 = vor.u32 1.1754944e-38, %v1450_v2  ;;  %vm1449_vm7 = vcmp.eq.f32.partialorder %v1448_v17, 8.507059e+37  ;;  %1933 = vmatpush.msrb.mxu2 %v4476_v51 }
 0x505   :  { %v3279_v32 = vpop.eup %3278 }
 0x506   :  { %v3281_v15 = vpop.eup %3280  ;;  %v1425_v59 = vmul.f32 %v3279_v32, %v1422_v41  ;;  %vm1430_vm0 = vweird.f32 %v3279_v32 }
 0x507   :  { %v1440_v8 = vmul.f32 %v3281_v15, %v4399_v11  ;;  %vm1431_vm2 = vmor %vm1429_vm1, %vm1430_vm0  ;;  %vm1445_vm4 = vweird.f32 %v3281_v15  ;;  %v4424_v11 = vld [vmem:[#allocation10 + $0x158] sm:$0xff] }
 0x508   :  { %v1426_v1 = vsub.f32 1.0, %v1425_v59  ;;  %vm1446_vm6 = vmor %vm1444_vm5, %vm1445_vm4  ;;  %v4459_v59 = vld [vmem:[#allocation10 + $0xc8] sm:$0xff] }
 0x509   :  { %v1441_v21 = vsub.f32 1.0, %v1440_v8  ;;  %v1855_v8 = vld [vmem:[#allocation10 + $0x50] sm:$0xff] }
 0x50a   :  { %v1427_v13 = vmul.f32 %v3279_v32, %v1426_v1  ;;  %v1858_v1 = vld [vmem:[#allocation10 + $0x68] sm:$0xff] }
 0x50b   :  { %v1442_v40 = vmul.f32 %v3281_v15, %v1441_v21 }
 0x50c   :  { %v1428_v18 = vadd.f32 %v3279_v32, %v1427_v13 }
 0x50d   :  { %v1443_v30 = vadd.f32 %v3281_v15, %v1442_v40  ;;  %v4533_v40 = vld [vmem:[#allocation10 + $0xd0] sm:$0xff] }
 0x50e   :  { %v1432_v43 = vsel %vm1431_vm2, %v3279_v32, %v1428_v18  ;;  %v4440_v32 = vld [vmem:[%s5078_s1 + $0x8] sm:$0xff]  ;;  %v4517_v18 = vld [vmem:[#allocation10 + $0x118] sm:$0xff] }
 0x50f   :  { %v1437_v7 = vsel %vm1434_vm3, %v1436_v27, %v1432_v43  ;;  %v1447_v49 = vsel %vm1446_vm6, %v3281_v15, %v1443_v30  ;;  %v4454_v15 = vld [vmem:[#allocation10 + $0xe0] sm:$0xff]  ;;  %v5114_v43 = vld [vmem:[#allocation19_spill] sm:$0xff] }
 0x510   :  { %v1455_v60 = vmul.f32 %v1454_v14, %v1437_v7  ;;  %v1452_v28 = vsel %vm1449_vm7, %v1451_v48, %v1447_v49  ;;  %v4528_v7 = vld [vmem:[#allocation10 + $0xe8] sm:$0xff]  ;;  %v4549_v49 = vld [vmem:[#allocation10 + $0xa0] sm:$0xff]  ;;  %v4559_v48 = vld [vmem:[#allocation10 + $0x70] sm:$0xff] }
 0x512   :  { %v1456_v24 = vadd.f32 %v1455_v60, %v5112_v58  ;;  %v4538_v58 = vld [vmem:[#allocation10 + $0xb8] sm:$0xff] }
 0x514   :  { %3282 = vtanh.f32 %v1456_v24 }
 0x51a   :  { %v3283_v29 = vpop.eup %3282 }
 0x51b   :  { %v1458_v41 = vsub.f32 %v4336_v57, %v3283_v29 }
 0x51d   :  { %v1459_v38 = vmul.f32 %v1458_v41, %v1452_v28  ;;  %v4564_v41 = vld [vmem:[#allocation10 + $0x58] sm:$0xff] }
 0x51f   :  { %v4416_v39 = vadd.f32 %v3283_v29, %v1459_v38  ;;  %v4553_v29 = vld [vmem:[#allocation10 + $0x88] sm:$0xff]  ;;  %v4569_v38 = vld [vmem:[#allocation10 + $0x40] sm:$0xff] }
 0x521   :  { %1531 = vmatmul.f32.vlgmr.msra.gmra.mxu3 %v4416_v39  ;;  %1551 = vmatmul.f32.vlgmr.msra.gmra.mxu0 %v4416_v39 }
 0x522   :  { %1571 = vmatmul.f32.vlgmr.msra.gmra.mxu1 %v4416_v39  ;;  %1728 = vmatmul.f32.gmra.mxu2 %v4416_v39 }
 0x523   :  { %1913 = vmatpush.msra.mxu1 %v4418_v16  ;;  %2053 = vmatpush.msra.mxu3 %v4354_v56 }
 0x524   :  { %2073 = vmatpush.msra.mxu0 %v4418_v16 }
 0x525   :  { %1914 = vmatpush.msra.mxu1 %v4424_v11  ;;  %2054 = vmatpush.msra.mxu3 %v4358_v23 }
 0x526   :  { %2074 = vmatpush.msra.mxu0 %v4424_v11 }
 0x527   :  { %1915 = vmatpush.msra.mxu1 %v4428_v4  ;;  %2055 = vmatpush.msra.mxu3 %v4361_v33 }
 0x528   :  { %2075 = vmatpush.msra.mxu0 %v4428_v4 }
 0x529   :  { %1916 = vmatpush.msra.mxu1 %v4433_v20  ;;  %1751 = vmatmul.f32.vlgmr.msrb.gmra.mxu3 %v5109_v10 }
 0x52a   :  { %1792 = vmatmul.f32.vlgmr.msrb.gmra.mxu0 %v5109_v10  ;;  %1909 = vmatmul.f32.vlgmr.msrb.gmra.mxu1 %v4440_v32  ;;  %v1867_v10 = vld [vmem:[#allocation10 + $0xb0] sm:$0xff] }
 0x52b   :  { %1917 = vmatpush.msra.mxu1 %v4443_v12  ;;  %2056 = vmatpush.msra.mxu3 %v4364_v45 }
 0x52c   :  { %2076 = vmatpush.msra.mxu0 %v4433_v20 }
 0x52d   :  { %1918 = vmatpush.msra.mxu1 %v4450_v5  ;;  %2057 = vmatpush.msra.mxu3 %v4367_v35 }
 0x52e   :  { %2077 = vmatpush.msra.mxu0 %v4443_v12 }
 0x52f   :  { %1919 = vmatpush.msra.mxu1 %v4454_v15  ;;  %2058 = vmatpush.msra.mxu3 %v4370_v47 }
 0x530   :  { %2078 = vmatpush.msra.mxu0 %v4450_v5 }
 0x531   :  { %1920 = vmatpush.msra.mxu1 %v4459_v59  ;;  %1754 = vmatmul.f32.gmra.mxu3 %v3982_v46 }
 0x532   :  { %1795 = vmatmul.f32.gmra.mxu0 %v3982_v46  ;;  %2059 = vmatpush.msra.mxu3 %v4373_v53  ;;  %v1852_v46 = vld [vmem:[#allocation10 + $0x38] sm:$0xff] }
 0x533   :  { %1921 = vmatpush.msra.mxu1 %v1867_v10  ;;  %2079 = vmatpush.msra.mxu0 %v4454_v15 }
 0x534   :  { %2060 = vmatpush.msra.mxu3 %v4378_v62 }
 0x535   :  { %1922 = vmatpush.msra.mxu1 %v1864_v31  ;;  %2080 = vmatpush.msra.mxu0 %v4459_v59 }
 0x536   :  { %2061 = vmatpush.msra.mxu3 %v4382_v26 }
 0x537   :  { %1923 = vmatpush.msra.mxu1 %v1861_v9  ;;  %2081 = vmatpush.msra.mxu0 %v1867_v10 }
 0x538   :  { %2062 = vmatpush.msra.mxu3 %v4385_v22 }
 0x539   :  { %1924 = vmatpush.msra.mxu1 %v1858_v1  ;;  %1757 = vmatmul.f32.gmra.mxu3 %v4203_v55 }
 0x53a   :  { %1798 = vmatmul.f32.gmra.mxu0 %v4203_v55  ;;  %2063 = vmatpush.msra.mxu3 %v4388_v42  ;;  %v4504_v55 = vld [vmem:[#allocation10 + $0x160] sm:$0xff] }
 0x53b   :  { %1925 = vmatpush.msra.mxu1 %v1855_v8  ;;  %2082 = vmatpush.msra.mxu0 %v1864_v31 }
 0x53c   :  { %2064 = vmatpush.msra.mxu3 %v4391_v19  ;;  %1934 = vmatpush.msrb.mxu2 %v4504_v55 }
 0x53d   :  { %1926 = vmatpush.msra.mxu1 %v1852_v46  ;;  %2083 = vmatpush.msra.mxu0 %v1861_v9 }
 0x53e   :  { %2065 = vmatpush.msra.mxu3 %v4394_v0  ;;  %1935 = vmatpush.msrb.mxu2 %v4511_v25 }
 0x53f   :  { %1927 = vmatpush.msra.mxu1 %v1849_v6  ;;  %2084 = vmatpush.msra.mxu0 %v1858_v1 }
 0x540   :  { %2066 = vmatpush.msra.mxu3 %v4397_v61  ;;  %1936 = vmatpush.msrb.mxu2 %v4513_v44 }
 0x541   :  { %1928 = vmatpush.msra.mxu1 %v1846_v3  ;;  %1760 = vmatmul.f32.gmra.mxu3 %v4292_v52 }
 0x542   :  { %1929 = vmatmul.f32.vlgmr.msra.gmra.mxu1 %v4440_v32  ;;  %1801 = vmatmul.f32.gmra.mxu0 %v4292_v52  ;;  %v5113_v52 = vld [vmem:[#allocation26_spill] sm:$0xff] }
 0x543   :  { %2093 = vmatpush.msrb.mxu1 %v4476_v51  ;;  %2067 = vmatpush.msra.mxu3 %v4402_v37 }
 0x544   :  { %2085 = vmatpush.msra.mxu0 %v1855_v8  ;;  %1937 = vmatpush.msrb.mxu2 %v4517_v18 }
 0x545   :  { %2068 = vmatpush.msra.mxu3 %v4406_v54  ;;  %2094 = vmatpush.msrb.mxu1 %v4504_v55 }
 0x546   :  { %2086 = vmatpush.msra.mxu0 %v1852_v46 }
 0x547   :  { %2233 = vmatpush.msrb.mxu3 %v4418_v16  ;;  %2095 = vmatpush.msrb.mxu1 %v4511_v25 }
 0x548   :  { %2087 = vmatpush.msra.mxu0 %v1849_v6 }
 0x549   :  { %2234 = vmatpush.msrb.mxu3 %v4424_v11  ;;  %2096 = vmatpush.msrb.mxu1 %v4513_v44 }
 0x54a   :  { %1763 = vmatmul.f32.gmra.mxu3 %v4320_v63  ;;  %1804 = vmatmul.f32.gmra.mxu0 %v4320_v63  ;;  %v269_v63 = vadd.f32 %v5113_v52, %v3915_v34  ;;  %v4522_v34 = vld [vmem:[#allocation10 + $0x100] sm:$0xff] }
 0x54b   :  { %2235 = vmatpush.msrb.mxu3 %v4428_v4  ;;  %2088 = vmatpush.msra.mxu0 %v1846_v3 }
 0x54c   :  { %2097 = vmatpush.msrb.mxu1 %v4517_v18  ;;  %1938 = vmatpush.msrb.mxu2 %v4522_v34 }
 0x54d   :  { %2253 = vmatpush.msrb.mxu0 %v4476_v51  ;;  %2236 = vmatpush.msrb.mxu3 %v4433_v20 }
 0x54e   :  { %2098 = vmatpush.msrb.mxu1 %v4522_v34  ;;  %1939 = vmatpush.msrb.mxu2 %v4528_v7 }
 0x54f   :  { %2237 = vmatpush.msrb.mxu3 %v4443_v12  ;;  %2254 = vmatpush.msrb.mxu0 %v4504_v55 }
 0x550   :  { %2099 = vmatpush.msrb.mxu1 %v4528_v7  ;;  %1940 = vmatpush.msrb.mxu2 %v4533_v40 }
 0x551   :  { %2238 = vmatpush.msrb.mxu3 %v4450_v5  ;;  %2255 = vmatpush.msrb.mxu0 %v4511_v25 }
 0x552   :  { %1766 = vmatmul.f32.gmra.mxu3 %v4336_v57  ;;  %1807 = vmatmul.f32.gmra.mxu0 %v4336_v57 }
 0x553   :  { %2239 = vmatpush.msrb.mxu3 %v4454_v15  ;;  %2256 = vmatpush.msrb.mxu0 %v4513_v44  ;;  %v4571_v15 = vld [vmem:[#allocation10 + $0x28] sm:$0xff] }
 0x554   :  { %2100 = vmatpush.msrb.mxu1 %v4533_v40  ;;  %1941 = vmatpush.msrb.mxu2 %v4538_v58 }
 0x555   :  { %2240 = vmatpush.msrb.mxu3 %v4459_v59  ;;  %2257 = vmatpush.msrb.mxu0 %v4517_v18 }
 0x556   :  { %2101 = vmatpush.msrb.mxu1 %v4538_v58  ;;  %1942 = vmatpush.msrb.mxu2 %v4549_v49 }
 0x557   :  { %2241 = vmatpush.msrb.mxu3 %v1867_v10  ;;  %2258 = vmatpush.msrb.mxu0 %v4522_v34 }
 0x558   :  { %2102 = vmatpush.msrb.mxu1 %v4549_v49  ;;  %1943 = vmatpush.msrb.mxu2 %v4553_v29 }
 0x559   :  { %2242 = vmatpush.msrb.mxu3 %v1864_v31  ;;  %2259 = vmatpush.msrb.mxu0 %v4528_v7  ;;  %v4576_v31 = vld [vmem:[#allocation10 + $0x10] sm:$0xff] }
 0x55a   :  { %1769 = vmatmul.f32.gmra.mxu3 %v4416_v39  ;;  %1810 = vmatmul.f32.gmra.mxu0 %v4416_v39 }
 0x55b   :  { %2243 = vmatpush.msrb.mxu3 %v1861_v9  ;;  %2260 = vmatpush.msrb.mxu0 %v4533_v40 }
 0x55c   :  { %2103 = vmatpush.msrb.mxu1 %v4553_v29  ;;  %1944 = vmatpush.msrb.mxu2 %v4559_v48 }
 0x55d   :  { %2244 = vmatpush.msrb.mxu3 %v1858_v1  ;;  %2261 = vmatpush.msrb.mxu0 %v4538_v58 }
 0x55e   :  { %2104 = vmatpush.msrb.mxu1 %v4559_v48  ;;  %1945 = vmatpush.msrb.mxu2 %v4564_v41 }
 0x55f   :  { %2245 = vmatpush.msrb.mxu3 %v1855_v8  ;;  %2262 = vmatpush.msrb.mxu0 %v4549_v49 }
 0x560   :  { %2105 = vmatpush.msrb.mxu1 %v4564_v41  ;;  %1946 = vmatpush.msrb.mxu2 %v4569_v38 }
 0x561   :  { %2246 = vmatpush.msrb.mxu3 %v1852_v46  ;;  %2263 = vmatpush.msrb.mxu0 %v4553_v29 }
 0x562   :  { %2106 = vmatpush.msrb.mxu1 %v4569_v38  ;;  %1947 = vmatpush.msrb.mxu2 %v4571_v15 }
 0x563   :  { %2247 = vmatpush.msrb.mxu3 %v1849_v6  ;;  %2264 = vmatpush.msrb.mxu0 %v4559_v48 }
 0x564   :  { %2107 = vmatpush.msrb.mxu1 %v4571_v15  ;;  %1948 = vmatpush.msrb.mxu2 %v4576_v31 }
 0x565   :  { %2248 = vmatpush.msrb.mxu3 %v1846_v3  ;;  %2265 = vmatpush.msrb.mxu0 %v4564_v41 }
 0x566   :  { %2108 = vmatpush.msrb.mxu1 %v4576_v31  ;;  %2213 = vmatpush.msra.mxu2 %v4354_v56 }
 0x567   :  { %2266 = vmatpush.msrb.mxu0 %v4569_v38 }
 0x568   :  { %2214 = vmatpush.msra.mxu2 %v4358_v23 }
 0x569   :  { %2267 = vmatpush.msrb.mxu0 %v4571_v15 }
 0x56a   :  { %2215 = vmatpush.msra.mxu2 %v4361_v33 }
 0x56b   :  { %2268 = vmatpush.msrb.mxu0 %v4576_v31 }
 0x56c   :  { %2216 = vmatpush.msra.mxu2 %v4364_v45 }
 0x56e   :  { %2217 = vmatpush.msra.mxu2 %v4367_v35 }
 0x570   :  { %2218 = vmatpush.msra.mxu2 %v4370_v47 }
 0x572   :  { %2219 = vmatpush.msra.mxu2 %v4373_v53  ;;  %v1711_v53 = vpop.f32.mrf.mxu2 }
 0x574   :  { %2220 = vmatpush.msra.mxu2 %v4378_v62 }
 0x576   :  { %2221 = vmatpush.msra.mxu2 %v4382_v26  ;;  %v1686_v26 = vld [vmem:[%s5085_s8] sm:$0x7] }
 0x578   :  { %2222 = vmatpush.msra.mxu2 %v4385_v22  ;;  %v4621_v22 = vperm.slane %v1686_v26, 0 }
 0x57a   :  { %2223 = vmatpush.msra.mxu2 %v4388_v42  ;;  %v4616_v62 = vpop.f32.mrf.mxu2 }
 0x57c   :  { %2224 = vmatpush.msra.mxu2 %v4391_v19 }
 0x57e   :  { %2225 = vmatpush.msra.mxu2 %v4394_v0  ;;  %v1712_v0 = vadd.f32 %v1711_v53, %v4621_v22 }
 0x580   :  { %2226 = vmatpush.msra.mxu2 %v4397_v61 }
 0x582   :  { %2227 = vmatpush.msra.mxu2 %v4402_v37  ;;  %v4623_v42 = vpop.f32.mrf.mxu2 }
 0x584   :  { %2228 = vmatpush.msra.mxu2 %v4406_v54 }
 0x58a   :  { %v4626_v37 = vpop.f32.mrf.mxu2 }
 0x59e   :  { %v1552_v57 = vpop.f32.mrf.mxu0 }
 0x59f   :  { %v1576_v13 = vadd.f32 %v1552_v57, %v269_v63  ;;  %v1572_v3 = vpop.f32.mrf.mxu1 }
 0x5a1   :  { %v3185_v21 = vmul.f32 -1.442695, %v1576_v13  ;;  %v1615_v13 = vadd.f32 %v4331_v50, %v1572_v3 }
 0x5a3   :  { %3284 = vpow2.f32 %v3185_v21 }
 0x5a4   :  { %v1532_v27 = vpop.f32.mrf.mxu3 }
 0x5a5   :  { %v1575_v14 = vadd.f32 %v1532_v27, %v5114_v43  ;;  %v5115_v43 = vld [vmem:[#allocation27_spill] sm:$0xff] }
 0x5a7   :  { %v3184_v60 = vmul.f32 -1.442695, %v1575_v14  ;;  %v310_v14 = vadd.f32 %v5115_v43, %v3937_v36  ;;  %v1910_v19 = vpop.f32.mrf.mxu1  ;;  %v4642_v43 = vld [vmem:[%s5086_s9] ss:$0 sm:$0xff] }
 0x5a8   :  { %v1953_v61 = vadd.f32 %v1910_v19, %v1712_v0 }
 0x5a9   :  { %3286 = vpow2.f32 %v3184_v60  ;;  %v3285_v24 = vpop.eup %3284 }
 0x5aa   :  { %v4547_v2 = vadd.f32 1.0, %v3285_v24  ;;  %v3186_v54 = vmul.f32 -1.442695, %v1953_v61 }
 0x5ac   :  { %v1611_v50 = vand.u32 2147483648, %v4547_v2  ;;  %vm1605_vm13 = vweird.f32 %v4547_v2  ;;  %v1609_v23 = vand.u32 2147483647, %v4547_v2 }
 0x5ae   :  { %v1612_v45 = vor.u32 1.1754944e-38, %v1611_v50  ;;  %vm1610_vm15 = vcmp.eq.f32.partialorder %v1609_v23, 8.507059e+37 }
 0x5af   :  { %v3287_v30 = vpop.eup %3286 }
 0x5b0   :  { %v1583_v17 = vadd.f32 1.0, %v3287_v30 }
 0x5b2   :  { %3288 = vrcp.f32 %v1583_v17  ;;  %v1596_v8 = vand.u32 2147483648, %v1583_v17  ;;  %v1594_v6 = vand.u32 2147483647, %v1583_v17  ;;  %vm1590_vm9 = vweird.f32 %v1583_v17 }
 0x5b3   :  { %3290 = vrcp.f32 %v4547_v2 }
 0x5b4   :  { %v1597_v57 = vor.u32 1.1754944e-38, %v1596_v8  ;;  %vm1595_vm11 = vcmp.eq.f32.partialorder %v1594_v6, 8.507059e+37 }
 0x5b8   :  { %v3289_v28 = vpop.eup %3288 }
 0x5b9   :  { %v3291_v59 = vpop.eup %3290  ;;  %v1586_v10 = vmul.f32 %v3289_v28, %v1583_v17  ;;  %vm1591_vm8 = vweird.f32 %v3289_v28 }
 0x5ba   :  { %v1601_v1 = vmul.f32 %v3291_v59, %v4547_v2  ;;  %vm1592_vm10 = vmor %vm1590_vm9, %vm1591_vm8  ;;  %vm1606_vm12 = vweird.f32 %v3291_v59 }
 0x5bb   :  { %v1587_v9 = vsub.f32 1.0, %v1586_v10  ;;  %vm1607_vm14 = vmor %vm1605_vm13, %vm1606_vm12 }
 0x5bc   :  { %v1602_v63 = vsub.f32 1.0, %v1601_v1 }
 0x5bd   :  { %v1588_v46 = vmul.f32 %v3289_v28, %v1587_v9 }
 0x5be   :  { %v1603_v60 = vmul.f32 %v3291_v59, %v1602_v63 }
 0x5bf   :  { %v1589_v52 = vadd.f32 %v3289_v28, %v1588_v46 }
 0x5c0   :  { %v1604_v30 = vadd.f32 %v3291_v59, %v1603_v60 }
 0x5c1   :  { %v1593_v21 = vsel %vm1592_vm10, %v3289_v28, %v1589_v52 }
 0x5c2   :  { %v1598_v27 = vsel %vm1595_vm11, %v1597_v57, %v1593_v21  ;;  %v1608_v36 = vsel %vm1607_vm14, %v3291_v59, %v1604_v30 }
 0x5c3   :  { %v1616_v56 = vmul.f32 %v1615_v13, %v1598_v27  ;;  %v1613_v47 = vsel %vm1610_vm15, %v1612_v45, %v1608_v36 }
 0x5c5   :  { %v1617_v24 = vadd.f32 %v1616_v56, %v310_v14  ;;  %v4644_v56 = vperm.slane %v1686_v26, 2 }
 0x5c7   :  { %3292 = vtanh.f32 %v1617_v24  ;;  %v1793_v24 = vpop.f32.mrf.mxu0 }
 0x5c8   :  { %3294 = vpow2.f32 %v3186_v54  ;;  %v1794_v45 = vadd.f32 %v1793_v24, %v4644_v56 }
 0x5cd   :  { %v3293_v33 = vpop.eup %3292 }
 0x5ce   :  { %v1619_v35 = vsub.f32 %v4416_v39, %v3293_v33  ;;  %v4628_v39 = vperm.slane %v1686_v26, 1 }
 0x5d0   :  { %v1620_v17 = vmul.f32 %v1619_v35, %v1613_v47 }
 0x5d2   :  { %v1621_v28 = vadd.f32 %v3293_v33, %v1620_v17 }
 0x5d4   :  { %1731 = vmatmul.f32.gmra.mxu2 %v1621_v28  ;;  %1772 = vmatmul.f32.gmra.mxu3 %v1621_v28 }
 0x5d5   :  { %1813 = vmatmul.f32.gmra.mxu0 %v1621_v28 }
 0x5dc   :  { %1949 = vmatmul.f32.vlgmr.msrb.gmra.mxu2 %v4440_v32 }
 0x5dd   :  { %2393 = vmatpush.msrb.mxu2 %v4418_v16  ;;  %v1752_v16 = vpop.f32.mrf.mxu3 }
 0x5df   :  { %2394 = vmatpush.msrb.mxu2 %v4424_v11  ;;  %v1930_v11 = vpop.f32.mrf.mxu1 }
 0x5e1   :  { %2395 = vmatpush.msrb.mxu2 %v4428_v4  ;;  %v1753_v4 = vadd.f32 %v1752_v16, %v4628_v39 }
 0x5e3   :  { %2396 = vmatpush.msrb.mxu2 %v4433_v20  ;;  %v3295_v20 = vpop.eup %3294 }
 0x5e4   :  { %v1961_v2 = vadd.f32 1.0, %v3295_v20 }
 0x5e5   :  { %2397 = vmatpush.msrb.mxu2 %v4443_v12  ;;  %v4631_v12 = vpop.f32.mrf.mxu2 }
 0x5e6   :  { %3296 = vrcp.f32 %v1961_v2  ;;  %v1974_v27 = vand.u32 2147483648, %v1961_v2  ;;  %vm1968_vm1 = vweird.f32 %v1961_v2  ;;  %v1972_v14 = vand.u32 2147483647, %v1961_v2 }
 0x5e7   :  { %2398 = vmatpush.msrb.mxu2 %v4450_v5  ;;  %v1954_v5 = vadd.f32 %v1930_v11, %v1753_v4 }
 0x5e8   :  { %v1975_v23 = vor.u32 1.1754944e-38, %v1974_v27  ;;  %vm1973_vm3 = vcmp.eq.f32.partialorder %v1972_v14, 8.507059e+37 }
 0x5e9   :  { %v3187_v59 = vmul.f32 -1.442695, %v1954_v5  ;;  %v1715_v5 = vadd.f32 %v4616_v62, %v4621_v22 }
 0x5eb   :  { %3298 = vpow2.f32 %v3187_v59 }
 0x5ec   :  { %v3297_v9 = vpop.eup %3296 }
 0x5ed   :  { %v4633_v10 = vpop.f32.mrf.mxu2  ;;  %v1964_v46 = vmul.f32 %v3297_v9, %v1961_v2  ;;  %vm1969_vm0 = vweird.f32 %v3297_v9 }
 0x5ee   :  { %vm1970_vm2 = vmor %vm1968_vm1, %vm1969_vm0 }
 0x5ef   :  { %v1965_v3 = vsub.f32 1.0, %v1964_v46 }
 0x5f1   :  { %v3299_v1 = vpop.eup %3298  ;;  %v1966_v52 = vmul.f32 %v3297_v9, %v1965_v3 }
 0x5f2   :  { %v1962_v8 = vadd.f32 1.0, %v3299_v1 }
 0x5f3   :  { %v1967_v13 = vadd.f32 %v3297_v9, %v1966_v52 }
 0x5f4   :  { %3300 = vrcp.f32 %v1962_v8  ;;  %v1989_v53 = vand.u32 2147483648, %v1962_v8  ;;  %vm1983_vm5 = vweird.f32 %v1962_v8  ;;  %v1987_v26 = vand.u32 2147483647, %v1962_v8 }
 0x5f5   :  { %v4635_v6 = vpop.f32.mrf.mxu2  ;;  %v1971_v60 = vsel %vm1970_vm2, %v3297_v9, %v1967_v13 }
 0x5f6   :  { %v1976_v33 = vsel %vm1973_vm3, %v1975_v23, %v1971_v60  ;;  %v1990_v61 = vor.u32 1.1754944e-38, %v1989_v53  ;;  %vm1988_vm7 = vcmp.eq.f32.partialorder %v1987_v26, 8.507059e+37 }
 0x5fa   :  { %v3301_v57 = vpop.eup %3300 }
 0x5fb   :  { %v1979_v21 = vmul.f32 %v3301_v57, %v1962_v8  ;;  %vm1984_vm4 = vweird.f32 %v3301_v57 }
 0x5fc   :  { %vm1985_vm6 = vmor %vm1983_vm5, %vm1984_vm4 }
 0x5fd   :  { %v1980_v30 = vsub.f32 1.0, %v1979_v21 }
 0x5ff   :  { %v1981_v47 = vmul.f32 %v3301_v57, %v1980_v30 }
 0x601   :  { %v1982_v28 = vadd.f32 %v3301_v57, %v1981_v47 }
 0x603   :  { %v1986_v19 = vsel %vm1985_vm6, %v3301_v57, %v1982_v28 }
 0x604   :  { %v1991_v16 = vsel %vm1988_vm7, %v1990_v61, %v1986_v19 }
 0x657   :  { %v4637_v63 = vpop.f32.mrf.mxu2 }
 0x658   :  { %5116 = vst [vmem:[#allocation16_spill] sm:$0xff] %v4637_v63 }
 0x65f   :  { %v1950_v50 = vpop.f32.mrf.mxu2 }
 0x660   :  { %v1993_v36 = vadd.f32 %v4642_v43, %v1950_v50 }
 0x662   :  { %v1994_v35 = vmul.f32 %v1993_v36, %v1976_v33 }
 0x664   :  { %v1995_v17 = vadd.f32 %v1994_v35, %v1794_v45 }
 0x666   :  { %3302 = vtanh.f32 %v1995_v17 }
 0x66c   :  { %v3303_v0 = vpop.eup %3302 }
 0x66d   :  { %v1997_v54 = vsub.f32 %v4440_v32, %v3303_v0  ;;  %v1796_v32 = vpop.f32.mrf.mxu0 }
 0x66e   :  { %v1797_v35 = vadd.f32 %v1796_v32, %v4644_v56  ;;  %v4705_v32 = vld [vmem:[#allocation10 + $0x168] sm:$0xff] }
 0x66f   :  { %v1998_v11 = vmul.f32 %v1997_v54, %v1991_v16  ;;  %2373 = vmatpush.msra.mxu1 %v4705_v32 }
 0x671   :  { %v4649_v4 = vadd.f32 %v3303_v0, %v1998_v11 }
 0x673   :  { %2069 = vmatmul.f32.vlgmr.msra.gmra.mxu3 %v4649_v4  ;;  %2089 = vmatmul.f32.vlgmr.msra.gmra.mxu0 %v4649_v4 }
 0x674   :  { %2109 = vmatmul.f32.vlgmr.msrb.gmra.mxu1 %v4649_v4  ;;  %2413 = vmatpush.msra.mxu3 %v4476_v51  ;;  %v1755_v51 = vpop.f32.mrf.mxu3 }
 0x675   :  { %2533 = vmatpush.msra.mxu0 %v4705_v32 }
 0x676   :  { %2414 = vmatpush.msra.mxu3 %v4504_v55  ;;  %v4670_v55 = vpop.f32.mrf.mxu0 }
 0x678   :  { %2415 = vmatpush.msra.mxu3 %v4511_v25 }
 0x67a   :  { %2416 = vmatpush.msra.mxu3 %v4513_v44 }
 0x67c   :  { %2417 = vmatpush.msra.mxu3 %v4517_v18  ;;  %v4672_v25 = vpop.f32.mrf.mxu3 }
 0x67e   :  { %2418 = vmatpush.msra.mxu3 %v4522_v34  ;;  %v4674_v44 = vpop.f32.mrf.mxu0 }
 0x680   :  { %2419 = vmatpush.msra.mxu3 %v4528_v7 }
 0x682   :  { %2420 = vmatpush.msra.mxu3 %v4533_v40 }
 0x684   :  { %2421 = vmatpush.msra.mxu3 %v4538_v58  ;;  %v4676_v18 = vpop.f32.mrf.mxu3 }
 0x686   :  { %2422 = vmatpush.msra.mxu3 %v4549_v49  ;;  %v4678_v34 = vpop.f32.mrf.mxu0 }
 0x688   :  { %2423 = vmatpush.msra.mxu3 %v4553_v29 }
 0x68a   :  { %2424 = vmatpush.msra.mxu3 %v4559_v48 }
 0x68c   :  { %2425 = vmatpush.msra.mxu3 %v4564_v41  ;;  %v4680_v7 = vpop.f32.mrf.mxu3 }
 0x68e   :  { %2426 = vmatpush.msra.mxu3 %v4569_v38  ;;  %v4682_v40 = vpop.f32.mrf.mxu0  ;;  %v1756_v38 = vadd.f32 %v1755_v51, %v4628_v39 }
 0x690   :  { %2427 = vmatpush.msra.mxu3 %v4571_v15 }
 0x692   :  { %2428 = vmatpush.msra.mxu3 %v4576_v31 }
 0x694   :  { %v4684_v58 = vpop.f32.mrf.mxu3 }
 0x696   :  { %v4686_v49 = vpop.f32.mrf.mxu0 }
 0x697   :  { %5117 = vst [vmem:[#allocation20_spill] sm:$0xff] %v4686_v49 }
 0x69c   :  { %v4688_v29 = vpop.f32.mrf.mxu3 }
 0x69e   :  { %v4690_v48 = vpop.f32.mrf.mxu0 }
 0x69f   :  { %5118 = vst [vmem:[#allocation17_spill] sm:$0xff] %v4690_v48  ;;  %v1800_v48 = vadd.f32 %v4670_v55, %v4644_v56  ;;  %v4830_v55 = vld [vmem:[#allocation10 + $0x178] sm:$0xff] }
 0x6a4   :  { %v4692_v41 = vpop.f32.mrf.mxu3 }
 0x6a5   :  { %5119 = vst [vmem:[#allocation24_spill] sm:$0xff] %v4692_v41 }
 0x6f0   :  { %v2090_v15 = vpop.f32.mrf.mxu0 }
 0x6f1   :  { %v2114_v31 = vadd.f32 %v2090_v15, %v1756_v38  ;;  %v2110_v24 = vpop.f32.mrf.mxu1  ;;  %v4709_v15 = vld [vmem:[#allocation10 + $0x150] sm:$0xff] }
 0x6f2   :  { %v2153_v36 = vadd.f32 %v4642_v43, %v2110_v24  ;;  %2374 = vmatpush.msra.mxu1 %v4709_v15  ;;  %2534 = vmatpush.msra.mxu0 %v4709_v15  ;;  %v4768_v24 = vld [vmem:[#allocation10 + $0x78] sm:$0xff] }
 0x6f3   :  { %v3189_v20 = vmul.f32 -1.442695, %v2114_v31  ;;  %v4719_v31 = vld [vmem:[#allocation10 + $0x120] sm:$0xff] }
 0x6f5   :  { %3304 = vpow2.f32 %v3189_v20  ;;  %v4724_v20 = vld [vmem:[#allocation10 + $0x108] sm:$0xff] }
 0x6f6   :  { %v2070_v2 = vpop.f32.mrf.mxu3 }
 0x6f7   :  { %v2113_v59 = vadd.f32 %v2070_v2, %v1715_v5  ;;  %v4729_v5 = vld [vmem:[#allocation10 + $0xf0] sm:$0xff]  ;;  %v4731_v2 = vld [vmem:[#allocation10 + $0xd8] sm:$0xff] }
 0x6f9   :  { %v3188_v9 = vmul.f32 -1.442695, %v2113_v59  ;;  %v4733_v59 = vld [vmem:[#allocation10 + $0xe0] sm:$0xff] }
 0x6fa   :  { %2399 = vmatpush.msrb.mxu2 %v4733_v59 }
 0x6fb   :  { %3306 = vpow2.f32 %v3188_v9  ;;  %v3305_v1 = vpop.eup %3304  ;;  %v4738_v9 = vld [vmem:[#allocation10 + $0xc8] sm:$0xff] }
 0x6fc   :  { %v2122_v46 = vadd.f32 1.0, %v3305_v1  ;;  %v1718_v1 = vadd.f32 %v4623_v42, %v4621_v22  ;;  %2400 = vmatpush.msrb.mxu2 %v4738_v9  ;;  %v4752_v42 = vld [vmem:[#allocation10 + $0xa8] sm:$0xff] }
 0x6fe   :  { %v2149_v26 = vand.u32 2147483648, %v2122_v46  ;;  %vm2143_vm13 = vweird.f32 %v2122_v46  ;;  %v2147_v19 = vand.u32 2147483647, %v2122_v46 }
 0x700   :  { %v2150_v54 = vor.u32 1.1754944e-38, %v2149_v26  ;;  %vm2148_vm15 = vcmp.eq.f32.partialorder %v2147_v19, 8.507059e+37  ;;  %v4800_v26 = vld [vmem:[#allocation10 + $0x18] sm:$0xff]  ;;  %v4802_v19 = vld [vmem:[#allocation10 + $0x8] sm:$0xff] }
 0x701   :  { %v3307_v8 = vpop.eup %3306 }
 0x702   :  { %v2121_v3 = vadd.f32 1.0, %v3307_v8  ;;  %v1759_v8 = vadd.f32 %v4672_v25, %v4628_v39 }
 0x704   :  { %3308 = vrcp.f32 %v2121_v3  ;;  %v2134_v14 = vand.u32 2147483648, %v2121_v3  ;;  %v2132_v62 = vand.u32 2147483647, %v2121_v3  ;;  %vm2128_vm9 = vweird.f32 %v2121_v3 }
 0x705   :  { %3310 = vrcp.f32 %v2122_v46 }
 0x706   :  { %v2135_v23 = vor.u32 1.1754944e-38, %v2134_v14  ;;  %vm2133_vm11 = vcmp.eq.f32.partialorder %v2132_v62, 8.507059e+37  ;;  %v4762_v62 = vld [vmem:[#allocation10 + $0x80] sm:$0xff] }
 0x70a   :  { %v3309_v52 = vpop.eup %3308 }
 0x70b   :  { %v3311_v57 = vpop.eup %3310  ;;  %v2124_v13 = vmul.f32 %v3309_v52, %v2121_v3  ;;  %vm2129_vm8 = vweird.f32 %v3309_v52  ;;  %v4746_v3 = vld [vmem:[#allocation10 + $0xb0] sm:$0xff] }
 0x70c   :  { %v2139_v27 = vmul.f32 %v3311_v57, %v2122_v46  ;;  %vm2130_vm10 = vmor %vm2128_vm9, %vm2129_vm8  ;;  %vm2144_vm12 = vweird.f32 %v3311_v57  ;;  %v4744_v46 = vld [vmem:[#allocation10 + $0xc0] sm:$0xff]  ;;  %2401 = vmatpush.msrb.mxu2 %v4746_v3 }
 0x70d   :  { %v2125_v21 = vsub.f32 1.0, %v2124_v13  ;;  %vm2145_vm14 = vmor %vm2143_vm13, %vm2144_vm12 }
 0x70e   :  { %v2140_v50 = vsub.f32 1.0, %v2139_v27  ;;  %v4754_v27 = vld [vmem:[#allocation10 + $0x98] sm:$0xff] }
 0x70f   :  { %v2126_v60 = vmul.f32 %v3309_v52, %v2125_v21  ;;  %2402 = vmatpush.msrb.mxu2 %v4754_v27 }
 0x710   :  { %v2141_v17 = vmul.f32 %v3311_v57, %v2140_v50  ;;  %v4776_v50 = vld [vmem:[#allocation10 + $0x60] sm:$0xff] }
 0x711   :  { %v2127_v30 = vadd.f32 %v3309_v52, %v2126_v60  ;;  %v4760_v60 = vld [vmem:[#allocation10 + $0x90] sm:$0xff]  ;;  %2403 = vmatpush.msrb.mxu2 %v4762_v62 }
 0x712   :  { %v2142_v53 = vadd.f32 %v3311_v57, %v2141_v17 }
 0x713   :  { %v2131_v33 = vsel %vm2130_vm10, %v3309_v52, %v2127_v30  ;;  %v4770_v30 = vld [vmem:[#allocation10 + $0x68] sm:$0xff] }
 0x714   :  { %v2136_v45 = vsel %vm2133_vm11, %v2135_v23, %v2131_v33  ;;  %v2146_v0 = vsel %vm2145_vm14, %v3311_v57, %v2142_v53  ;;  %v4778_v23 = vld [vmem:[#allocation10 + $0x50] sm:$0xff]  ;;  %2404 = vmatpush.msrb.mxu2 %v4770_v30  ;;  %v4786_v33 = vld [vmem:[#allocation10 + $0x38] sm:$0xff] }
 0x715   :  { %v2154_v47 = vmul.f32 %v2153_v36, %v2136_v45  ;;  %v2151_v11 = vsel %vm2148_vm15, %v2150_v54, %v2146_v0  ;;  %v4784_v36 = vld [vmem:[#allocation10 + $0x48] sm:$0xff]  ;;  %v4808_v0 = vld [vmem:[#allocation10] sm:$0xff] }
 0x716   :  { %2405 = vmatpush.msrb.mxu2 %v4778_v23 }
 0x717   :  { %v2155_v28 = vadd.f32 %v2154_v47, %v1797_v35  ;;  %v4792_v35 = vld [vmem:[#allocation10 + $0x30] sm:$0xff]  ;;  %v4794_v47 = vld [vmem:[#allocation10 + $0x20] sm:$0xff] }
 0x718   :  { %2406 = vmatpush.msrb.mxu2 %v4786_v33 }
 0x719   :  { %3312 = vtanh.f32 %v2155_v28 }
 0x71a   :  { %2407 = vmatpush.msrb.mxu2 %v4794_v47 }
 0x71c   :  { %2408 = vmatpush.msrb.mxu2 %v4802_v19 }
 0x71f   :  { %v3313_v61 = vpop.eup %3312 }
 0x720   :  { %v2157_v16 = vsub.f32 %v4649_v4, %v3313_v61  ;;  %v4714_v4 = vld [vmem:[#allocation10 + $0x138] sm:$0xff] }
 0x721   :  { %2375 = vmatpush.msra.mxu1 %v4714_v4  ;;  %2535 = vmatpush.msra.mxu0 %v4714_v4 }
 0x722   :  { %v2158_v51 = vmul.f32 %v2157_v16, %v2151_v11 }
 0x723   :  { %2376 = vmatpush.msra.mxu1 %v4719_v31  ;;  %2536 = vmatpush.msra.mxu0 %v4719_v31 }
 0x724   :  { %v4700_v38 = vadd.f32 %v3313_v61, %v2158_v51 }
 0x725   :  { %2377 = vmatpush.msra.mxu1 %v4724_v20  ;;  %2537 = vmatpush.msra.mxu0 %v4724_v20 }
 0x726   :  { %2229 = vmatmul.f32.vlgmr.msra.gmra.mxu2 %v4700_v38  ;;  %2249 = vmatmul.f32.vlgmr.msrb.gmra.mxu3 %v4700_v38 }
 0x727   :  { %2269 = vmatmul.f32.vlgmr.msrb.gmra.mxu0 %v4700_v38  ;;  %2693 = vmatpush.msrb.mxu3 %v4705_v32 }
 0x728   :  { %2378 = vmatpush.msra.mxu1 %v4729_v5  ;;  %2538 = vmatpush.msra.mxu0 %v4729_v5 }
 0x729   :  { %2694 = vmatpush.msrb.mxu3 %v4709_v15  ;;  %2573 = vmatpush.msra.mxu2 %v4830_v55 }
 0x72a   :  { %2379 = vmatpush.msra.mxu1 %v4731_v2  ;;  %2539 = vmatpush.msra.mxu0 %v4731_v2 }
 0x72b   :  { %2695 = vmatpush.msrb.mxu3 %v4714_v4 }
 0x72c   :  { %2380 = vmatpush.msra.mxu1 %v4744_v46  ;;  %2540 = vmatpush.msra.mxu0 %v4744_v46 }
 0x72d   :  { %2696 = vmatpush.msrb.mxu3 %v4719_v31 }
 0x72e   :  { %2381 = vmatpush.msra.mxu1 %v4752_v42  ;;  %2541 = vmatpush.msra.mxu0 %v4752_v42 }
 0x72f   :  { %2697 = vmatpush.msrb.mxu3 %v4724_v20 }
 0x730   :  { %2382 = vmatpush.msra.mxu1 %v4760_v60  ;;  %2542 = vmatpush.msra.mxu0 %v4760_v60 }
 0x731   :  { %2698 = vmatpush.msrb.mxu3 %v4729_v5 }
 0x732   :  { %2383 = vmatpush.msra.mxu1 %v4768_v24  ;;  %2543 = vmatpush.msra.mxu0 %v4768_v24 }
 0x733   :  { %2699 = vmatpush.msrb.mxu3 %v4731_v2 }
 0x734   :  { %2384 = vmatpush.msra.mxu1 %v4776_v50  ;;  %2544 = vmatpush.msra.mxu0 %v4776_v50 }
 0x735   :  { %2700 = vmatpush.msrb.mxu3 %v4744_v46 }
 0x736   :  { %2385 = vmatpush.msra.mxu1 %v4784_v36  ;;  %2545 = vmatpush.msra.mxu0 %v4784_v36 }
 0x737   :  { %2701 = vmatpush.msrb.mxu3 %v4752_v42 }
 0x738   :  { %2386 = vmatpush.msra.mxu1 %v4792_v35  ;;  %2546 = vmatpush.msra.mxu0 %v4792_v35 }
 0x739   :  { %2702 = vmatpush.msrb.mxu3 %v4760_v60 }
 0x73a   :  { %2387 = vmatpush.msra.mxu1 %v4800_v26  ;;  %2547 = vmatpush.msra.mxu0 %v4800_v26 }
 0x73b   :  { %2703 = vmatpush.msrb.mxu3 %v4768_v24 }
 0x73c   :  { %2388 = vmatpush.msra.mxu1 %v4808_v0  ;;  %2548 = vmatpush.msra.mxu0 %v4808_v0 }
 0x73d   :  { %2704 = vmatpush.msrb.mxu3 %v4776_v50 }
 0x73f   :  { %2705 = vmatpush.msrb.mxu3 %v4784_v36 }
 0x741   :  { %2706 = vmatpush.msrb.mxu3 %v4792_v35 }
 0x743   :  { %2707 = vmatpush.msrb.mxu3 %v4800_v26 }
 0x745   :  { %2708 = vmatpush.msrb.mxu3 %v4808_v0 }
 0x7a9   :  { %v2230_v52 = vpop.f32.mrf.mxu2  ;;  %v2250_v57 = vpop.f32.mrf.mxu3 }
 0x7aa   :  { %v2273_v13 = vadd.f32 %v2230_v52, %v1718_v1  ;;  %v2274_v21 = vadd.f32 %v2250_v57, %v1759_v8  ;;  %v2270_v57 = vpop.f32.mrf.mxu0 }
 0x7ac   :  { %v3190_v25 = vmul.f32 -1.442695, %v2273_v13  ;;  %v3191_v14 = vmul.f32 -1.442695, %v2274_v21 }
 0x7ae   :  { %3314 = vpow2.f32 %v3190_v25 }
 0x7af   :  { %3316 = vpow2.f32 %v3191_v14  ;;  %v2313_v14 = vadd.f32 %v4642_v43, %v2270_v57 }
 0x7b4   :  { %v3315_v45 = vpop.eup %3314 }
 0x7b5   :  { %v3317_v17 = vpop.eup %3316  ;;  %v2281_v28 = vadd.f32 1.0, %v3315_v45 }
 0x7b6   :  { %v2282_v53 = vadd.f32 1.0, %v3317_v17 }
 0x7b7   :  { %3318 = vrcp.f32 %v2281_v28  ;;  %v2294_v51 = vand.u32 2147483648, %v2281_v28  ;;  %v2292_v52 = vand.u32 2147483647, %v2281_v28  ;;  %vm2288_vm1 = vweird.f32 %v2281_v28 }
 0x7b8   :  { %3320 = vrcp.f32 %v2282_v53  ;;  %v2309_v49 = vand.u32 2147483648, %v2282_v53  ;;  %vm2303_vm5 = vweird.f32 %v2282_v53 }
 0x7b9   :  { %v2295_v21 = vor.u32 1.1754944e-38, %v2294_v51  ;;  %vm2293_vm3 = vcmp.eq.f32.partialorder %v2292_v52, 8.507059e+37 }
 0x7bd   :  { %v3319_v61 = vpop.eup %3318 }
 0x7be   :  { %v3321_v54 = vpop.eup %3320  ;;  %v2284_v16 = vmul.f32 %v3319_v61, %v2281_v28  ;;  %vm2289_vm0 = vweird.f32 %v3319_v61  ;;  %v2307_v28 = vand.u32 2147483647, %v2282_v53 }
 0x7bf   :  { %v2299_v1 = vmul.f32 %v3321_v54, %v2282_v53  ;;  %vm2290_vm2 = vmor %vm2288_vm1, %vm2289_vm0  ;;  %vm2304_vm4 = vweird.f32 %v3321_v54  ;;  %v4850_v53 = vld [vmem:[#allocation10 + $0x128] sm:$0xff] }
 0x7c0   :  { %v2285_v11 = vsub.f32 1.0, %v2284_v16  ;;  %vm2305_vm6 = vmor %vm2303_vm5, %vm2304_vm4  ;;  %vm2308_vm7 = vcmp.eq.f32.partialorder %v2307_v28, 8.507059e+37 }
 0x7c1   :  { %v2300_v25 = vsub.f32 1.0, %v2299_v1 }
 0x7c2   :  { %v2286_v8 = vmul.f32 %v3319_v61, %v2285_v11 }
 0x7c3   :  { %v2301_v41 = vmul.f32 %v3321_v54, %v2300_v25  ;;  %v4860_v25 = vld [vmem:[#allocation10 + $0x118] sm:$0xff] }
 0x7c4   :  { %v2287_v13 = vadd.f32 %v3319_v61, %v2286_v8  ;;  %v2310_v8 = vor.u32 1.1754944e-38, %v2309_v49  ;;  %v4834_v49 = vld [vmem:[#allocation10 + $0x158] sm:$0xff] }
 0x7c5   :  { %v2302_v11 = vadd.f32 %v3321_v54, %v2301_v41  ;;  %v4842_v41 = vld [vmem:[#allocation10 + $0x140] sm:$0xff] }
 0x7c6   :  { %v2291_v45 = vsel %vm2290_vm2, %v3319_v61, %v2287_v13 }
 0x7c7   :  { %v2296_v17 = vsel %vm2293_vm3, %v2295_v21, %v2291_v45  ;;  %v2306_v51 = vsel %vm2305_vm6, %v3321_v54, %v2302_v11  ;;  %v4852_v54 = vld [vmem:[#allocation10 + $0x130] sm:$0xff]  ;;  %v4868_v45 = vld [vmem:[#allocation10 + $0x100] sm:$0xff] }
 0x7c8   :  { %v2314_v16 = vmul.f32 %v2313_v14, %v2296_v17  ;;  %v2311_v52 = vsel %vm2308_vm7, %v2310_v8, %v2306_v51  ;;  %v4858_v21 = vld [vmem:[#allocation10 + $0x110] sm:$0xff]  ;;  %v4866_v14 = vld [vmem:[#allocation10 + $0xf8] sm:$0xff]  ;;  %v1721_v17 = vadd.f32 %v4626_v37, %v4621_v22  ;;  %v1762_v8 = vadd.f32 %v4676_v18, %v4628_v39 }
 0x7c9   :  { %v4882_v51 = vld [vmem:[#allocation10 + $0xd0] sm:$0xff] }
 0x7ca   :  { %v2315_v63 = vadd.f32 %v2314_v16, %v1800_v48  ;;  %v4836_v48 = vld [vmem:[#allocation10 + $0x160] sm:$0xff]  ;;  %v4876_v16 = vld [vmem:[#allocation10 + $0xe8] sm:$0xff] }
 0x7cb   :  { %2574 = vmatpush.msra.mxu2 %v4836_v48 }
 0x7cc   :  { %3322 = vtanh.f32 %v2315_v63  ;;  %v4828_v63 = vld [vmem:[#allocation10 + $0x170] sm:$0xff] }
 0x7cd   :  { %2553 = vmatpush.msrb.mxu1 %v4828_v63  ;;  %2713 = vmatpush.msrb.mxu0 %v4828_v63 }
 0x7cf   :  { %2554 = vmatpush.msrb.mxu1 %v4834_v49  ;;  %2714 = vmatpush.msrb.mxu0 %v4834_v49 }
 0x7d1   :  { %2555 = vmatpush.msrb.mxu1 %v4842_v41  ;;  %2715 = vmatpush.msrb.mxu0 %v4842_v41 }
 0x7d2   :  { %v3323_v1 = vpop.eup %3322 }
 0x7d3   :  { %v2317_v61 = vsub.f32 %v4700_v38, %v3323_v1  ;;  %v4844_v38 = vld [vmem:[#allocation10 + $0x148] sm:$0xff]  ;;  %2556 = vmatpush.msrb.mxu1 %v4850_v53  ;;  %2716 = vmatpush.msrb.mxu0 %v4850_v53 }
 0x7d4   :  { %2575 = vmatpush.msra.mxu2 %v4844_v38 }
 0x7d5   :  { %v2318_v57 = vmul.f32 %v2317_v61, %v2311_v52  ;;  %2557 = vmatpush.msrb.mxu1 %v4858_v21  ;;  %2717 = vmatpush.msrb.mxu0 %v4858_v21  ;;  %v4902_v52 = vld [vmem:[#allocation10 + $0x88] sm:$0xff] }
 0x7d6   :  { %2576 = vmatpush.msra.mxu2 %v4852_v54 }
 0x7d7   :  { %v4823_v13 = vadd.f32 %v3323_v1, %v2318_v57  ;;  %2558 = vmatpush.msrb.mxu1 %v4866_v14  ;;  %2718 = vmatpush.msrb.mxu0 %v4866_v14  ;;  %v4888_v1 = vld [vmem:[#allocation10 + $0xb8] sm:$0xff]  ;;  %v4908_v57 = vld [vmem:[#allocation10 + $0x70] sm:$0xff] }
 0x7d8   :  { %2577 = vmatpush.msra.mxu2 %v4860_v25 }
 0x7d9   :  { %2389 = vmatmul.f32.vlgmr.msra.gmra.mxu1 %v4823_v13  ;;  %2409 = vmatmul.f32.vlgmr.msrb.gmra.mxu2 %v4823_v13 }
 0x7da   :  { %2429 = vmatmul.f32.vlgmr.msra.gmra.mxu3 %v4823_v13  ;;  %2578 = vmatpush.msra.mxu2 %v4868_v45 }
 0x7db   :  { %2873 = vmatpush.msra.mxu3 %v4828_v63  ;;  %2559 = vmatpush.msrb.mxu1 %v4733_v59 }
 0x7dc   :  { %2579 = vmatpush.msra.mxu2 %v4876_v16  ;;  %2719 = vmatpush.msrb.mxu0 %v4733_v59 }
 0x7dd   :  { %2874 = vmatpush.msra.mxu3 %v4834_v49  ;;  %2560 = vmatpush.msrb.mxu1 %v4738_v9 }
 0x7de   :  { %2580 = vmatpush.msra.mxu2 %v4882_v51  ;;  %2720 = vmatpush.msrb.mxu0 %v4738_v9 }
 0x7df   :  { %2875 = vmatpush.msra.mxu3 %v4842_v41  ;;  %2561 = vmatpush.msrb.mxu1 %v4746_v3 }
 0x7e0   :  { %2581 = vmatpush.msra.mxu2 %v4888_v1  ;;  %2721 = vmatpush.msrb.mxu0 %v4746_v3 }
 0x7e1   :  { %2876 = vmatpush.msra.mxu3 %v4850_v53  ;;  %2562 = vmatpush.msrb.mxu1 %v4754_v27 }
 0x7e2   :  { %2722 = vmatpush.msrb.mxu0 %v4754_v27 }
 0x7e3   :  { %2877 = vmatpush.msra.mxu3 %v4858_v21  ;;  %2563 = vmatpush.msrb.mxu1 %v4762_v62 }
 0x7e4   :  { %2723 = vmatpush.msrb.mxu0 %v4762_v62 }
 0x7e5   :  { %2878 = vmatpush.msra.mxu3 %v4866_v14  ;;  %2564 = vmatpush.msrb.mxu1 %v4770_v30 }
 0x7e6   :  { %2724 = vmatpush.msrb.mxu0 %v4770_v30 }
 0x7e7   :  { %2879 = vmatpush.msra.mxu3 %v4733_v59  ;;  %v4896_v59 = vld [vmem:[#allocation10 + $0xa0] sm:$0xff]  ;;  %2565 = vmatpush.msrb.mxu1 %v4778_v23 }
 0x7e8   :  { %2582 = vmatpush.msra.mxu2 %v4896_v59  ;;  %2725 = vmatpush.msrb.mxu0 %v4778_v23 }
 0x7e9   :  { %2880 = vmatpush.msra.mxu3 %v4738_v9  ;;  %2566 = vmatpush.msrb.mxu1 %v4786_v33 }
 0x7ea   :  { %2583 = vmatpush.msra.mxu2 %v4902_v52  ;;  %2726 = vmatpush.msrb.mxu0 %v4786_v33 }
 0x7eb   :  { %2881 = vmatpush.msra.mxu3 %v4746_v3  ;;  %v4914_v3 = vld [vmem:[#allocation10 + $0x58] sm:$0xff]  ;;  %2567 = vmatpush.msrb.mxu1 %v4794_v47 }
 0x7ec   :  { %2584 = vmatpush.msra.mxu2 %v4908_v57  ;;  %2727 = vmatpush.msrb.mxu0 %v4794_v47 }
 0x7ed   :  { %2882 = vmatpush.msra.mxu3 %v4754_v27  ;;  %v4916_v27 = vld [vmem:[#allocation10 + $0x40] sm:$0xff]  ;;  %2568 = vmatpush.msrb.mxu1 %v4802_v19 }
 0x7ee   :  { %2585 = vmatpush.msra.mxu2 %v4914_v3  ;;  %2728 = vmatpush.msrb.mxu0 %v4802_v19 }
 0x7ef   :  { %2883 = vmatpush.msra.mxu3 %v4762_v62  ;;  %v4922_v62 = vld [vmem:[#allocation10 + $0x28] sm:$0xff]  ;;  %2733 = vmatpush.msra.mxu1 %v4830_v55 }
 0x7f0   :  { %2586 = vmatpush.msra.mxu2 %v4916_v27 }
 0x7f1   :  { %2884 = vmatpush.msra.mxu3 %v4770_v30  ;;  %2734 = vmatpush.msra.mxu1 %v4836_v48 }
 0x7f2   :  { %2587 = vmatpush.msra.mxu2 %v4922_v62 }
 0x7f3   :  { %2885 = vmatpush.msra.mxu3 %v4778_v23  ;;  %2735 = vmatpush.msra.mxu1 %v4844_v38 }
 0x7f5   :  { %2886 = vmatpush.msra.mxu3 %v4786_v33  ;;  %2736 = vmatpush.msra.mxu1 %v4852_v54 }
 0x7f7   :  { %2887 = vmatpush.msra.mxu3 %v4794_v47  ;;  %2737 = vmatpush.msra.mxu1 %v4860_v25 }
 0x7f9   :  { %2888 = vmatpush.msra.mxu3 %v4802_v19  ;;  %2738 = vmatpush.msra.mxu1 %v4868_v45 }
 0x7fb   :  { %2739 = vmatpush.msra.mxu1 %v4876_v16 }
 0x7fd   :  { %2740 = vmatpush.msra.mxu1 %v4882_v51 }
 0x7ff   :  { %2741 = vmatpush.msra.mxu1 %v4888_v1 }
 0x801   :  { %2742 = vmatpush.msra.mxu1 %v4896_v59 }
 0x803   :  { %2743 = vmatpush.msra.mxu1 %v4902_v52 }
 0x805   :  { %2744 = vmatpush.msra.mxu1 %v4908_v57 }
 0x807   :  { %2745 = vmatpush.msra.mxu1 %v4914_v3 }
 0x809   :  { %2746 = vmatpush.msra.mxu1 %v4916_v27 }
 0x80b   :  { %2747 = vmatpush.msra.mxu1 %v4922_v62 }
 0x856   :  { %v2390_v11 = vpop.f32.mrf.mxu1 }
 0x857   :  { %v2433_v28 = vadd.f32 %v2390_v11, %v1721_v17 }
 0x859   :  { %v3192_v37 = vmul.f32 -1.442695, %v2433_v28  ;;  %v4928_v28 = vld [vmem:[#allocation10 + $0x10] sm:$0xff] }
 0x85a   :  { %2588 = vmatpush.msra.mxu2 %v4928_v28  ;;  %2748 = vmatpush.msra.mxu1 %v4928_v28 }
 0x85b   :  { %3324 = vpow2.f32 %v3192_v37 }
 0x85c   :  { %v2410_v61 = vpop.f32.mrf.mxu2  ;;  %2853 = vmatpush.msrb.mxu2 %v4705_v32 }
 0x85d   :  { %v2434_v9 = vadd.f32 %v2410_v61, %v1762_v8  ;;  %v2430_v32 = vpop.f32.mrf.mxu3 }
 0x85e   :  { %2854 = vmatpush.msrb.mxu2 %v4709_v15 }
 0x85f   :  { %v3193_v18 = vmul.f32 -1.442695, %v2434_v9 }
 0x860   :  { %2855 = vmatpush.msrb.mxu2 %v4714_v4 }
 0x861   :  { %v3325_v17 = vpop.eup %3324  ;;  %3326 = vpow2.f32 %v3193_v18 }
 0x862   :  { %v2441_v11 = vadd.f32 1.0, %v3325_v17  ;;  %2856 = vmatpush.msrb.mxu2 %v4719_v31  ;;  %v1803_v31 = vadd.f32 %v4674_v44, %v4644_v56 }
 0x864   :  { %3328 = vrcp.f32 %v2441_v11  ;;  %v2454_v8 = vand.u32 2147483648, %v2441_v11  ;;  %v2452_v9 = vand.u32 2147483647, %v2441_v11  ;;  %vm2448_vm9 = vweird.f32 %v2441_v11  ;;  %2857 = vmatpush.msrb.mxu2 %v4724_v20 }
 0x866   :  { %v2455_v15 = vor.u32 1.1754944e-38, %v2454_v8  ;;  %vm2453_vm11 = vcmp.eq.f32.partialorder %v2452_v9, 8.507059e+37  ;;  %2858 = vmatpush.msrb.mxu2 %v4729_v5 }
 0x867   :  { %v3327_v30 = vpop.eup %3326 }
 0x868   :  { %v2442_v23 = vadd.f32 1.0, %v3327_v30  ;;  %2859 = vmatpush.msrb.mxu2 %v4731_v2 }
 0x86a   :  { %v3329_v37 = vpop.eup %3328  ;;  %3330 = vrcp.f32 %v2442_v23  ;;  %2860 = vmatpush.msrb.mxu2 %v4744_v46  ;;  %v2469_v5 = vand.u32 2147483648, %v2442_v23  ;;  %vm2463_vm13 = vweird.f32 %v2442_v23  ;;  %v2467_v44 = vand.u32 2147483647, %v2442_v23 }
 0x86b   :  { %v2444_v33 = vmul.f32 %v3329_v37, %v2441_v11  ;;  %vm2449_vm8 = vweird.f32 %v3329_v37 }
 0x86c   :  { %vm2450_vm10 = vmor %vm2448_vm9, %vm2449_vm8  ;;  %2861 = vmatpush.msrb.mxu2 %v4752_v42  ;;  %v2470_v8 = vor.u32 1.1754944e-38, %v2469_v5  ;;  %vm2468_vm15 = vcmp.eq.f32.partialorder %v2467_v44, 8.507059e+37 }
 0x86d   :  { %v2445_v47 = vsub.f32 1.0, %v2444_v33  ;;  %v2473_v33 = vadd.f32 %v4642_v43, %v2430_v32 }
 0x86e   :  { %2862 = vmatpush.msrb.mxu2 %v4760_v60 }
 0x86f   :  { %v2446_v61 = vmul.f32 %v3329_v37, %v2445_v47 }
 0x870   :  { %v3331_v18 = vpop.eup %3330  ;;  %2863 = vmatpush.msrb.mxu2 %v4768_v24  ;;  %v1724_v24 = vadd.f32 %v4631_v12, %v4621_v22 }
 0x871   :  { %v2459_v19 = vmul.f32 %v3331_v18, %v2442_v23  ;;  %v2447_v17 = vadd.f32 %v3329_v37, %v2446_v61  ;;  %vm2464_vm12 = vweird.f32 %v3331_v18 }
 0x872   :  { %vm2465_vm14 = vmor %vm2463_vm13, %vm2464_vm12  ;;  %2864 = vmatpush.msrb.mxu2 %v4776_v50  ;;  %v1765_v50 = vadd.f32 %v4680_v7, %v4628_v39 }
 0x873   :  { %v2460_v30 = vsub.f32 1.0, %v2459_v19  ;;  %v2451_v4 = vsel %vm2450_vm10, %v3329_v37, %v2447_v17 }
 0x874   :  { %v2456_v47 = vsel %vm2453_vm11, %v2455_v15, %v2451_v4  ;;  %2865 = vmatpush.msrb.mxu2 %v4784_v36 }
 0x875   :  { %v2474_v11 = vmul.f32 %v2473_v33, %v2456_v47  ;;  %v2461_v61 = vmul.f32 %v3331_v18, %v2460_v30 }
 0x876   :  { %2866 = vmatpush.msrb.mxu2 %v4792_v35 }
 0x877   :  { %v2475_v20 = vadd.f32 %v2474_v11, %v1803_v31  ;;  %v2462_v37 = vadd.f32 %v3331_v18, %v2461_v61 }
 0x878   :  { %2867 = vmatpush.msrb.mxu2 %v4800_v26 }
 0x879   :  { %3332 = vtanh.f32 %v2475_v20  ;;  %v2466_v2 = vsel %vm2465_vm14, %v3331_v18, %v2462_v37  ;;  %v1806_v20 = vadd.f32 %v4678_v34, %v4644_v56  ;;  %v1768_v34 = vadd.f32 %v4684_v58, %v4628_v39 }
 0x87a   :  { %v2471_v9 = vsel %vm2468_vm15, %v2470_v8, %v2466_v2  ;;  %2868 = vmatpush.msrb.mxu2 %v4808_v0 }
 0x87f   :  { %v3333_v46 = vpop.eup %3332 }
 0x880   :  { %v2477_v42 = vsub.f32 %v4823_v13, %v3333_v46 }
 0x882   :  { %v2478_v23 = vmul.f32 %v2477_v42, %v2471_v9 }
 0x884   :  { %v4971_v60 = vadd.f32 %v3333_v46, %v2478_v23 }
 0x886   :  { %2549 = vmatmul.f32.vlgmr.msra.gmra.mxu0 %v4971_v60  ;;  %2569 = vmatmul.f32.vlgmr.msrb.gmra.mxu1 %v4971_v60 }
 0x887   :  { %2589 = vmatmul.f32.vlgmr.msra.gmra.mxu2 %v4971_v60  ;;  %2893 = vmatpush.msra.mxu0 %v4830_v55 }
 0x888   :  { %3033 = vmatpush.msra.mxu2 %v4828_v63 }
 0x889   :  { %2894 = vmatpush.msra.mxu0 %v4836_v48 }
 0x88a   :  { %3034 = vmatpush.msra.mxu2 %v4834_v49 }
 0x88b   :  { %2895 = vmatpush.msra.mxu0 %v4844_v38 }
 0x88c   :  { %3035 = vmatpush.msra.mxu2 %v4842_v41 }
 0x88d   :  { %2896 = vmatpush.msra.mxu0 %v4852_v54 }
 0x88e   :  { %3036 = vmatpush.msra.mxu2 %v4850_v53 }
 0x88f   :  { %2897 = vmatpush.msra.mxu0 %v4860_v25 }
 0x890   :  { %3037 = vmatpush.msra.mxu2 %v4858_v21 }
 0x891   :  { %2898 = vmatpush.msra.mxu0 %v4868_v45 }
 0x892   :  { %3038 = vmatpush.msra.mxu2 %v4866_v14 }
 0x893   :  { %2899 = vmatpush.msra.mxu0 %v4876_v16 }
 0x895   :  { %2900 = vmatpush.msra.mxu0 %v4882_v51 }
 0x897   :  { %2901 = vmatpush.msra.mxu0 %v4888_v1 }
 0x899   :  { %2902 = vmatpush.msra.mxu0 %v4896_v59 }
 0x89b   :  { %2903 = vmatpush.msra.mxu0 %v4902_v52 }
 0x89d   :  { %2904 = vmatpush.msra.mxu0 %v4908_v57 }
 0x89f   :  { %2905 = vmatpush.msra.mxu0 %v4914_v3 }
 0x8a1   :  { %2906 = vmatpush.msra.mxu0 %v4916_v27 }
 0x8a3   :  { %2907 = vmatpush.msra.mxu0 %v4922_v62 }
 0x8a5   :  { %2908 = vmatpush.msra.mxu0 %v4928_v28 }
 0x903   :  { %v2550_v36 = vpop.f32.mrf.mxu0  ;;  %v2570_v35 = vpop.f32.mrf.mxu1 }
 0x904   :  { %v2593_v26 = vadd.f32 %v2550_v36, %v1724_v24  ;;  %v2594_v0 = vadd.f32 %v2570_v35, %v1765_v50 }
 0x906   :  { %v3194_v13 = vmul.f32 -1.442695, %v2593_v26  ;;  %v3195_v63 = vmul.f32 -1.442695, %v2594_v0 }
 0x908   :  { %3334 = vpow2.f32 %v3194_v13 }
 0x909   :  { %3336 = vpow2.f32 %v3195_v63  ;;  %v5039_v63 = vld [vmem:[%s5086_s9] ss:$0 sm:$0xff] }
 0x90a   :  { %v2590_v30 = vpop.f32.mrf.mxu2 }
 0x90b   :  { %v2633_v11 = vadd.f32 %v4642_v43, %v2590_v30 }
 0x90e   :  { %v3335_v49 = vpop.eup %3334 }
 0x90f   :  { %v3337_v41 = vpop.eup %3336  ;;  %v2601_v53 = vadd.f32 1.0, %v3335_v49 }
 0x910   :  { %v2602_v21 = vadd.f32 1.0, %v3337_v41 }
 0x911   :  { %3338 = vrcp.f32 %v2601_v53  ;;  %v2614_v7 = vand.u32 2147483648, %v2601_v53  ;;  %v2612_v15 = vand.u32 2147483647, %v2601_v53  ;;  %vm2608_vm1 = vweird.f32 %v2601_v53 }
 0x912   :  { %3340 = vrcp.f32 %v2602_v21  ;;  %v2629_v46 = vand.u32 2147483648, %v2602_v21  ;;  %vm2623_vm5 = vweird.f32 %v2602_v21  ;;  %v2627_v8 = vand.u32 2147483647, %v2602_v21 }
 0x913   :  { %v2615_v47 = vor.u32 1.1754944e-38, %v2614_v7  ;;  %vm2613_vm3 = vcmp.eq.f32.partialorder %v2612_v15, 8.507059e+37 }
 0x914   :  { %v2630_v23 = vor.u32 1.1754944e-38, %v2629_v46  ;;  %vm2628_vm7 = vcmp.eq.f32.partialorder %v2627_v8, 8.507059e+37  ;;  %v2990_v46 = vld [vmem:[#allocation10 + $0xc8] sm:$0xff]  ;;  %v1730_v8 = vadd.f32 %v4635_v6, %v4621_v22  ;;  %v2980_v6 = vld [vmem:[#allocation10 + $0x78] sm:$0xff] }
 0x917   :  { %v3339_v14 = vpop.eup %3338 }
 0x918   :  { %v3341_v18 = vpop.eup %3340  ;;  %v2604_v12 = vmul.f32 %v3339_v14, %v2601_v53  ;;  %vm2609_vm0 = vweird.f32 %v3339_v14 }
 0x919   :  { %v2619_v19 = vmul.f32 %v3341_v18, %v2602_v21  ;;  %vm2610_vm2 = vmor %vm2608_vm1, %vm2609_vm0  ;;  %vm2624_vm4 = vweird.f32 %v3341_v18  ;;  %v1809_v21 = vadd.f32 %v4682_v40, %v4644_v56  ;;  %v3010_v40 = vld [vmem:[#allocation10 + $0x168] sm:$0xff] }
 0x91a   :  { %v2605_v32 = vsub.f32 1.0, %v2604_v12  ;;  %vm2625_vm6 = vmor %vm2623_vm5, %vm2624_vm4  ;;  %3013 = vmatpush.msrb.mxu1 %v3010_v40 }
 0x91b   :  { %v2620_v33 = vsub.f32 1.0, %v2619_v19 }
 0x91c   :  { %v2606_v17 = vmul.f32 %v3339_v14, %v2605_v32 }
 0x91d   :  { %v2621_v5 = vmul.f32 %v3341_v18, %v2620_v33 }
 0x91e   :  { %v2607_v4 = vadd.f32 %v3339_v14, %v2606_v17 }
 0x91f   :  { %v2622_v2 = vadd.f32 %v3341_v18, %v2621_v5  ;;  %v2995_v5 = vld [vmem:[#allocation10 + $0xf0] sm:$0xff] }
 0x920   :  { %v2611_v31 = vsel %vm2610_vm2, %v3339_v14, %v2607_v4 }
 0x921   :  { %v2616_v61 = vsel %vm2613_vm3, %v2615_v47, %v2611_v31  ;;  %v2626_v42 = vsel %vm2625_vm6, %v3341_v18, %v2622_v2  ;;  %v2993_v2 = vld [vmem:[#allocation10 + $0xe0] sm:$0xff] }
 0x922   :  { %v2634_v37 = vmul.f32 %v2633_v11, %v2616_v61  ;;  %v2631_v24 = vsel %vm2628_vm7, %v2630_v23, %v2626_v42  ;;  %v3007_v11 = vld [vmem:[#allocation10 + $0x150] sm:$0xff]  ;;  %v3004_v61 = vld [vmem:[#allocation10 + $0x138] sm:$0xff]  ;;  %3039 = vmatpush.msra.mxu2 %v2993_v2  ;;  %v1771_v42 = vadd.f32 %v4688_v29, %v4628_v39  ;;  %v2978_v29 = vld [vmem:[#allocation10 + $0x68] sm:$0xff] }
 0x923   :  { %3014 = vmatpush.msrb.mxu1 %v3007_v11  ;;  %v2987_v23 = vld [vmem:[#allocation10 + $0xb0] sm:$0xff] }
 0x924   :  { %v2635_v44 = vadd.f32 %v2634_v37, %v1806_v20  ;;  %v3001_v20 = vld [vmem:[#allocation10 + $0x120] sm:$0xff]  ;;  %v2998_v37 = vld [vmem:[#allocation10 + $0x108] sm:$0xff]  ;;  %3040 = vmatpush.msra.mxu2 %v2990_v46 }
 0x925   :  { %3015 = vmatpush.msrb.mxu1 %v3004_v61 }
 0x926   :  { %3342 = vtanh.f32 %v2635_v44  ;;  %v2992_v44 = vld [vmem:[#allocation10 + $0xd8] sm:$0xff]  ;;  %3041 = vmatpush.msra.mxu2 %v2987_v23  ;;  %v3134_v23 = vld [vmem:[#allocation12 + $0x60] sm:$0xff] }
 0x927   :  { %3016 = vmatpush.msrb.mxu1 %v3001_v20 }
 0x929   :  { %3017 = vmatpush.msrb.mxu1 %v2998_v37 }
 0x92b   :  { %3018 = vmatpush.msrb.mxu1 %v2995_v5 }
 0x92c   :  { %v3343_v9 = vpop.eup %3342 }
 0x92d   :  { %v2637_v43 = vsub.f32 %v4971_v60, %v3343_v9  ;;  %3019 = vmatpush.msrb.mxu1 %v2992_v44 }
 0x92f   :  { %v2638_v50 = vmul.f32 %v2637_v43, %v2631_v24 }
 0x931   :  { %v5011_v36 = vadd.f32 %v3343_v9, %v2638_v50  ;;  %v2989_v9 = vld [vmem:[#allocation10 + $0xc0] sm:$0xff] }
 0x932   :  { %3020 = vmatpush.msrb.mxu1 %v2989_v9  ;;  %v3135_v9 = vld [vmem:[#allocation12 + $0x68] sm:$0xff] }
 0x933   :  { %2709 = vmatmul.f32.vlgmr.msrb.gmra.mxu3 %v5011_v36  ;;  %2729 = vmatmul.f32.vlgmr.msrb.gmra.mxu0 %v5011_v36 }
 0x934   :  { %2749 = vmatmul.f32.vlgmr.msra.gmra.mxu1 %v5011_v36  ;;  %3053 = vmatpush.msrb.mxu3 %v4830_v55 }
 0x936   :  { %3054 = vmatpush.msrb.mxu3 %v4836_v48 }
 0x938   :  { %3055 = vmatpush.msrb.mxu3 %v4844_v38 }
 0x93a   :  { %3056 = vmatpush.msrb.mxu3 %v4852_v54  ;;  %v1727_v54 = vadd.f32 %v4633_v10, %v4621_v22 }
 0x93c   :  { %3057 = vmatpush.msrb.mxu3 %v4860_v25 }
 0x93e   :  { %3058 = vmatpush.msrb.mxu3 %v4868_v45 }
 0x940   :  { %3059 = vmatpush.msrb.mxu3 %v4876_v16 }
 0x942   :  { %3060 = vmatpush.msrb.mxu3 %v4882_v51 }
 0x944   :  { %3061 = vmatpush.msrb.mxu3 %v4888_v1 }
 0x946   :  { %3062 = vmatpush.msrb.mxu3 %v4896_v59 }
 0x948   :  { %3063 = vmatpush.msrb.mxu3 %v4902_v52 }
 0x94a   :  { %3064 = vmatpush.msrb.mxu3 %v4908_v57 }
 0x94c   :  { %3065 = vmatpush.msrb.mxu3 %v4914_v3 }
 0x94e   :  { %3066 = vmatpush.msrb.mxu3 %v4916_v27 }
 0x950   :  { %3067 = vmatpush.msrb.mxu3 %v4922_v62 }
 0x952   :  { %3068 = vmatpush.msrb.mxu3 %v4928_v28 }
 0x9b0   :  { %v2730_v55 = vpop.f32.mrf.mxu0 }
 0x9b1   :  { %v2754_v48 = vadd.f32 %v2730_v55, %v1768_v34  ;;  %v2750_v35 = vpop.f32.mrf.mxu1  ;;  %v2986_v34 = vld [vmem:[#allocation10 + $0xa8] sm:$0xff]  ;;  %v2984_v55 = vld [vmem:[#allocation10 + $0x98] sm:$0xff] }
 0x9b2   :  { %v2793_v49 = vadd.f32 %v5039_v63, %v2750_v35  ;;  %3021 = vmatpush.msrb.mxu1 %v2986_v34  ;;  %3042 = vmatpush.msra.mxu2 %v2984_v55 }
 0x9b3   :  { %v3197_v38 = vmul.f32 -1.442695, %v2754_v48 }
 0x9b5   :  { %3344 = vpow2.f32 %v3197_v38 }
 0x9b6   :  { %v2710_v25 = vpop.f32.mrf.mxu3 }
 0x9b7   :  { %v2753_v45 = vadd.f32 %v2710_v25, %v1727_v54  ;;  %v2983_v54 = vld [vmem:[#allocation10 + $0x90] sm:$0xff]  ;;  %v2981_v25 = vld [vmem:[#allocation10 + $0x80] sm:$0xff] }
 0x9b8   :  { %3022 = vmatpush.msrb.mxu1 %v2983_v54  ;;  %3043 = vmatpush.msra.mxu2 %v2981_v25  ;;  %v3129_v54 = vld [vmem:[#allocation12 + $0x38] sm:$0xff]  ;;  %v5122_v25 = vld [vmem:[#allocation24_spill] sm:$0xff] }
 0x9b9   :  { %v3196_v16 = vmul.f32 -1.442695, %v2753_v45  ;;  %v2977_v45 = vld [vmem:[#allocation10 + $0x60] sm:$0xff] }
 0x9ba   :  { %3023 = vmatpush.msrb.mxu1 %v2980_v6  ;;  %3044 = vmatpush.msra.mxu2 %v2978_v29  ;;  %v1774_v6 = vadd.f32 %v5122_v25, %v4628_v39  ;;  %v3128_v29 = vld [vmem:[#allocation12 + $0x30] sm:$0xff]  ;;  %v3122_v39 = vld [vmem:[#allocation12] sm:$0xff] }
 0x9bb   :  { %3346 = vpow2.f32 %v3196_v16  ;;  %v3345_v51 = vpop.eup %3344  ;;  %v2975_v16 = vld [vmem:[#allocation10 + $0x50] sm:$0xff] }
 0x9bc   :  { %v2762_v59 = vadd.f32 1.0, %v3345_v51  ;;  %v2974_v51 = vld [vmem:[#allocation10 + $0x48] sm:$0xff]  ;;  %3024 = vmatpush.msrb.mxu1 %v2977_v45  ;;  %3045 = vmatpush.msra.mxu2 %v2975_v16 }
 0x9be   :  { %v2789_v19 = vand.u32 2147483648, %v2762_v59  ;;  %vm2783_vm13 = vweird.f32 %v2762_v59  ;;  %v2787_v7 = vand.u32 2147483647, %v2762_v59  ;;  %3025 = vmatpush.msrb.mxu1 %v2974_v51  ;;  %v3127_v51 = vld [vmem:[#allocation12 + $0x28] sm:$0xff] }
 0x9c0   :  { %v2790_v30 = vor.u32 1.1754944e-38, %v2789_v19  ;;  %vm2788_vm15 = vcmp.eq.f32.partialorder %v2787_v7, 8.507059e+37 }
 0x9c1   :  { %v3347_v1 = vpop.eup %3346 }
 0x9c2   :  { %v2761_v52 = vadd.f32 1.0, %v3347_v1  ;;  %v2972_v1 = vld [vmem:[#allocation10 + $0x38] sm:$0xff] }
 0x9c3   :  { %3046 = vmatpush.msra.mxu2 %v2972_v1  ;;  %v3126_v1 = vld [vmem:[#allocation12 + $0x20] sm:$0xff] }
 0x9c4   :  { %3348 = vrcp.f32 %v2761_v52  ;;  %v2774_v28 = vand.u32 2147483648, %v2761_v52  ;;  %v2772_v10 = vand.u32 2147483647, %v2761_v52  ;;  %vm2768_vm9 = vweird.f32 %v2761_v52 }
 0x9c5   :  { %3350 = vrcp.f32 %v2762_v59 }
 0x9c6   :  { %v2775_v13 = vor.u32 1.1754944e-38, %v2774_v28  ;;  %vm2773_vm11 = vcmp.eq.f32.partialorder %v2772_v10, 8.507059e+37  ;;  %v2966_v28 = vld [vmem:[#allocation10 + $0x8] sm:$0xff] }
 0x9ca   :  { %v3349_v57 = vpop.eup %3348 }
 0x9cb   :  { %v3351_v3 = vpop.eup %3350  ;;  %v2764_v58 = vmul.f32 %v3349_v57, %v2761_v52  ;;  %vm2769_vm8 = vweird.f32 %v3349_v57  ;;  %v2971_v52 = vld [vmem:[#allocation10 + $0x30] sm:$0xff] }
 0x9cc   :  { %v2779_v62 = vmul.f32 %v3351_v3, %v2762_v59  ;;  %vm2770_vm10 = vmor %vm2768_vm9, %vm2769_vm8  ;;  %vm2784_vm12 = vweird.f32 %v3351_v3  ;;  %3026 = vmatpush.msrb.mxu1 %v2971_v52 }
 0x9cd   :  { %v2765_v27 = vsub.f32 1.0, %v2764_v58  ;;  %vm2785_vm14 = vmor %vm2783_vm13, %vm2784_vm12 }
 0x9ce   :  { %v2780_v0 = vsub.f32 1.0, %v2779_v62  ;;  %v2968_v62 = vld [vmem:[#allocation10 + $0x18] sm:$0xff] }
 0x9cf   :  { %v2766_v60 = vmul.f32 %v3349_v57, %v2765_v27  ;;  %3027 = vmatpush.msrb.mxu1 %v2968_v62 }
 0x9d0   :  { %v2781_v18 = vmul.f32 %v3351_v3, %v2780_v0 }
 0x9d1   :  { %v2767_v26 = vadd.f32 %v3349_v57, %v2766_v60  ;;  %v2965_v60 = vld [vmem:[#allocation10] sm:$0xff] }
 0x9d2   :  { %v2782_v32 = vadd.f32 %v3351_v3, %v2781_v18  ;;  %3028 = vmatpush.msrb.mxu1 %v2965_v60 }
 0x9d3   :  { %v2771_v41 = vsel %vm2770_vm10, %v3349_v57, %v2767_v26  ;;  %v2969_v57 = vld [vmem:[#allocation10 + $0x20] sm:$0xff] }
 0x9d4   :  { %v2776_v53 = vsel %vm2773_vm11, %v2775_v13, %v2771_v41  ;;  %v2786_v17 = vsel %vm2785_vm14, %v3351_v3, %v2782_v32  ;;  %3047 = vmatpush.msra.mxu2 %v2969_v57  ;;  %v3124_v57 = vld [vmem:[#allocation12 + $0x10] sm:$0xff] }
 0x9d5   :  { %v2794_v14 = vmul.f32 %v2793_v49, %v2776_v53  ;;  %v2791_v33 = vsel %vm2788_vm15, %v2790_v30, %v2786_v17  ;;  %v5120_v17 = vld [vmem:[#allocation20_spill] sm:$0xff] }
 0x9d6   :  { %3048 = vmatpush.msra.mxu2 %v2966_v28 }
 0x9d7   :  { %v2795_v12 = vadd.f32 %v2794_v14, %v1809_v21 }
 0x9d9   :  { %3352 = vtanh.f32 %v2795_v12 }
 0x9df   :  { %v3353_v15 = vpop.eup %3352 }
 0x9e0   :  { %v2797_v4 = vsub.f32 %v5011_v36, %v3353_v15 }
 0x9e2   :  { %v2798_v47 = vmul.f32 %v2797_v4, %v2791_v33 }
 0x9e4   :  { %v5045_v31 = vadd.f32 %v3353_v15, %v2798_v47  ;;  %v1812_v15 = vadd.f32 %v5120_v17, %v4644_v56 }
 0x9e6   :  { %2869 = vmatmul.f32.vlgmr.msrb.gmra.mxu2 %v5045_v31  ;;  %2889 = vmatmul.f32.vlgmr.msra.gmra.mxu3 %v5045_v31 }
 0x9e7   :  { %2909 = vmatmul.f32.vlgmr.msra.gmra.mxu0 %v5045_v31 }
 0xa64   :  { %v2910_v21 = vpop.f32.mrf.mxu0 }
 0xa65   :  { %v2953_v32 = vadd.f32 %v5039_v63, %v2910_v21 }
 0xa69   :  { %v2870_v43 = vpop.f32.mrf.mxu2  ;;  %v2890_v24 = vpop.f32.mrf.mxu3 }
 0xa6a   :  { %v2913_v50 = vadd.f32 %v2870_v43, %v1730_v8  ;;  %v2914_v36 = vadd.f32 %v2890_v24, %v1771_v42  ;;  %v3137_v8 = vld [vmem:[#allocation12 + $0x78] sm:$0xff]  ;;  %v3136_v42 = vld [vmem:[#allocation12 + $0x70] sm:$0xff]  ;;  %v5121_v24 = vld [vmem:[#allocation16_spill] sm:$0xff] }
 0xa6b   :  { %3142 = vmatpush.msrb.mxu0 %v3137_v8  ;;  %v3133_v43 = vld [vmem:[#allocation12 + $0x58] sm:$0xff] }
 0xa6c   :  { %v3198_v48 = vmul.f32 -1.442695, %v2913_v50  ;;  %v3199_v38 = vmul.f32 -1.442695, %v2914_v36  ;;  %v1733_v50 = vadd.f32 %v5121_v24, %v4621_v22  ;;  %v3131_v36 = vld [vmem:[#allocation12 + $0x48] sm:$0xff] }
 0xa6d   :  { %3143 = vmatpush.msrb.mxu0 %v3136_v42 }
 0xa6e   :  { %3354 = vpow2.f32 %v3198_v48  ;;  %v3130_v48 = vld [vmem:[#allocation12 + $0x40] sm:$0xff] }
 0xa6f   :  { %3356 = vpow2.f32 %v3199_v38  ;;  %3144 = vmatpush.msrb.mxu0 %v3135_v9 }
 0xa71   :  { %3145 = vmatpush.msrb.mxu0 %v3134_v23 }
 0xa73   :  { %3146 = vmatpush.msrb.mxu0 %v3133_v43 }
 0xa74   :  { %v3355_v59 = vpop.eup %3354 }
 0xa75   :  { %v3357_v3 = vpop.eup %3356  ;;  %v2921_v58 = vadd.f32 1.0, %v3355_v59  ;;  %v3125_v59 = vld [vmem:[#allocation12 + $0x18] sm:$0xff] }
 0xa76   :  { %v2922_v27 = vadd.f32 1.0, %v3357_v3 }
 0xa77   :  { %3358 = vrcp.f32 %v2921_v58  ;;  %v2934_v13 = vand.u32 2147483648, %v2921_v58  ;;  %v2932_v53 = vand.u32 2147483647, %v2921_v58  ;;  %vm2928_vm1 = vweird.f32 %v2921_v58 }
 0xa78   :  { %3360 = vrcp.f32 %v2922_v27  ;;  %v2949_v40 = vand.u32 2147483648, %v2922_v27  ;;  %vm2943_vm5 = vweird.f32 %v2922_v27  ;;  %v2947_v11 = vand.u32 2147483647, %v2922_v27 }
 0xa79   :  { %v2935_v18 = vor.u32 1.1754944e-38, %v2934_v13  ;;  %vm2933_vm3 = vcmp.eq.f32.partialorder %v2932_v53, 8.507059e+37 }
 0xa7a   :  { %v2950_v37 = vor.u32 1.1754944e-38, %v2949_v40  ;;  %vm2948_vm7 = vcmp.eq.f32.partialorder %v2947_v11, 8.507059e+37 }
 0xa7d   :  { %v3359_v10 = vpop.eup %3358 }
 0xa7e   :  { %v3361_v35 = vpop.eup %3360  ;;  %v2924_v26 = vmul.f32 %v3359_v10, %v2921_v58  ;;  %vm2929_vm0 = vweird.f32 %v3359_v10  ;;  %v3123_v58 = vld [vmem:[#allocation12 + $0x8] sm:$0xff] }
 0xa7f   :  { %v2939_v49 = vmul.f32 %v3361_v35, %v2922_v27  ;;  %vm2930_vm2 = vmor %vm2928_vm1, %vm2929_vm0  ;;  %vm2944_vm4 = vweird.f32 %v3361_v35 }
 0xa80   :  { %v2925_v0 = vsub.f32 1.0, %v2924_v26  ;;  %vm2945_vm6 = vmor %vm2943_vm5, %vm2944_vm4 }
 0xa81   :  { %v2940_v12 = vsub.f32 1.0, %v2939_v49 }
 0xa82   :  { %v2926_v41 = vmul.f32 %v3359_v10, %v2925_v0 }
 0xa83   :  { %v2941_v4 = vmul.f32 %v3361_v35, %v2940_v12 }
 0xa84   :  { %v2927_v14 = vadd.f32 %v3359_v10, %v2926_v41 }
 0xa85   :  { %v2942_v47 = vadd.f32 %v3361_v35, %v2941_v4 }
 0xa86   :  { %v2931_v19 = vsel %vm2930_vm2, %v3359_v10, %v2927_v14 }
 0xa87   :  { %v2936_v7 = vsel %vm2933_vm3, %v2935_v18, %v2931_v19  ;;  %v2946_v61 = vsel %vm2945_vm6, %v3361_v35, %v2942_v47  ;;  %v5123_v19 = vld [vmem:[#allocation17_spill] sm:$0xff] }
 0xa88   :  { %v2954_v30 = vmul.f32 %v2953_v32, %v2936_v7  ;;  %v2951_v44 = vsel %vm2948_vm7, %v2950_v37, %v2946_v61  ;;  %v1815_v7 = vadd.f32 %v5123_v19, %v4644_v56  ;;  %v3213_v56 = vld [vmem:[%s5088_s11] ss:$0 sm:$0xff] }
 0xa8a   :  { %v2955_v33 = vadd.f32 %v2954_v30, %v1812_v15 }
 0xa8c   :  { %3362 = vtanh.f32 %v2955_v33 }
 0xa92   :  { %v3363_v20 = vpop.eup %3362 }
 0xa93   :  { %v2957_v5 = vsub.f32 %v5045_v31, %v3363_v20  ;;  %v3132_v31 = vld [vmem:[#allocation12 + $0x50] sm:$0xff] }
 0xa94   :  { %3147 = vmatpush.msrb.mxu0 %v3132_v31 }
 0xa95   :  { %v2958_v2 = vmul.f32 %v2957_v5, %v2951_v44 }
 0xa96   :  { %3148 = vmatpush.msrb.mxu0 %v3131_v36 }
 0xa97   :  { %v5058_v46 = vadd.f32 %v3363_v20, %v2958_v2 }
 0xa98   :  { %3149 = vmatpush.msrb.mxu0 %v3130_v48 }
 0xa99   :  { %3029 = vmatmul.f32.vlgmr.msrb.gmra.mxu1 %v5058_v46  ;;  %3049 = vmatmul.f32.vlgmr.msra.gmra.mxu2 %v5058_v46 }
 0xa9a   :  { %3069 = vmatmul.f32.vlgmr.msrb.gmra.mxu3 %v5058_v46  ;;  %3150 = vmatpush.msrb.mxu0 %v3129_v54 }
 0xa9c   :  { %3151 = vmatpush.msrb.mxu0 %v3128_v29 }
 0xa9e   :  { %3152 = vmatpush.msrb.mxu0 %v3127_v51 }
 0xaa0   :  { %3153 = vmatpush.msrb.mxu0 %v3126_v1 }
 0xaa2   :  { %3154 = vmatpush.msrb.mxu0 %v3125_v59 }
 0xaa4   :  { %3155 = vmatpush.msrb.mxu0 %v3124_v57 }
 0xaa6   :  { %3156 = vmatpush.msrb.mxu0 %v3123_v58 }
 0xaa8   :  { %3157 = vmatpush.msrb.mxu0 %v3122_v39 }
 0xb16   :  { %v3030_v34 = vpop.f32.mrf.mxu1 }
 0xb17   :  { %v3073_v55 = vadd.f32 %v3030_v34, %v1733_v50 }
 0xb19   :  { %v3200_v38 = vmul.f32 -1.442695, %v3073_v55 }
 0xb1b   :  { %3364 = vpow2.f32 %v3200_v38 }
 0xb1c   :  { %v3050_v45 = vpop.f32.mrf.mxu2 }
 0xb1d   :  { %v3074_v16 = vadd.f32 %v3050_v45, %v1774_v6  ;;  %v3070_v49 = vpop.f32.mrf.mxu3 }
 0xb1e   :  { %v3113_v12 = vadd.f32 %v5039_v63, %v3070_v49 }
 0xb1f   :  { %v3201_v22 = vmul.f32 -1.442695, %v3074_v16 }
 0xb21   :  { %v3365_v52 = vpop.eup %3364  ;;  %3366 = vpow2.f32 %v3201_v22 }
 0xb22   :  { %v3081_v3 = vadd.f32 1.0, %v3365_v52 }
 0xb24   :  { %3368 = vrcp.f32 %v3081_v3  ;;  %v3094_v35 = vand.u32 2147483648, %v3081_v3  ;;  %v3092_v0 = vand.u32 2147483647, %v3081_v3  ;;  %vm3088_vm9 = vweird.f32 %v3081_v3 }
 0xb26   :  { %v3095_v21 = vor.u32 1.1754944e-38, %v3094_v35  ;;  %vm3093_vm11 = vcmp.eq.f32.partialorder %v3092_v0, 8.507059e+37 }
 0xb27   :  { %v3367_v27 = vpop.eup %3366 }
 0xb28   :  { %v3082_v62 = vadd.f32 1.0, %v3367_v27 }
 0xb2a   :  { %v3369_v28 = vpop.eup %3368  ;;  %3370 = vrcp.f32 %v3082_v62  ;;  %v3109_v33 = vand.u32 2147483648, %v3082_v62  ;;  %vm3103_vm13 = vweird.f32 %v3082_v62  ;;  %v3107_v47 = vand.u32 2147483647, %v3082_v62 }
 0xb2b   :  { %v3084_v60 = vmul.f32 %v3369_v28, %v3081_v3  ;;  %vm3089_vm8 = vweird.f32 %v3369_v28 }
 0xb2c   :  { %vm3090_vm10 = vmor %vm3088_vm9, %vm3089_vm8  ;;  %v3110_v61 = vor.u32 1.1754944e-38, %v3109_v33  ;;  %vm3108_vm15 = vcmp.eq.f32.partialorder %v3107_v47, 8.507059e+37 }
 0xb2d   :  { %v3085_v10 = vsub.f32 1.0, %v3084_v60 }
 0xb2f   :  { %v3086_v26 = vmul.f32 %v3369_v28, %v3085_v10 }
 0xb30   :  { %v3371_v13 = vpop.eup %3370 }
 0xb31   :  { %v3099_v41 = vmul.f32 %v3371_v13, %v3082_v62  ;;  %v3087_v53 = vadd.f32 %v3369_v28, %v3086_v26  ;;  %vm3104_vm12 = vweird.f32 %v3371_v13 }
 0xb32   :  { %vm3105_vm14 = vmor %vm3103_vm13, %vm3104_vm12 }
 0xb33   :  { %v3100_v14 = vsub.f32 1.0, %v3099_v41  ;;  %v3091_v18 = vsel %vm3090_vm10, %v3369_v28, %v3087_v53 }
 0xb34   :  { %v3096_v32 = vsel %vm3093_vm11, %v3095_v21, %v3091_v18 }
 0xb35   :  { %v3114_v17 = vmul.f32 %v3113_v12, %v3096_v32  ;;  %v3101_v15 = vmul.f32 %v3371_v13, %v3100_v14 }
 0xb37   :  { %v3115_v30 = vadd.f32 %v3114_v17, %v1815_v7  ;;  %v3102_v4 = vadd.f32 %v3371_v13, %v3101_v15 }
 0xb39   :  { %3372 = vtanh.f32 %v3115_v30  ;;  %v3106_v40 = vsel %vm3105_vm14, %v3371_v13, %v3102_v4 }
 0xb3a   :  { %v3111_v20 = vsel %vm3108_vm15, %v3110_v61, %v3106_v40 }
 0xb3f   :  { %v3373_v11 = vpop.eup %3372 }
 0xb40   :  { %v3117_v63 = vsub.f32 %v5058_v46, %v3373_v11 }
 0xb42   :  { %v3118_v37 = vmul.f32 %v3117_v63, %v3111_v20 }
 0xb44   :  { %v3119_v5 = vadd.f32 %v3373_v11, %v3118_v37 }
 0xb46   :  { %3158 = vmatmul.f32.vlgmr.msrb.gmra.mxu0 %v3119_v5 }
 0xbc3   :  { %v3159_v44 = vpop.f32.mrf.mxu0 }
 0xbc4   :  { %v3160_v2 = vadd.f32 %v3213_v56, %v3159_v44 }
 0xbc6   :  { %3162 = vst [vmem:[%s5089_s12] sm:$0xff] %v3160_v2 }
 0xbc7   :  { %3167 = vsyncpa [#allocation6], 1 }
 0xbc8   :  { %3168 = vsyncpa [#allocation8], 1 }
 0xbc9   :  { %3169 = vsyncpa [#allocation11], 1 }

</bundles_post_ra>
